<compile_context>
chip_gen: v7x
topology: tpu7x:2x2x1
jax: 0.10.0
libtpu: 0.0.40
codegen_flags: <defaults>
</compile_context>

<pallas_src>
import numpy as np
import jax
import jax.numpy as jnp
from jax import lax
from jax.experimental import pallas as pl
from jax.experimental.pallas import tpu as pltpu


def attn_decoder_kernel(
    enc_ref,     # (Bt, T*E)     input_encoded, flattened lane-dense
    prex_ref,    # (Bt, T*E)     enc @ W1_x.T + b1 (hoisted, step-invariant)
    yg_ref,      # (T, Bt, 4D)   y/bias contribution to the LSTM gates, [i,f,o,g]
    h0_ref,      # (Bt, D)
    c0_ref,      # (Bt, D)
    w1h_ref,     # (D, T*E)      attn1 h-rows, transposed and T-column-tiled
    w1c_ref,     # (D, T*E)      attn1 c-rows, transposed and T-column-tiled
    w2bd_ref,    # (T*E, T)      block-diagonal attn2 weight (score reduce on MXU)
    rep_ref,     # (T, T*E)      0/1 alpha lane-broadcast matrix
    seg_ref,     # (T*E, E)      0/1 segment-sum matrix (context reduce on MXU)
    whh_ref,     # (D, 4D)       W_hh.T, gate cols [i,f,o,g]
    wc2g_ref,    # (E, 4D)       Wfc_ctx.T @ W_ih.T, gate cols [i,f,o,g]
    wouth_ref,   # (D, O*T)      fc_out weight, h rows, transposed
    woutc_ref,   # (E, O*T)      fc_out weight, context rows, transposed
    bout_ref,    # (1, O*T)
    out_ref,     # (Bt, O*T)
):
    T = yg_ref.shape[0]
    D = h0_ref.shape[1]
    E = seg_ref.shape[1]

    # loop-invariant loads hoisted out of the serial recurrence
    enc = enc_ref[...]                       # (Bt, T*E) dense vregs
    pre_x = prex_ref[...]                    # (Bt, T*E) dense vregs
    w1h = w1h_ref[...]
    w1c = w1c_ref[...]
    w2bd = w2bd_ref[...]
    rep = rep_ref[...]
    seg = seg_ref[...]
    whh = whh_ref[...]
    wc2g = wc2g_ref[...]

    def step(t, carry):
        h, c, _ = carry                      # (Bt,D), (Bt,D), (Bt,E)

        # attention: lane-dense tanh over (Bt, T*E); hc term via two small dots
        z = jnp.tanh(
            pre_x
            + jnp.dot(h, w1h, preferred_element_type=jnp.float32)
            + jnp.dot(c, w1c, preferred_element_type=jnp.float32))      # (Bt, T*E)
        scores = jnp.dot(z, w2bd, preferred_element_type=jnp.float32)   # (Bt, T)

        # softmax over the T encoder positions (b2 dropped: softmax-invariant)
        m = jnp.max(scores, axis=1, keepdims=True)
        p = jnp.exp(scores - m)
        s = jnp.sum(p, axis=1, keepdims=True)
        inv = pl.reciprocal(s, approx=True)
        inv = inv * (2.0 - s * inv)          # one Newton step -> f32-accurate
        alpha = p * inv                                                 # (Bt, T)

        # context = sum_t alpha[:, t] * enc[:, t, :], kept lane-dense:
        # broadcast alpha across each E-lane segment (MXU), multiply (VPU),
        # reduce over T segments with a 0/1 segment-sum dot (MXU).
        alpha_b = jnp.dot(alpha, rep, preferred_element_type=jnp.float32)   # (Bt, T*E)
        context = jnp.dot(alpha_b * enc, seg,
                          preferred_element_type=jnp.float32)               # (Bt, E)

        # LSTM gates with the fc layer folded in; gate order [i, f, o, g]
        gates = (jnp.dot(h, whh, preferred_element_type=jnp.float32)
                 + jnp.dot(context, wc2g, preferred_element_type=jnp.float32)
                 + yg_ref[t])                                               # (Bt, 4D)
        sig = jax.nn.sigmoid(gates[:, 0:3 * D])
        i_g = sig[:, 0:D]
        f_g = sig[:, D:2 * D]
        o_g = sig[:, 2 * D:3 * D]
        g_g = jnp.tanh(gates[:, 3 * D:4 * D])

        c_new = f_g * c + i_g * g_g
        h_new = o_g * jnp.tanh(c_new)
        return h_new, c_new, context

    ctx0 = jnp.zeros((h0_ref.shape[0], E), jnp.float32)
    unroll = True if T <= 16 else 2          # bound vreg pressure for large T
    h_f, c_f, ctx_f = lax.fori_loop(0, T, step, (h0_ref[...], c0_ref[...], ctx0),
                                    unroll=unroll)

    # out = fc_out([h_T | context_T]) as two split dots (no concat scratch)
    out_ref[...] = (jnp.dot(h_f, wouth_ref[...], preferred_element_type=jnp.float32)
                    + jnp.dot(ctx_f, woutc_ref[...], preferred_element_type=jnp.float32)
                    + bout_ref[...])


def _pick_batch_tile(b):
    """Batch tile: multiple of 8, up to 32 rows, >=2 grid blocks when possible."""
    bp8 = ((b + 7) // 8) * 8
    if bp8 <= 8:
        return 8
    bt = min(32, ((bp8 // 2 + 7) // 8) * 8)
    return max(8, bt)


def attn_decoder(input_encoded, y_history, params):
    """input_encoded: (B, T, E); y_history: (B, T, O). Returns (B, T, O)."""
    B, T, E = input_encoded.shape
    O = y_history.shape[2]
    D = params["w_hh"].shape[1]
    HIGH = jax.lax.Precision.HIGHEST

    Bt = _pick_batch_tile(B)
    Bp = ((B + Bt - 1) // Bt) * Bt
    pad = Bp - B

    # ---- weight prep (done once, outside the kernel; off the serial path) ----
    W1 = params["attn1_w"]                         # (E, 2D+E)
    W1_h = W1[:, :D]                               # (E, D)
    W1_c = W1[:, D:2 * D]                          # (E, D)
    W1_x = W1[:, 2 * D:]                           # (E, E)
    b1 = params["attn1_b"]                         # (E,)
    w2 = params["attn2_w"].reshape(E)              # b2 dropped (softmax-invariant)

    # hoisted, step-invariant enc projection, flattened lane-dense
    pre_x = jnp.einsum('bte,fe->btf', input_encoded, W1_x, precision=HIGH) + b1
    pre_x_flat = pre_x.reshape(B, T * E)
    enc_flat = input_encoded.reshape(B, T * E)

    # tiled / block-structured attention weights (one dense dot per step)
    w1h_t = jnp.tile(W1_h.T, (1, T))                                            # (D, T*E)
    w1c_t = jnp.tile(W1_c.T, (1, T))                                            # (D, T*E)
    w2_bd = jnp.kron(jnp.eye(T, dtype=jnp.float32), w2.reshape(E, 1))           # (T*E, T)
    rep = jnp.kron(jnp.eye(T, dtype=jnp.float32), jnp.ones((1, E), jnp.float32))  # (T, T*E)
    segsum = jnp.kron(jnp.ones((T, 1), jnp.float32), jnp.eye(E, dtype=jnp.float32))  # (T*E, E)

    # fold fc into the LSTM gate projection; gate reorder i,f,g,o -> i,f,o,g
    ar = np.arange(D)
    order = np.concatenate([ar, D + ar, 3 * D + ar, 2 * D + ar])
    W_ih_T = params["w_ih"].T                                                   # (O, 4D)
    Wfc = params["fc_w"]                                                        # (O, E+O)
    wc2g = jnp.dot(Wfc[:, :E].T, W_ih_T, precision=HIGH)[:, order]              # (E, 4D)
    wy2g = jnp.dot(Wfc[:, E:].T, W_ih_T, precision=HIGH)[:, order]              # (O, 4D)
    gbias = (jnp.dot(params["fc_b"], W_ih_T, precision=HIGH)
             + params["b_ih"] + params["b_hh"])[order]                          # (4D,)
    whh_g = params["w_hh"].T[:, order]                                          # (D, 4D)
    # per-step y/bias contribution to the gates, precomputed once, time-major
    y_gates = jnp.einsum('bto,og->btg', y_history, wy2g, precision=HIGH) + gbias
    y_gates_tm = jnp.transpose(y_gates, (1, 0, 2))                              # (T, B, 4D)

    wout_h = params["fc_out_w"][:, :D].T                                        # (D, O*T)
    wout_c = params["fc_out_w"][:, D:].T                                        # (E, O*T)
    bout = params["fc_out_b"].reshape(1, O * T)

    # ---- batch padding to the tile ----
    enc_flat = jnp.pad(enc_flat, ((0, pad), (0, 0)))
    pre_x_flat = jnp.pad(pre_x_flat, ((0, pad), (0, 0)))
    y_gates_tm = jnp.pad(y_gates_tm, ((0, 0), (0, pad), (0, 0)))
    h0 = jnp.pad(params["h0"], ((0, pad), (0, 0)))
    c0 = jnp.pad(params["c0"], ((0, pad), (0, 0)))

    rep_spec = lambda b: (0, 0)
    out = pl.pallas_call(
        attn_decoder_kernel,
        out_shape=jax.ShapeDtypeStruct((Bp, O * T), jnp.float32),
        grid_spec=pltpu.PrefetchScalarGridSpec(
            num_scalar_prefetch=0,
            grid=(Bp // Bt,),
            in_specs=[
                pl.BlockSpec((Bt, T * E), lambda b: (b, 0)),        # enc_flat
                pl.BlockSpec((Bt, T * E), lambda b: (b, 0)),        # pre_x_flat
                pl.BlockSpec((T, Bt, 4 * D), lambda b: (0, b, 0)),  # y_gates (time-major)
                pl.BlockSpec((Bt, D), lambda b: (b, 0)),            # h0
                pl.BlockSpec((Bt, D), lambda b: (b, 0)),            # c0
                pl.BlockSpec((D, T * E), rep_spec),                 # w1h_t
                pl.BlockSpec((D, T * E), rep_spec),                 # w1c_t
                pl.BlockSpec((T * E, T), rep_spec),                 # w2_bd
                pl.BlockSpec((T, T * E), rep_spec),                 # rep
                pl.BlockSpec((T * E, E), rep_spec),                 # segsum
                pl.BlockSpec((D, 4 * D), rep_spec),                 # whh_g
                pl.BlockSpec((E, 4 * D), rep_spec),                 # wc2g
                pl.BlockSpec((D, O * T), rep_spec),                 # wout_h
                pl.BlockSpec((E, O * T), rep_spec),                 # wout_c
                pl.BlockSpec((1, O * T), rep_spec),                 # bout
            ],
            out_specs=pl.BlockSpec((Bt, O * T), lambda b: (b, 0)),
        ),
        compiler_params=pltpu.CompilerParams(
            dimension_semantics=("parallel",),
            vmem_limit_bytes=32 * 1024 * 1024,
        ),
    )(enc_flat, pre_x_flat, y_gates_tm, h0, c0, w1h_t, w1c_t, w2_bd, rep,
      segsum, whh_g, wc2g, wout_h, wout_c, bout)

    return out[:B].reshape(B, T, O)


def attn_decoder_ref(input_encoded, y_history, params):
    """Pure-JAX reference mirroring the PyTorch forward (for validation)."""
    B, T, E = input_encoded.shape
    O = y_history.shape[2]
    D = params["w_hh"].shape[1]
    h, c = params["h0"], params["c0"]
    context = jnp.zeros((B, E), jnp.float32)
    for t in range(T):
        h_rep = jnp.broadcast_to(h[:, None, :], (B, T, D))
        c_rep = jnp.broadcast_to(c[:, None, :], (B, T, D))
        x = jnp.concatenate([h_rep, c_rep, input_encoded], axis=2)       # (B,T,2D+E)
        z = jnp.tanh(x.reshape(-1, 2 * D + E) @ params["attn1_w"].T
                     + params["attn1_b"])
        e = (z @ params["attn2_w"].T + params["attn2_b"]).reshape(B, T)
        alpha = jax.nn.softmax(e, axis=1)
        context = jnp.einsum('bt,bte->be', alpha, input_encoded)
        y_tilde = (jnp.concatenate([context, y_history[:, t]], axis=1)
                   @ params["fc_w"].T + params["fc_b"])
        gates = (y_tilde @ params["w_ih"].T + params["b_ih"]
                 + h @ params["w_hh"].T + params["b_hh"])
        i_g = jax.nn.sigmoid(gates[:, 0:D])
        f_g = jax.nn.sigmoid(gates[:, D:2 * D])
        g_g = jnp.tanh(gates[:, 2 * D:3 * D])
        o_g = jax.nn.sigmoid(gates[:, 3 * D:4 * D])
        c = f_g * c + i_g * g_g
        h = o_g * jnp.tanh(c)
    out = (jnp.concatenate([h, context], axis=1) @ params["fc_out_w"].T
           + params["fc_out_b"])
    return out.reshape(B, T, O)


def make_params(key, hidden_size_decoder, hidden_size_encoder, seq_len, output_size, batch):
    D, E, T, O = hidden_size_decoder, hidden_size_encoder, seq_len, output_size
    ks = jax.random.split(key, 14)
    s = 0.1
    return {
        "attn1_w": s * jax.random.normal(ks[0], (E, 2 * D + E), jnp.float32),
        "attn1_b": s * jax.random.normal(ks[1], (E,), jnp.float32),
        "attn2_w": s * jax.random.normal(ks[2], (1, E), jnp.float32),
        "attn2_b": s * jax.random.normal(ks[3], (1,), jnp.float32),
        # fc.weight.data.normal_() in the reference module -> std-normal weights.
        "fc_w": jax.random.normal(ks[4], (O, E + O), jnp.float32),
        "fc_b": s * jax.random.normal(ks[5], (O,), jnp.float32),
        "w_ih": s * jax.random.normal(ks[6], (4 * D, O), jnp.float32),
        "w_hh": s * jax.random.normal(ks[7], (4 * D, D), jnp.float32),
        "b_ih": s * jax.random.normal(ks[8], (4 * D,), jnp.float32),
        "b_hh": s * jax.random.normal(ks[9], (4 * D,), jnp.float32),
        "fc_out_w": s * jax.random.normal(ks[10], (O * T, D + E), jnp.float32),
        "fc_out_b": s * jax.random.normal(ks[11], (O * T,), jnp.float32),
        # init_hidden(): xavier_normal_ on zeros(1, B, D) at forward time (torch RNG);
        # modeled here as deterministic inputs.
        "h0": s * jax.random.normal(ks[12], (batch, D), jnp.float32),
        "c0": s * jax.random.normal(ks[13], (batch, D), jnp.float32),
    }
    # TODO(synk): add_noise flag of the module is unused in the reference forward; not modeled.


if __name__ == "__main__":
    # batch, seq_len, encoder hidden, decoder hidden, output features
    B, T, E, D, O = 2, 8, 32, 32, 4

    key = jax.random.PRNGKey(0)
    k_enc, k_y, k_p = jax.random.split(key, 3)
    input_encoded = jax.random.normal(k_enc, (B, T, E), jnp.float32)
    y_history = jax.random.normal(k_y, (B, T, O), jnp.float32)
    params = make_params(k_p, hidden_size_decoder=D, hidden_size_encoder=E,
                         seq_len=T, output_size=O, batch=B)

    out = jax.jit(attn_decoder)(input_encoded, y_history, params)
    jax.block_until_ready(out)

    out_ref = attn_decoder_ref(input_encoded, y_history, params)
    np.testing.assert_allclose(np.asarray(out), np.asarray(out_ref),
                               rtol=2e-4, atol=5e-5)
    assert out.shape == (B, T, O)
    print("KERNEL_OK")
</pallas_src>

<mosaic_0001>
module attributes {stable_mosaic.version = 11 : i64} {
  func.func @attn_decoder_kernel(%arg0: i32, %arg1: memref<8x256xf32, #tpu.memory_space<vmem>>, %arg2: memref<8x256xf32, #tpu.memory_space<vmem>>, %arg3: memref<8x8x128xf32, #tpu.memory_space<vmem>>, %arg4: memref<8x32xf32, #tpu.memory_space<vmem>>, %arg5: memref<8x32xf32, #tpu.memory_space<vmem>>, %arg6: memref<32x256xf32, #tpu.memory_space<vmem>>, %arg7: memref<32x256xf32, #tpu.memory_space<vmem>>, %arg8: memref<256x8xf32, #tpu.memory_space<vmem>>, %arg9: memref<8x256xf32, #tpu.memory_space<vmem>>, %arg10: memref<256x32xf32, #tpu.memory_space<vmem>>, %arg11: memref<32x128xf32, #tpu.memory_space<vmem>>, %arg12: memref<32x128xf32, #tpu.memory_space<vmem>>, %arg13: memref<32x32xf32, #tpu.memory_space<vmem>>, %arg14: memref<32x32xf32, #tpu.memory_space<vmem>>, %arg15: memref<1x32xf32, #tpu.memory_space<vmem>>, %arg16: memref<8x32xf32, #tpu.memory_space<vmem>>) attributes {dimension_semantics = [#tpu.dimension_semantics<parallel>], iteration_bounds = array<i64: 1>, scalar_prefetch = 0 : i64, scratch_operands = 0 : i64, tpu.core_type = #tpu.core_type<tc>, window_params = [{transform_indices = @transform_0, window_bounds = array<i64: 8, 256>}, {transform_indices = @transform_1, window_bounds = array<i64: 8, 256>}, {transform_indices = @transform_2, window_bounds = array<i64: 8, 8, 128>}, {transform_indices = @transform_3, window_bounds = array<i64: 8, 32>}, {transform_indices = @transform_4, window_bounds = array<i64: 8, 32>}, {pipeline_mode = #tpu.pipeline_mode<synchronous>, transform_indices = @transform_5, window_bounds = array<i64: 32, 256>}, {pipeline_mode = #tpu.pipeline_mode<synchronous>, transform_indices = @transform_6, window_bounds = array<i64: 32, 256>}, {pipeline_mode = #tpu.pipeline_mode<synchronous>, transform_indices = @transform_7, window_bounds = array<i64: 256, 8>}, {pipeline_mode = #tpu.pipeline_mode<synchronous>, transform_indices = @transform_8, window_bounds = array<i64: 8, 256>}, {pipeline_mode = #tpu.pipeline_mode<synchronous>, transform_indices = @transform_9, window_bounds = array<i64: 256, 32>}, {pipeline_mode = #tpu.pipeline_mode<synchronous>, transform_indices = @transform_10, window_bounds = array<i64: 32, 128>}, {pipeline_mode = #tpu.pipeline_mode<synchronous>, transform_indices = @transform_11, window_bounds = array<i64: 32, 128>}, {pipeline_mode = #tpu.pipeline_mode<synchronous>, transform_indices = @transform_12, window_bounds = array<i64: 32, 32>}, {pipeline_mode = #tpu.pipeline_mode<synchronous>, transform_indices = @transform_13, window_bounds = array<i64: 32, 32>}, {pipeline_mode = #tpu.pipeline_mode<synchronous>, transform_indices = @transform_14, window_bounds = array<i64: 1, 32>}, {transform_indices = @transform_15, window_bounds = array<i64: 8, 32>}]} {
    %c0 = arith.constant 0 : index
    %c0_0 = arith.constant 0 : index
    %0 = vector.load %arg1[%c0, %c0_0] : memref<8x256xf32, #tpu.memory_space<vmem>>, vector<8x256xf32>
    %c0_1 = arith.constant 0 : index
    %c0_2 = arith.constant 0 : index
    %1 = vector.load %arg2[%c0_1, %c0_2] : memref<8x256xf32, #tpu.memory_space<vmem>>, vector<8x256xf32>
    %c0_3 = arith.constant 0 : index
    %c0_4 = arith.constant 0 : index
    %2 = vector.load %arg6[%c0_3, %c0_4] : memref<32x256xf32, #tpu.memory_space<vmem>>, vector<32x256xf32>
    %c0_5 = arith.constant 0 : index
    %c0_6 = arith.constant 0 : index
    %3 = vector.load %arg7[%c0_5, %c0_6] : memref<32x256xf32, #tpu.memory_space<vmem>>, vector<32x256xf32>
    %c0_7 = arith.constant 0 : index
    %c0_8 = arith.constant 0 : index
    %4 = vector.load %arg8[%c0_7, %c0_8] : memref<256x8xf32, #tpu.memory_space<vmem>>, vector<256x8xf32>
    %c0_9 = arith.constant 0 : index
    %c0_10 = arith.constant 0 : index
    %5 = vector.load %arg9[%c0_9, %c0_10] : memref<8x256xf32, #tpu.memory_space<vmem>>, vector<8x256xf32>
    %c0_11 = arith.constant 0 : index
    %c0_12 = arith.constant 0 : index
    %6 = vector.load %arg10[%c0_11, %c0_12] : memref<256x32xf32, #tpu.memory_space<vmem>>, vector<256x32xf32>
    %c0_13 = arith.constant 0 : index
    %c0_14 = arith.constant 0 : index
    %7 = vector.load %arg11[%c0_13, %c0_14] : memref<32x128xf32, #tpu.memory_space<vmem>>, vector<32x128xf32>
    %c0_15 = arith.constant 0 : index
    %c0_16 = arith.constant 0 : index
    %8 = vector.load %arg12[%c0_15, %c0_16] : memref<32x128xf32, #tpu.memory_space<vmem>>, vector<32x128xf32>
    %cst = arith.constant 0.000000e+00 : f32
    %9 = vector.broadcast %cst : f32 to vector<8x32xf32>
    %c0_17 = arith.constant 0 : index
    %c0_18 = arith.constant 0 : index
    %10 = vector.load %arg4[%c0_17, %c0_18] : memref<8x32xf32, #tpu.memory_space<vmem>>, vector<8x32xf32>
    %c0_19 = arith.constant 0 : index
    %c0_20 = arith.constant 0 : index
    %11 = vector.load %arg5[%c0_19, %c0_20] : memref<8x32xf32, #tpu.memory_space<vmem>>, vector<8x32xf32>
    %c0_i32 = arith.constant 0 : i32
    %cst_21 = arith.constant dense<0.000000e+00> : vector<8x256xf32>
    %12 = tpu.matmul %10, %2, %cst_21 {dimension_numbers = #tpu.dot_dimension_numbers<[1], [0], [0], [1], [0, 0, 1, 1], [], []>} : vector<8x32xf32>, vector<32x256xf32>, vector<8x256xf32> -> vector<8x256xf32>
    %13 = arith.addf %1, %12 : vector<8x256xf32>
    %cst_22 = arith.constant dense<0.000000e+00> : vector<8x256xf32>
    %14 = tpu.matmul %11, %3, %cst_22 {dimension_numbers = #tpu.dot_dimension_numbers<[1], [0], [0], [1], [0, 0, 1, 1], [], []>} : vector<8x32xf32>, vector<32x256xf32>, vector<8x256xf32> -> vector<8x256xf32>
    %15 = arith.addf %13, %14 : vector<8x256xf32>
    %16 = math.tanh %15 : vector<8x256xf32>
    %cst_23 = arith.constant dense<0.000000e+00> : vector<8x8xf32>
    %17 = tpu.matmul %16, %4, %cst_23 {dimension_numbers = #tpu.dot_dimension_numbers<[1], [0], [0], [1], [0, 0, 1, 1], [], []>} : vector<8x256xf32>, vector<256x8xf32>, vector<8x8xf32> -> vector<8x8xf32>
    %cst_24 = arith.constant dense<0xFF800000> : vector<8xf32>
    %18 = vector.multi_reduction <maximumf>, %17, %cst_24 [1] : vector<8x8xf32> to vector<8xf32>
    %19 = vector.shape_cast %18 : vector<8xf32> to vector<8x1xf32>
    %20 = vector.broadcast %19 : vector<8x1xf32> to vector<8x8xf32>
    %21 = arith.subf %17, %20 : vector<8x8xf32>
    %22 = math.exp %21 : vector<8x8xf32>
    %cst_25 = arith.constant dense<0.000000e+00> : vector<8xf32>
    %23 = vector.multi_reduction <add>, %22, %cst_25 [1] : vector<8x8xf32> to vector<8xf32>
    %24 = vector.shape_cast %23 : vector<8xf32> to vector<8x1xf32>
    %25 = tpu.reciprocal %24 {approx = true} : vector<8x1xf32> -> vector<8x1xf32>
    %26 = arith.mulf %24, %25 : vector<8x1xf32>
    %cst_26 = arith.constant 2.000000e+00 : f32
    %27 = vector.broadcast %cst_26 : f32 to vector<8x1xf32>
    %28 = arith.subf %27, %26 : vector<8x1xf32>
    %29 = arith.mulf %25, %28 : vector<8x1xf32>
    %30 = vector.broadcast %29 : vector<8x1xf32> to vector<8x8xf32>
    %31 = arith.mulf %22, %30 : vector<8x8xf32>
    %cst_27 = arith.constant dense<0.000000e+00> : vector<8x256xf32>
    %32 = tpu.matmul %31, %5, %cst_27 {dimension_numbers = #tpu.dot_dimension_numbers<[1], [0], [0], [1], [0, 0, 1, 1], [], []>} : vector<8x8xf32>, vector<8x256xf32>, vector<8x256xf32> -> vector<8x256xf32>
    %33 = arith.mulf %32, %0 : vector<8x256xf32>
    %cst_28 = arith.constant dense<0.000000e+00> : vector<8x32xf32>
    %34 = tpu.matmul %33, %6, %cst_28 {dimension_numbers = #tpu.dot_dimension_numbers<[1], [0], [0], [1], [0, 0, 1, 1], [], []>} : vector<8x256xf32>, vector<256x32xf32>, vector<8x32xf32> -> vector<8x32xf32>
    %cst_29 = arith.constant dense<0.000000e+00> : vector<8x128xf32>
    %35 = tpu.matmul %10, %7, %cst_29 {dimension_numbers = #tpu.dot_dimension_numbers<[1], [0], [0], [1], [0, 0, 1, 1], [], []>} : vector<8x32xf32>, vector<32x128xf32>, vector<8x128xf32> -> vector<8x128xf32>
    %cst_30 = arith.constant dense<0.000000e+00> : vector<8x128xf32>
    %36 = tpu.matmul %34, %8, %cst_30 {dimension_numbers = #tpu.dot_dimension_numbers<[1], [0], [0], [1], [0, 0, 1, 1], [], []>} : vector<8x32xf32>, vector<32x128xf32>, vector<8x128xf32> -> vector<8x128xf32>
    %37 = arith.addf %35, %36 : vector<8x128xf32>
    %38 = arith.index_cast %c0_i32 : i32 to index
    %c0_31 = arith.constant 0 : index
    %c0_32 = arith.constant 0 : index
    %39 = vector.load %arg3[%38, %c0_31, %c0_32] : memref<8x8x128xf32, #tpu.memory_space<vmem>>, vector<1x8x128xf32>
    %40 = vector.shape_cast %39 : vector<1x8x128xf32> to vector<8x128xf32>
    %41 = arith.addf %37, %40 : vector<8x128xf32>
    %42 = vector.extract_strided_slice %41 {offsets = [0, 0], sizes = [8, 96], strides = [1, 1]} : vector<8x128xf32> to vector<8x96xf32>
    %43 = arith.negf %42 : vector<8x96xf32>
    %44 = math.exp %43 : vector<8x96xf32>
    %cst_33 = arith.constant 1.000000e+00 : f32
    %45 = vector.broadcast %cst_33 : f32 to vector<8x96xf32>
    %46 = arith.addf %45, %44 : vector<8x96xf32>
    %47 = arith.divf %45, %46 : vector<8x96xf32>
    %48 = vector.extract_strided_slice %47 {offsets = [0, 0], sizes = [8, 32], strides = [1, 1]} : vector<8x96xf32> to vector<8x32xf32>
    %49 = vector.extract_strided_slice %47 {offsets = [0, 32], sizes = [8, 32], strides = [1, 1]} : vector<8x96xf32> to vector<8x32xf32>
    %50 = vector.extract_strided_slice %47 {offsets = [0, 64], sizes = [8, 32], strides = [1, 1]} : vector<8x96xf32> to vector<8x32xf32>
    %51 = vector.extract_strided_slice %41 {offsets = [0, 96], sizes = [8, 32], strides = [1, 1]} : vector<8x128xf32> to vector<8x32xf32>
    %52 = math.tanh %51 : vector<8x32xf32>
    %53 = arith.mulf %49, %11 : vector<8x32xf32>
    %54 = arith.mulf %48, %52 : vector<8x32xf32>
    %55 = arith.addf %53, %54 : vector<8x32xf32>
    %56 = math.tanh %55 : vector<8x32xf32>
    %57 = arith.mulf %50, %56 : vector<8x32xf32>
    %c1_i32 = arith.constant 1 : i32
    %cst_34 = arith.constant dense<0.000000e+00> : vector<8x256xf32>
    %58 = tpu.matmul %57, %2, %cst_34 {dimension_numbers = #tpu.dot_dimension_numbers<[1], [0], [0], [1], [0, 0, 1, 1], [], []>} : vector<8x32xf32>, vector<32x256xf32>, vector<8x256xf32> -> vector<8x256xf32>
    %59 = arith.addf %1, %58 : vector<8x256xf32>
    %cst_35 = arith.constant dense<0.000000e+00> : vector<8x256xf32>
    %60 = tpu.matmul %55, %3, %cst_35 {dimension_numbers = #tpu.dot_dimension_numbers<[1], [0], [0], [1], [0, 0, 1, 1], [], []>} : vector<8x32xf32>, vector<32x256xf32>, vector<8x256xf32> -> vector<8x256xf32>
    %61 = arith.addf %59, %60 : vector<8x256xf32>
    %62 = math.tanh %61 : vector<8x256xf32>
    %cst_36 = arith.constant dense<0.000000e+00> : vector<8x8xf32>
    %63 = tpu.matmul %62, %4, %cst_36 {dimension_numbers = #tpu.dot_dimension_numbers<[1], [0], [0], [1], [0, 0, 1, 1], [], []>} : vector<8x256xf32>, vector<256x8xf32>, vector<8x8xf32> -> vector<8x8xf32>
    %cst_37 = arith.constant dense<0xFF800000> : vector<8xf32>
    %64 = vector.multi_reduction <maximumf>, %63, %cst_37 [1] : vector<8x8xf32> to vector<8xf32>
    %65 = vector.shape_cast %64 : vector<8xf32> to vector<8x1xf32>
    %66 = vector.broadcast %65 : vector<8x1xf32> to vector<8x8xf32>
    %67 = arith.subf %63, %66 : vector<8x8xf32>
    %68 = math.exp %67 : vector<8x8xf32>
    %cst_38 = arith.constant dense<0.000000e+00> : vector<8xf32>
    %69 = vector.multi_reduction <add>, %68, %cst_38 [1] : vector<8x8xf32> to vector<8xf32>
    %70 = vector.shape_cast %69 : vector<8xf32> to vector<8x1xf32>
    %71 = tpu.reciprocal %70 {approx = true} : vector<8x1xf32> -> vector<8x1xf32>
    %72 = arith.mulf %70, %71 : vector<8x1xf32>
    %cst_39 = arith.constant 2.000000e+00 : f32
    %73 = vector.broadcast %cst_39 : f32 to vector<8x1xf32>
    %74 = arith.subf %73, %72 : vector<8x1xf32>
    %75 = arith.mulf %71, %74 : vector<8x1xf32>
    %76 = vector.broadcast %75 : vector<8x1xf32> to vector<8x8xf32>
    %77 = arith.mulf %68, %76 : vector<8x8xf32>
    %cst_40 = arith.constant dense<0.000000e+00> : vector<8x256xf32>
    %78 = tpu.matmul %77, %5, %cst_40 {dimension_numbers = #tpu.dot_dimension_numbers<[1], [0], [0], [1], [0, 0, 1, 1], [], []>} : vector<8x8xf32>, vector<8x256xf32>, vector<8x256xf32> -> vector<8x256xf32>
    %79 = arith.mulf %78, %0 : vector<8x256xf32>
    %cst_41 = arith.constant dense<0.000000e+00> : vector<8x32xf32>
    %80 = tpu.matmul %79, %6, %cst_41 {dimension_numbers = #tpu.dot_dimension_numbers<[1], [0], [0], [1], [0, 0, 1, 1], [], []>} : vector<8x256xf32>, vector<256x32xf32>, vector<8x32xf32> -> vector<8x32xf32>
    %cst_42 = arith.constant dense<0.000000e+00> : vector<8x128xf32>
    %81 = tpu.matmul %57, %7, %cst_42 {dimension_numbers = #tpu.dot_dimension_numbers<[1], [0], [0], [1], [0, 0, 1, 1], [], []>} : vector<8x32xf32>, vector<32x128xf32>, vector<8x128xf32> -> vector<8x128xf32>
    %cst_43 = arith.constant dense<0.000000e+00> : vector<8x128xf32>
    %82 = tpu.matmul %80, %8, %cst_43 {dimension_numbers = #tpu.dot_dimension_numbers<[1], [0], [0], [1], [0, 0, 1, 1], [], []>} : vector<8x32xf32>, vector<32x128xf32>, vector<8x128xf32> -> vector<8x128xf32>
    %83 = arith.addf %81, %82 : vector<8x128xf32>
    %84 = arith.index_cast %c1_i32 : i32 to index
    %c0_44 = arith.constant 0 : index
    %c0_45 = arith.constant 0 : index
    %85 = vector.load %arg3[%84, %c0_44, %c0_45] : memref<8x8x128xf32, #tpu.memory_space<vmem>>, vector<1x8x128xf32>
    %86 = vector.shape_cast %85 : vector<1x8x128xf32> to vector<8x128xf32>
    %87 = arith.addf %83, %86 : vector<8x128xf32>
    %88 = vector.extract_strided_slice %87 {offsets = [0, 0], sizes = [8, 96], strides = [1, 1]} : vector<8x128xf32> to vector<8x96xf32>
    %89 = arith.negf %88 : vector<8x96xf32>
    %90 = math.exp %89 : vector<8x96xf32>
    %cst_46 = arith.constant 1.000000e+00 : f32
    %91 = vector.broadcast %cst_46 : f32 to vector<8x96xf32>
    %92 = arith.addf %91, %90 : vector<8x96xf32>
    %93 = arith.divf %91, %92 : vector<8x96xf32>
    %94 = vector.extract_strided_slice %93 {offsets = [0, 0], sizes = [8, 32], strides = [1, 1]} : vector<8x96xf32> to vector<8x32xf32>
    %95 = vector.extract_strided_slice %93 {offsets = [0, 32], sizes = [8, 32], strides = [1, 1]} : vector<8x96xf32> to vector<8x32xf32>
    %96 = vector.extract_strided_slice %93 {offsets = [0, 64], sizes = [8, 32], strides = [1, 1]} : vector<8x96xf32> to vector<8x32xf32>
    %97 = vector.extract_strided_slice %87 {offsets = [0, 96], sizes = [8, 32], strides = [1, 1]} : vector<8x128xf32> to vector<8x32xf32>
    %98 = math.tanh %97 : vector<8x32xf32>
    %99 = arith.mulf %95, %55 : vector<8x32xf32>
    %100 = arith.mulf %94, %98 : vector<8x32xf32>
    %101 = arith.addf %99, %100 : vector<8x32xf32>
    %102 = math.tanh %101 : vector<8x32xf32>
    %103 = arith.mulf %96, %102 : vector<8x32xf32>
    %c2_i32 = arith.constant 2 : i32
    %cst_47 = arith.constant dense<0.000000e+00> : vector<8x256xf32>
    %104 = tpu.matmul %103, %2, %cst_47 {dimension_numbers = #tpu.dot_dimension_numbers<[1], [0], [0], [1], [0, 0, 1, 1], [], []>} : vector<8x32xf32>, vector<32x256xf32>, vector<8x256xf32> -> vector<8x256xf32>
    %105 = arith.addf %1, %104 : vector<8x256xf32>
    %cst_48 = arith.constant dense<0.000000e+00> : vector<8x256xf32>
    %106 = tpu.matmul %101, %3, %cst_48 {dimension_numbers = #tpu.dot_dimension_numbers<[1], [0], [0], [1], [0, 0, 1, 1], [], []>} : vector<8x32xf32>, vector<32x256xf32>, vector<8x256xf32> -> vector<8x256xf32>
    %107 = arith.addf %105, %106 : vector<8x256xf32>
    %108 = math.tanh %107 : vector<8x256xf32>
    %cst_49 = arith.constant dense<0.000000e+00> : vector<8x8xf32>
    %109 = tpu.matmul %108, %4, %cst_49 {dimension_numbers = #tpu.dot_dimension_numbers<[1], [0], [0], [1], [0, 0, 1, 1], [], []>} : vector<8x256xf32>, vector<256x8xf32>, vector<8x8xf32> -> vector<8x8xf32>
    %cst_50 = arith.constant dense<0xFF800000> : vector<8xf32>
    %110 = vector.multi_reduction <maximumf>, %109, %cst_50 [1] : vector<8x8xf32> to vector<8xf32>
    %111 = vector.shape_cast %110 : vector<8xf32> to vector<8x1xf32>
    %112 = vector.broadcast %111 : vector<8x1xf32> to vector<8x8xf32>
    %113 = arith.subf %109, %112 : vector<8x8xf32>
    %114 = math.exp %113 : vector<8x8xf32>
    %cst_51 = arith.constant dense<0.000000e+00> : vector<8xf32>
    %115 = vector.multi_reduction <add>, %114, %cst_51 [1] : vector<8x8xf32> to vector<8xf32>
    %116 = vector.shape_cast %115 : vector<8xf32> to vector<8x1xf32>
    %117 = tpu.reciprocal %116 {approx = true} : vector<8x1xf32> -> vector<8x1xf32>
    %118 = arith.mulf %116, %117 : vector<8x1xf32>
    %cst_52 = arith.constant 2.000000e+00 : f32
    %119 = vector.broadcast %cst_52 : f32 to vector<8x1xf32>
    %120 = arith.subf %119, %118 : vector<8x1xf32>
    %121 = arith.mulf %117, %120 : vector<8x1xf32>
    %122 = vector.broadcast %121 : vector<8x1xf32> to vector<8x8xf32>
    %123 = arith.mulf %114, %122 : vector<8x8xf32>
    %cst_53 = arith.constant dense<0.000000e+00> : vector<8x256xf32>
    %124 = tpu.matmul %123, %5, %cst_53 {dimension_numbers = #tpu.dot_dimension_numbers<[1], [0], [0], [1], [0, 0, 1, 1], [], []>} : vector<8x8xf32>, vector<8x256xf32>, vector<8x256xf32> -> vector<8x256xf32>
    %125 = arith.mulf %124, %0 : vector<8x256xf32>
    %cst_54 = arith.constant dense<0.000000e+00> : vector<8x32xf32>
    %126 = tpu.matmul %125, %6, %cst_54 {dimension_numbers = #tpu.dot_dimension_numbers<[1], [0], [0], [1], [0, 0, 1, 1], [], []>} : vector<8x256xf32>, vector<256x32xf32>, vector<8x32xf32> -> vector<8x32xf32>
    %cst_55 = arith.constant dense<0.000000e+00> : vector<8x128xf32>
    %127 = tpu.matmul %103, %7, %cst_55 {dimension_numbers = #tpu.dot_dimension_numbers<[1], [0], [0], [1], [0, 0, 1, 1], [], []>} : vector<8x32xf32>, vector<32x128xf32>, vector<8x128xf32> -> vector<8x128xf32>
    %cst_56 = arith.constant dense<0.000000e+00> : vector<8x128xf32>
    %128 = tpu.matmul %126, %8, %cst_56 {dimension_numbers = #tpu.dot_dimension_numbers<[1], [0], [0], [1], [0, 0, 1, 1], [], []>} : vector<8x32xf32>, vector<32x128xf32>, vector<8x128xf32> -> vector<8x128xf32>
    %129 = arith.addf %127, %128 : vector<8x128xf32>
    %130 = arith.index_cast %c2_i32 : i32 to index
    %c0_57 = arith.constant 0 : index
    %c0_58 = arith.constant 0 : index
    %131 = vector.load %arg3[%130, %c0_57, %c0_58] : memref<8x8x128xf32, #tpu.memory_space<vmem>>, vector<1x8x128xf32>
    %132 = vector.shape_cast %131 : vector<1x8x128xf32> to vector<8x128xf32>
    %133 = arith.addf %129, %132 : vector<8x128xf32>
    %134 = vector.extract_strided_slice %133 {offsets = [0, 0], sizes = [8, 96], strides = [1, 1]} : vector<8x128xf32> to vector<8x96xf32>
    %135 = arith.negf %134 : vector<8x96xf32>
    %136 = math.exp %135 : vector<8x96xf32>
    %cst_59 = arith.constant 1.000000e+00 : f32
    %137 = vector.broadcast %cst_59 : f32 to vector<8x96xf32>
    %138 = arith.addf %137, %136 : vector<8x96xf32>
    %139 = arith.divf %137, %138 : vector<8x96xf32>
    %140 = vector.extract_strided_slice %139 {offsets = [0, 0], sizes = [8, 32], strides = [1, 1]} : vector<8x96xf32> to vector<8x32xf32>
    %141 = vector.extract_strided_slice %139 {offsets = [0, 32], sizes = [8, 32], strides = [1, 1]} : vector<8x96xf32> to vector<8x32xf32>
    %142 = vector.extract_strided_slice %139 {offsets = [0, 64], sizes = [8, 32], strides = [1, 1]} : vector<8x96xf32> to vector<8x32xf32>
    %143 = vector.extract_strided_slice %133 {offsets = [0, 96], sizes = [8, 32], strides = [1, 1]} : vector<8x128xf32> to vector<8x32xf32>
    %144 = math.tanh %143 : vector<8x32xf32>
    %145 = arith.mulf %141, %101 : vector<8x32xf32>
    %146 = arith.mulf %140, %144 : vector<8x32xf32>
    %147 = arith.addf %145, %146 : vector<8x32xf32>
    %148 = math.tanh %147 : vector<8x32xf32>
    %149 = arith.mulf %142, %148 : vector<8x32xf32>
    %c3_i32 = arith.constant 3 : i32
    %cst_60 = arith.constant dense<0.000000e+00> : vector<8x256xf32>
    %150 = tpu.matmul %149, %2, %cst_60 {dimension_numbers = #tpu.dot_dimension_numbers<[1], [0], [0], [1], [0, 0, 1, 1], [], []>} : vector<8x32xf32>, vector<32x256xf32>, vector<8x256xf32> -> vector<8x256xf32>
    %151 = arith.addf %1, %150 : vector<8x256xf32>
    %cst_61 = arith.constant dense<0.000000e+00> : vector<8x256xf32>
    %152 = tpu.matmul %147, %3, %cst_61 {dimension_numbers = #tpu.dot_dimension_numbers<[1], [0], [0], [1], [0, 0, 1, 1], [], []>} : vector<8x32xf32>, vector<32x256xf32>, vector<8x256xf32> -> vector<8x256xf32>
    %153 = arith.addf %151, %152 : vector<8x256xf32>
    %154 = math.tanh %153 : vector<8x256xf32>
    %cst_62 = arith.constant dense<0.000000e+00> : vector<8x8xf32>
    %155 = tpu.matmul %154, %4, %cst_62 {dimension_numbers = #tpu.dot_dimension_numbers<[1], [0], [0], [1], [0, 0, 1, 1], [], []>} : vector<8x256xf32>, vector<256x8xf32>, vector<8x8xf32> -> vector<8x8xf32>
    %cst_63 = arith.constant dense<0xFF800000> : vector<8xf32>
    %156 = vector.multi_reduction <maximumf>, %155, %cst_63 [1] : vector<8x8xf32> to vector<8xf32>
    %157 = vector.shape_cast %156 : vector<8xf32> to vector<8x1xf32>
    %158 = vector.broadcast %157 : vector<8x1xf32> to vector<8x8xf32>
    %159 = arith.subf %155, %158 : vector<8x8xf32>
    %160 = math.exp %159 : vector<8x8xf32>
    %cst_64 = arith.constant dense<0.000000e+00> : vector<8xf32>
    %161 = vector.multi_reduction <add>, %160, %cst_64 [1] : vector<8x8xf32> to vector<8xf32>
    %162 = vector.shape_cast %161 : vector<8xf32> to vector<8x1xf32>
    %163 = tpu.reciprocal %162 {approx = true} : vector<8x1xf32> -> vector<8x1xf32>
    %164 = arith.mulf %162, %163 : vector<8x1xf32>
    %cst_65 = arith.constant 2.000000e+00 : f32
    %165 = vector.broadcast %cst_65 : f32 to vector<8x1xf32>
    %166 = arith.subf %165, %164 : vector<8x1xf32>
    %167 = arith.mulf %163, %166 : vector<8x1xf32>
    %168 = vector.broadcast %167 : vector<8x1xf32> to vector<8x8xf32>
    %169 = arith.mulf %160, %168 : vector<8x8xf32>
    %cst_66 = arith.constant dense<0.000000e+00> : vector<8x256xf32>
    %170 = tpu.matmul %169, %5, %cst_66 {dimension_numbers = #tpu.dot_dimension_numbers<[1], [0], [0], [1], [0, 0, 1, 1], [], []>} : vector<8x8xf32>, vector<8x256xf32>, vector<8x256xf32> -> vector<8x256xf32>
    %171 = arith.mulf %170, %0 : vector<8x256xf32>
    %cst_67 = arith.constant dense<0.000000e+00> : vector<8x32xf32>
    %172 = tpu.matmul %171, %6, %cst_67 {dimension_numbers = #tpu.dot_dimension_numbers<[1], [0], [0], [1], [0, 0, 1, 1], [], []>} : vector<8x256xf32>, vector<256x32xf32>, vector<8x32xf32> -> vector<8x32xf32>
    %cst_68 = arith.constant dense<0.000000e+00> : vector<8x128xf32>
    %173 = tpu.matmul %149, %7, %cst_68 {dimension_numbers = #tpu.dot_dimension_numbers<[1], [0], [0], [1], [0, 0, 1, 1], [], []>} : vector<8x32xf32>, vector<32x128xf32>, vector<8x128xf32> -> vector<8x128xf32>
    %cst_69 = arith.constant dense<0.000000e+00> : vector<8x128xf32>
    %174 = tpu.matmul %172, %8, %cst_69 {dimension_numbers = #tpu.dot_dimension_numbers<[1], [0], [0], [1], [0, 0, 1, 1], [], []>} : vector<8x32xf32>, vector<32x128xf32>, vector<8x128xf32> -> vector<8x128xf32>
    %175 = arith.addf %173, %174 : vector<8x128xf32>
    %176 = arith.index_cast %c3_i32 : i32 to index
    %c0_70 = arith.constant 0 : index
    %c0_71 = arith.constant 0 : index
    %177 = vector.load %arg3[%176, %c0_70, %c0_71] : memref<8x8x128xf32, #tpu.memory_space<vmem>>, vector<1x8x128xf32>
    %178 = vector.shape_cast %177 : vector<1x8x128xf32> to vector<8x128xf32>
    %179 = arith.addf %175, %178 : vector<8x128xf32>
    %180 = vector.extract_strided_slice %179 {offsets = [0, 0], sizes = [8, 96], strides = [1, 1]} : vector<8x128xf32> to vector<8x96xf32>
    %181 = arith.negf %180 : vector<8x96xf32>
    %182 = math.exp %181 : vector<8x96xf32>
    %cst_72 = arith.constant 1.000000e+00 : f32
    %183 = vector.broadcast %cst_72 : f32 to vector<8x96xf32>
    %184 = arith.addf %183, %182 : vector<8x96xf32>
    %185 = arith.divf %183, %184 : vector<8x96xf32>
    %186 = vector.extract_strided_slice %185 {offsets = [0, 0], sizes = [8, 32], strides = [1, 1]} : vector<8x96xf32> to vector<8x32xf32>
    %187 = vector.extract_strided_slice %185 {offsets = [0, 32], sizes = [8, 32], strides = [1, 1]} : vector<8x96xf32> to vector<8x32xf32>
    %188 = vector.extract_strided_slice %185 {offsets = [0, 64], sizes = [8, 32], strides = [1, 1]} : vector<8x96xf32> to vector<8x32xf32>
    %189 = vector.extract_strided_slice %179 {offsets = [0, 96], sizes = [8, 32], strides = [1, 1]} : vector<8x128xf32> to vector<8x32xf32>
    %190 = math.tanh %189 : vector<8x32xf32>
    %191 = arith.mulf %187, %147 : vector<8x32xf32>
    %192 = arith.mulf %186, %190 : vector<8x32xf32>
    %193 = arith.addf %191, %192 : vector<8x32xf32>
    %194 = math.tanh %193 : vector<8x32xf32>
    %195 = arith.mulf %188, %194 : vector<8x32xf32>
    %c4_i32 = arith.constant 4 : i32
    %cst_73 = arith.constant dense<0.000000e+00> : vector<8x256xf32>
    %196 = tpu.matmul %195, %2, %cst_73 {dimension_numbers = #tpu.dot_dimension_numbers<[1], [0], [0], [1], [0, 0, 1, 1], [], []>} : vector<8x32xf32>, vector<32x256xf32>, vector<8x256xf32> -> vector<8x256xf32>
    %197 = arith.addf %1, %196 : vector<8x256xf32>
    %cst_74 = arith.constant dense<0.000000e+00> : vector<8x256xf32>
    %198 = tpu.matmul %193, %3, %cst_74 {dimension_numbers = #tpu.dot_dimension_numbers<[1], [0], [0], [1], [0, 0, 1, 1], [], []>} : vector<8x32xf32>, vector<32x256xf32>, vector<8x256xf32> -> vector<8x256xf32>
    %199 = arith.addf %197, %198 : vector<8x256xf32>
    %200 = math.tanh %199 : vector<8x256xf32>
    %cst_75 = arith.constant dense<0.000000e+00> : vector<8x8xf32>
    %201 = tpu.matmul %200, %4, %cst_75 {dimension_numbers = #tpu.dot_dimension_numbers<[1], [0], [0], [1], [0, 0, 1, 1], [], []>} : vector<8x256xf32>, vector<256x8xf32>, vector<8x8xf32> -> vector<8x8xf32>
    %cst_76 = arith.constant dense<0xFF800000> : vector<8xf32>
    %202 = vector.multi_reduction <maximumf>, %201, %cst_76 [1] : vector<8x8xf32> to vector<8xf32>
    %203 = vector.shape_cast %202 : vector<8xf32> to vector<8x1xf32>
    %204 = vector.broadcast %203 : vector<8x1xf32> to vector<8x8xf32>
    %205 = arith.subf %201, %204 : vector<8x8xf32>
    %206 = math.exp %205 : vector<8x8xf32>
    %cst_77 = arith.constant dense<0.000000e+00> : vector<8xf32>
    %207 = vector.multi_reduction <add>, %206, %cst_77 [1] : vector<8x8xf32> to vector<8xf32>
    %208 = vector.shape_cast %207 : vector<8xf32> to vector<8x1xf32>
    %209 = tpu.reciprocal %208 {approx = true} : vector<8x1xf32> -> vector<8x1xf32>
    %210 = arith.mulf %208, %209 : vector<8x1xf32>
    %cst_78 = arith.constant 2.000000e+00 : f32
    %211 = vector.broadcast %cst_78 : f32 to vector<8x1xf32>
    %212 = arith.subf %211, %210 : vector<8x1xf32>
    %213 = arith.mulf %209, %212 : vector<8x1xf32>
    %214 = vector.broadcast %213 : vector<8x1xf32> to vector<8x8xf32>
    %215 = arith.mulf %206, %214 : vector<8x8xf32>
    %cst_79 = arith.constant dense<0.000000e+00> : vector<8x256xf32>
    %216 = tpu.matmul %215, %5, %cst_79 {dimension_numbers = #tpu.dot_dimension_numbers<[1], [0], [0], [1], [0, 0, 1, 1], [], []>} : vector<8x8xf32>, vector<8x256xf32>, vector<8x256xf32> -> vector<8x256xf32>
    %217 = arith.mulf %216, %0 : vector<8x256xf32>
    %cst_80 = arith.constant dense<0.000000e+00> : vector<8x32xf32>
    %218 = tpu.matmul %217, %6, %cst_80 {dimension_numbers = #tpu.dot_dimension_numbers<[1], [0], [0], [1], [0, 0, 1, 1], [], []>} : vector<8x256xf32>, vector<256x32xf32>, vector<8x32xf32> -> vector<8x32xf32>
    %cst_81 = arith.constant dense<0.000000e+00> : vector<8x128xf32>
    %219 = tpu.matmul %195, %7, %cst_81 {dimension_numbers = #tpu.dot_dimension_numbers<[1], [0], [0], [1], [0, 0, 1, 1], [], []>} : vector<8x32xf32>, vector<32x128xf32>, vector<8x128xf32> -> vector<8x128xf32>
    %cst_82 = arith.constant dense<0.000000e+00> : vector<8x128xf32>
    %220 = tpu.matmul %218, %8, %cst_82 {dimension_numbers = #tpu.dot_dimension_numbers<[1], [0], [0], [1], [0, 0, 1, 1], [], []>} : vector<8x32xf32>, vector<32x128xf32>, vector<8x128xf32> -> vector<8x128xf32>
    %221 = arith.addf %219, %220 : vector<8x128xf32>
    %222 = arith.index_cast %c4_i32 : i32 to index
    %c0_83 = arith.constant 0 : index
    %c0_84 = arith.constant 0 : index
    %223 = vector.load %arg3[%222, %c0_83, %c0_84] : memref<8x8x128xf32, #tpu.memory_space<vmem>>, vector<1x8x128xf32>
    %224 = vector.shape_cast %223 : vector<1x8x128xf32> to vector<8x128xf32>
    %225 = arith.addf %221, %224 : vector<8x128xf32>
    %226 = vector.extract_strided_slice %225 {offsets = [0, 0], sizes = [8, 96], strides = [1, 1]} : vector<8x128xf32> to vector<8x96xf32>
    %227 = arith.negf %226 : vector<8x96xf32>
    %228 = math.exp %227 : vector<8x96xf32>
    %cst_85 = arith.constant 1.000000e+00 : f32
    %229 = vector.broadcast %cst_85 : f32 to vector<8x96xf32>
    %230 = arith.addf %229, %228 : vector<8x96xf32>
    %231 = arith.divf %229, %230 : vector<8x96xf32>
    %232 = vector.extract_strided_slice %231 {offsets = [0, 0], sizes = [8, 32], strides = [1, 1]} : vector<8x96xf32> to vector<8x32xf32>
    %233 = vector.extract_strided_slice %231 {offsets = [0, 32], sizes = [8, 32], strides = [1, 1]} : vector<8x96xf32> to vector<8x32xf32>
    %234 = vector.extract_strided_slice %231 {offsets = [0, 64], sizes = [8, 32], strides = [1, 1]} : vector<8x96xf32> to vector<8x32xf32>
    %235 = vector.extract_strided_slice %225 {offsets = [0, 96], sizes = [8, 32], strides = [1, 1]} : vector<8x128xf32> to vector<8x32xf32>
    %236 = math.tanh %235 : vector<8x32xf32>
    %237 = arith.mulf %233, %193 : vector<8x32xf32>
    %238 = arith.mulf %232, %236 : vector<8x32xf32>
    %239 = arith.addf %237, %238 : vector<8x32xf32>
    %240 = math.tanh %239 : vector<8x32xf32>
    %241 = arith.mulf %234, %240 : vector<8x32xf32>
    %c5_i32 = arith.constant 5 : i32
    %cst_86 = arith.constant dense<0.000000e+00> : vector<8x256xf32>
    %242 = tpu.matmul %241, %2, %cst_86 {dimension_numbers = #tpu.dot_dimension_numbers<[1], [0], [0], [1], [0, 0, 1, 1], [], []>} : vector<8x32xf32>, vector<32x256xf32>, vector<8x256xf32> -> vector<8x256xf32>
    %243 = arith.addf %1, %242 : vector<8x256xf32>
    %cst_87 = arith.constant dense<0.000000e+00> : vector<8x256xf32>
    %244 = tpu.matmul %239, %3, %cst_87 {dimension_numbers = #tpu.dot_dimension_numbers<[1], [0], [0], [1], [0, 0, 1, 1], [], []>} : vector<8x32xf32>, vector<32x256xf32>, vector<8x256xf32> -> vector<8x256xf32>
    %245 = arith.addf %243, %244 : vector<8x256xf32>
    %246 = math.tanh %245 : vector<8x256xf32>
    %cst_88 = arith.constant dense<0.000000e+00> : vector<8x8xf32>
    %247 = tpu.matmul %246, %4, %cst_88 {dimension_numbers = #tpu.dot_dimension_numbers<[1], [0], [0], [1], [0, 0, 1, 1], [], []>} : vector<8x256xf32>, vector<256x8xf32>, vector<8x8xf32> -> vector<8x8xf32>
    %cst_89 = arith.constant dense<0xFF800000> : vector<8xf32>
    %248 = vector.multi_reduction <maximumf>, %247, %cst_89 [1] : vector<8x8xf32> to vector<8xf32>
    %249 = vector.shape_cast %248 : vector<8xf32> to vector<8x1xf32>
    %250 = vector.broadcast %249 : vector<8x1xf32> to vector<8x8xf32>
    %251 = arith.subf %247, %250 : vector<8x8xf32>
    %252 = math.exp %251 : vector<8x8xf32>
    %cst_90 = arith.constant dense<0.000000e+00> : vector<8xf32>
    %253 = vector.multi_reduction <add>, %252, %cst_90 [1] : vector<8x8xf32> to vector<8xf32>
    %254 = vector.shape_cast %253 : vector<8xf32> to vector<8x1xf32>
    %255 = tpu.reciprocal %254 {approx = true} : vector<8x1xf32> -> vector<8x1xf32>
    %256 = arith.mulf %254, %255 : vector<8x1xf32>
    %cst_91 = arith.constant 2.000000e+00 : f32
    %257 = vector.broadcast %cst_91 : f32 to vector<8x1xf32>
    %258 = arith.subf %257, %256 : vector<8x1xf32>
    %259 = arith.mulf %255, %258 : vector<8x1xf32>
    %260 = vector.broadcast %259 : vector<8x1xf32> to vector<8x8xf32>
    %261 = arith.mulf %252, %260 : vector<8x8xf32>
    %cst_92 = arith.constant dense<0.000000e+00> : vector<8x256xf32>
    %262 = tpu.matmul %261, %5, %cst_92 {dimension_numbers = #tpu.dot_dimension_numbers<[1], [0], [0], [1], [0, 0, 1, 1], [], []>} : vector<8x8xf32>, vector<8x256xf32>, vector<8x256xf32> -> vector<8x256xf32>
    %263 = arith.mulf %262, %0 : vector<8x256xf32>
    %cst_93 = arith.constant dense<0.000000e+00> : vector<8x32xf32>
    %264 = tpu.matmul %263, %6, %cst_93 {dimension_numbers = #tpu.dot_dimension_numbers<[1], [0], [0], [1], [0, 0, 1, 1], [], []>} : vector<8x256xf32>, vector<256x32xf32>, vector<8x32xf32> -> vector<8x32xf32>
    %cst_94 = arith.constant dense<0.000000e+00> : vector<8x128xf32>
    %265 = tpu.matmul %241, %7, %cst_94 {dimension_numbers = #tpu.dot_dimension_numbers<[1], [0], [0], [1], [0, 0, 1, 1], [], []>} : vector<8x32xf32>, vector<32x128xf32>, vector<8x128xf32> -> vector<8x128xf32>
    %cst_95 = arith.constant dense<0.000000e+00> : vector<8x128xf32>
    %266 = tpu.matmul %264, %8, %cst_95 {dimension_numbers = #tpu.dot_dimension_numbers<[1], [0], [0], [1], [0, 0, 1, 1], [], []>} : vector<8x32xf32>, vector<32x128xf32>, vector<8x128xf32> -> vector<8x128xf32>
    %267 = arith.addf %265, %266 : vector<8x128xf32>
    %268 = arith.index_cast %c5_i32 : i32 to index
    %c0_96 = arith.constant 0 : index
    %c0_97 = arith.constant 0 : index
    %269 = vector.load %arg3[%268, %c0_96, %c0_97] : memref<8x8x128xf32, #tpu.memory_space<vmem>>, vector<1x8x128xf32>
    %270 = vector.shape_cast %269 : vector<1x8x128xf32> to vector<8x128xf32>
    %271 = arith.addf %267, %270 : vector<8x128xf32>
    %272 = vector.extract_strided_slice %271 {offsets = [0, 0], sizes = [8, 96], strides = [1, 1]} : vector<8x128xf32> to vector<8x96xf32>
    %273 = arith.negf %272 : vector<8x96xf32>
    %274 = math.exp %273 : vector<8x96xf32>
    %cst_98 = arith.constant 1.000000e+00 : f32
    %275 = vector.broadcast %cst_98 : f32 to vector<8x96xf32>
    %276 = arith.addf %275, %274 : vector<8x96xf32>
    %277 = arith.divf %275, %276 : vector<8x96xf32>
    %278 = vector.extract_strided_slice %277 {offsets = [0, 0], sizes = [8, 32], strides = [1, 1]} : vector<8x96xf32> to vector<8x32xf32>
    %279 = vector.extract_strided_slice %277 {offsets = [0, 32], sizes = [8, 32], strides = [1, 1]} : vector<8x96xf32> to vector<8x32xf32>
    %280 = vector.extract_strided_slice %277 {offsets = [0, 64], sizes = [8, 32], strides = [1, 1]} : vector<8x96xf32> to vector<8x32xf32>
    %281 = vector.extract_strided_slice %271 {offsets = [0, 96], sizes = [8, 32], strides = [1, 1]} : vector<8x128xf32> to vector<8x32xf32>
    %282 = math.tanh %281 : vector<8x32xf32>
    %283 = arith.mulf %279, %239 : vector<8x32xf32>
    %284 = arith.mulf %278, %282 : vector<8x32xf32>
    %285 = arith.addf %283, %284 : vector<8x32xf32>
    %286 = math.tanh %285 : vector<8x32xf32>
    %287 = arith.mulf %280, %286 : vector<8x32xf32>
    %c6_i32 = arith.constant 6 : i32
    %cst_99 = arith.constant dense<0.000000e+00> : vector<8x256xf32>
    %288 = tpu.matmul %287, %2, %cst_99 {dimension_numbers = #tpu.dot_dimension_numbers<[1], [0], [0], [1], [0, 0, 1, 1], [], []>} : vector<8x32xf32>, vector<32x256xf32>, vector<8x256xf32> -> vector<8x256xf32>
    %289 = arith.addf %1, %288 : vector<8x256xf32>
    %cst_100 = arith.constant dense<0.000000e+00> : vector<8x256xf32>
    %290 = tpu.matmul %285, %3, %cst_100 {dimension_numbers = #tpu.dot_dimension_numbers<[1], [0], [0], [1], [0, 0, 1, 1], [], []>} : vector<8x32xf32>, vector<32x256xf32>, vector<8x256xf32> -> vector<8x256xf32>
    %291 = arith.addf %289, %290 : vector<8x256xf32>
    %292 = math.tanh %291 : vector<8x256xf32>
    %cst_101 = arith.constant dense<0.000000e+00> : vector<8x8xf32>
    %293 = tpu.matmul %292, %4, %cst_101 {dimension_numbers = #tpu.dot_dimension_numbers<[1], [0], [0], [1], [0, 0, 1, 1], [], []>} : vector<8x256xf32>, vector<256x8xf32>, vector<8x8xf32> -> vector<8x8xf32>
    %cst_102 = arith.constant dense<0xFF800000> : vector<8xf32>
    %294 = vector.multi_reduction <maximumf>, %293, %cst_102 [1] : vector<8x8xf32> to vector<8xf32>
    %295 = vector.shape_cast %294 : vector<8xf32> to vector<8x1xf32>
    %296 = vector.broadcast %295 : vector<8x1xf32> to vector<8x8xf32>
    %297 = arith.subf %293, %296 : vector<8x8xf32>
    %298 = math.exp %297 : vector<8x8xf32>
    %cst_103 = arith.constant dense<0.000000e+00> : vector<8xf32>
    %299 = vector.multi_reduction <add>, %298, %cst_103 [1] : vector<8x8xf32> to vector<8xf32>
    %300 = vector.shape_cast %299 : vector<8xf32> to vector<8x1xf32>
    %301 = tpu.reciprocal %300 {approx = true} : vector<8x1xf32> -> vector<8x1xf32>
    %302 = arith.mulf %300, %301 : vector<8x1xf32>
    %cst_104 = arith.constant 2.000000e+00 : f32
    %303 = vector.broadcast %cst_104 : f32 to vector<8x1xf32>
    %304 = arith.subf %303, %302 : vector<8x1xf32>
    %305 = arith.mulf %301, %304 : vector<8x1xf32>
    %306 = vector.broadcast %305 : vector<8x1xf32> to vector<8x8xf32>
    %307 = arith.mulf %298, %306 : vector<8x8xf32>
    %cst_105 = arith.constant dense<0.000000e+00> : vector<8x256xf32>
    %308 = tpu.matmul %307, %5, %cst_105 {dimension_numbers = #tpu.dot_dimension_numbers<[1], [0], [0], [1], [0, 0, 1, 1], [], []>} : vector<8x8xf32>, vector<8x256xf32>, vector<8x256xf32> -> vector<8x256xf32>
    %309 = arith.mulf %308, %0 : vector<8x256xf32>
    %cst_106 = arith.constant dense<0.000000e+00> : vector<8x32xf32>
    %310 = tpu.matmul %309, %6, %cst_106 {dimension_numbers = #tpu.dot_dimension_numbers<[1], [0], [0], [1], [0, 0, 1, 1], [], []>} : vector<8x256xf32>, vector<256x32xf32>, vector<8x32xf32> -> vector<8x32xf32>
    %cst_107 = arith.constant dense<0.000000e+00> : vector<8x128xf32>
    %311 = tpu.matmul %287, %7, %cst_107 {dimension_numbers = #tpu.dot_dimension_numbers<[1], [0], [0], [1], [0, 0, 1, 1], [], []>} : vector<8x32xf32>, vector<32x128xf32>, vector<8x128xf32> -> vector<8x128xf32>
    %cst_108 = arith.constant dense<0.000000e+00> : vector<8x128xf32>
    %312 = tpu.matmul %310, %8, %cst_108 {dimension_numbers = #tpu.dot_dimension_numbers<[1], [0], [0], [1], [0, 0, 1, 1], [], []>} : vector<8x32xf32>, vector<32x128xf32>, vector<8x128xf32> -> vector<8x128xf32>
    %313 = arith.addf %311, %312 : vector<8x128xf32>
    %314 = arith.index_cast %c6_i32 : i32 to index
    %c0_109 = arith.constant 0 : index
    %c0_110 = arith.constant 0 : index
    %315 = vector.load %arg3[%314, %c0_109, %c0_110] : memref<8x8x128xf32, #tpu.memory_space<vmem>>, vector<1x8x128xf32>
    %316 = vector.shape_cast %315 : vector<1x8x128xf32> to vector<8x128xf32>
    %317 = arith.addf %313, %316 : vector<8x128xf32>
    %318 = vector.extract_strided_slice %317 {offsets = [0, 0], sizes = [8, 96], strides = [1, 1]} : vector<8x128xf32> to vector<8x96xf32>
    %319 = arith.negf %318 : vector<8x96xf32>
    %320 = math.exp %319 : vector<8x96xf32>
    %cst_111 = arith.constant 1.000000e+00 : f32
    %321 = vector.broadcast %cst_111 : f32 to vector<8x96xf32>
    %322 = arith.addf %321, %320 : vector<8x96xf32>
    %323 = arith.divf %321, %322 : vector<8x96xf32>
    %324 = vector.extract_strided_slice %323 {offsets = [0, 0], sizes = [8, 32], strides = [1, 1]} : vector<8x96xf32> to vector<8x32xf32>
    %325 = vector.extract_strided_slice %323 {offsets = [0, 32], sizes = [8, 32], strides = [1, 1]} : vector<8x96xf32> to vector<8x32xf32>
    %326 = vector.extract_strided_slice %323 {offsets = [0, 64], sizes = [8, 32], strides = [1, 1]} : vector<8x96xf32> to vector<8x32xf32>
    %327 = vector.extract_strided_slice %317 {offsets = [0, 96], sizes = [8, 32], strides = [1, 1]} : vector<8x128xf32> to vector<8x32xf32>
    %328 = math.tanh %327 : vector<8x32xf32>
    %329 = arith.mulf %325, %285 : vector<8x32xf32>
    %330 = arith.mulf %324, %328 : vector<8x32xf32>
    %331 = arith.addf %329, %330 : vector<8x32xf32>
    %332 = math.tanh %331 : vector<8x32xf32>
    %333 = arith.mulf %326, %332 : vector<8x32xf32>
    %c7_i32 = arith.constant 7 : i32
    %cst_112 = arith.constant dense<0.000000e+00> : vector<8x256xf32>
    %334 = tpu.matmul %333, %2, %cst_112 {dimension_numbers = #tpu.dot_dimension_numbers<[1], [0], [0], [1], [0, 0, 1, 1], [], []>} : vector<8x32xf32>, vector<32x256xf32>, vector<8x256xf32> -> vector<8x256xf32>
    %335 = arith.addf %1, %334 : vector<8x256xf32>
    %cst_113 = arith.constant dense<0.000000e+00> : vector<8x256xf32>
    %336 = tpu.matmul %331, %3, %cst_113 {dimension_numbers = #tpu.dot_dimension_numbers<[1], [0], [0], [1], [0, 0, 1, 1], [], []>} : vector<8x32xf32>, vector<32x256xf32>, vector<8x256xf32> -> vector<8x256xf32>
    %337 = arith.addf %335, %336 : vector<8x256xf32>
    %338 = math.tanh %337 : vector<8x256xf32>
    %cst_114 = arith.constant dense<0.000000e+00> : vector<8x8xf32>
    %339 = tpu.matmul %338, %4, %cst_114 {dimension_numbers = #tpu.dot_dimension_numbers<[1], [0], [0], [1], [0, 0, 1, 1], [], []>} : vector<8x256xf32>, vector<256x8xf32>, vector<8x8xf32> -> vector<8x8xf32>
    %cst_115 = arith.constant dense<0xFF800000> : vector<8xf32>
    %340 = vector.multi_reduction <maximumf>, %339, %cst_115 [1] : vector<8x8xf32> to vector<8xf32>
    %341 = vector.shape_cast %340 : vector<8xf32> to vector<8x1xf32>
    %342 = vector.broadcast %341 : vector<8x1xf32> to vector<8x8xf32>
    %343 = arith.subf %339, %342 : vector<8x8xf32>
    %344 = math.exp %343 : vector<8x8xf32>
    %cst_116 = arith.constant dense<0.000000e+00> : vector<8xf32>
    %345 = vector.multi_reduction <add>, %344, %cst_116 [1] : vector<8x8xf32> to vector<8xf32>
    %346 = vector.shape_cast %345 : vector<8xf32> to vector<8x1xf32>
    %347 = tpu.reciprocal %346 {approx = true} : vector<8x1xf32> -> vector<8x1xf32>
    %348 = arith.mulf %346, %347 : vector<8x1xf32>
    %cst_117 = arith.constant 2.000000e+00 : f32
    %349 = vector.broadcast %cst_117 : f32 to vector<8x1xf32>
    %350 = arith.subf %349, %348 : vector<8x1xf32>
    %351 = arith.mulf %347, %350 : vector<8x1xf32>
    %352 = vector.broadcast %351 : vector<8x1xf32> to vector<8x8xf32>
    %353 = arith.mulf %344, %352 : vector<8x8xf32>
    %cst_118 = arith.constant dense<0.000000e+00> : vector<8x256xf32>
    %354 = tpu.matmul %353, %5, %cst_118 {dimension_numbers = #tpu.dot_dimension_numbers<[1], [0], [0], [1], [0, 0, 1, 1], [], []>} : vector<8x8xf32>, vector<8x256xf32>, vector<8x256xf32> -> vector<8x256xf32>
    %355 = arith.mulf %354, %0 : vector<8x256xf32>
    %cst_119 = arith.constant dense<0.000000e+00> : vector<8x32xf32>
    %356 = tpu.matmul %355, %6, %cst_119 {dimension_numbers = #tpu.dot_dimension_numbers<[1], [0], [0], [1], [0, 0, 1, 1], [], []>} : vector<8x256xf32>, vector<256x32xf32>, vector<8x32xf32> -> vector<8x32xf32>
    %cst_120 = arith.constant dense<0.000000e+00> : vector<8x128xf32>
    %357 = tpu.matmul %333, %7, %cst_120 {dimension_numbers = #tpu.dot_dimension_numbers<[1], [0], [0], [1], [0, 0, 1, 1], [], []>} : vector<8x32xf32>, vector<32x128xf32>, vector<8x128xf32> -> vector<8x128xf32>
    %cst_121 = arith.constant dense<0.000000e+00> : vector<8x128xf32>
    %358 = tpu.matmul %356, %8, %cst_121 {dimension_numbers = #tpu.dot_dimension_numbers<[1], [0], [0], [1], [0, 0, 1, 1], [], []>} : vector<8x32xf32>, vector<32x128xf32>, vector<8x128xf32> -> vector<8x128xf32>
    %359 = arith.addf %357, %358 : vector<8x128xf32>
    %360 = arith.index_cast %c7_i32 : i32 to index
    %c0_122 = arith.constant 0 : index
    %c0_123 = arith.constant 0 : index
    %361 = vector.load %arg3[%360, %c0_122, %c0_123] : memref<8x8x128xf32, #tpu.memory_space<vmem>>, vector<1x8x128xf32>
    %362 = vector.shape_cast %361 : vector<1x8x128xf32> to vector<8x128xf32>
    %363 = arith.addf %359, %362 : vector<8x128xf32>
    %364 = vector.extract_strided_slice %363 {offsets = [0, 0], sizes = [8, 96], strides = [1, 1]} : vector<8x128xf32> to vector<8x96xf32>
    %365 = arith.negf %364 : vector<8x96xf32>
    %366 = math.exp %365 : vector<8x96xf32>
    %cst_124 = arith.constant 1.000000e+00 : f32
    %367 = vector.broadcast %cst_124 : f32 to vector<8x96xf32>
    %368 = arith.addf %367, %366 : vector<8x96xf32>
    %369 = arith.divf %367, %368 : vector<8x96xf32>
    %370 = vector.extract_strided_slice %369 {offsets = [0, 0], sizes = [8, 32], strides = [1, 1]} : vector<8x96xf32> to vector<8x32xf32>
    %371 = vector.extract_strided_slice %369 {offsets = [0, 32], sizes = [8, 32], strides = [1, 1]} : vector<8x96xf32> to vector<8x32xf32>
    %372 = vector.extract_strided_slice %369 {offsets = [0, 64], sizes = [8, 32], strides = [1, 1]} : vector<8x96xf32> to vector<8x32xf32>
    %373 = vector.extract_strided_slice %363 {offsets = [0, 96], sizes = [8, 32], strides = [1, 1]} : vector<8x128xf32> to vector<8x32xf32>
    %374 = math.tanh %373 : vector<8x32xf32>
    %375 = arith.mulf %371, %331 : vector<8x32xf32>
    %376 = arith.mulf %370, %374 : vector<8x32xf32>
    %377 = arith.addf %375, %376 : vector<8x32xf32>
    %378 = math.tanh %377 : vector<8x32xf32>
    %379 = arith.mulf %372, %378 : vector<8x32xf32>
    %c8_i32 = arith.constant 8 : i32
    %c0_125 = arith.constant 0 : index
    %c0_126 = arith.constant 0 : index
    %380 = vector.load %arg13[%c0_125, %c0_126] : memref<32x32xf32, #tpu.memory_space<vmem>>, vector<32x32xf32>
    %cst_127 = arith.constant dense<0.000000e+00> : vector<8x32xf32>
    %381 = tpu.matmul %379, %380, %cst_127 {dimension_numbers = #tpu.dot_dimension_numbers<[1], [0], [0], [1], [0, 0, 1, 1], [], []>} : vector<8x32xf32>, vector<32x32xf32>, vector<8x32xf32> -> vector<8x32xf32>
    %c0_128 = arith.constant 0 : index
    %c0_129 = arith.constant 0 : index
    %382 = vector.load %arg14[%c0_128, %c0_129] : memref<32x32xf32, #tpu.memory_space<vmem>>, vector<32x32xf32>
    %cst_130 = arith.constant dense<0.000000e+00> : vector<8x32xf32>
    %383 = tpu.matmul %356, %382, %cst_130 {dimension_numbers = #tpu.dot_dimension_numbers<[1], [0], [0], [1], [0, 0, 1, 1], [], []>} : vector<8x32xf32>, vector<32x32xf32>, vector<8x32xf32> -> vector<8x32xf32>
    %384 = arith.addf %381, %383 : vector<8x32xf32>
    %c0_131 = arith.constant 0 : index
    %c0_132 = arith.constant 0 : index
    %385 = vector.load %arg15[%c0_131, %c0_132] : memref<1x32xf32, #tpu.memory_space<vmem>>, vector<1x32xf32>
    %386 = vector.broadcast %385 : vector<1x32xf32> to vector<8x32xf32>
    %387 = arith.addf %384, %386 : vector<8x32xf32>
    %c0_133 = arith.constant 0 : index
    %c0_134 = arith.constant 0 : index
    %388 = vector.load %arg16[%c0_133, %c0_134] : memref<8x32xf32, #tpu.memory_space<vmem>>, vector<8x32xf32>
    tpu.vector_store %arg16[%c0_133, %c0_134], %387 {strides = array<i32>} : memref<8x32xf32, #tpu.memory_space<vmem>>, vector<8x32xf32>,
    return
  }
  func.func @transform_0(%arg0: i32) -> (i32, i32) {
    %c0_i32 = arith.constant 0 : i32
    %c0_i32_0 = arith.constant 0 : i32
    return %arg0, %c0_i32 : i32, i32
  }
  func.func @transform_1(%arg0: i32) -> (i32, i32) {
    %c0_i32 = arith.constant 0 : i32
    %c0_i32_0 = arith.constant 0 : i32
    return %arg0, %c0_i32 : i32, i32
  }
  func.func @transform_2(%arg0: i32) -> (i32, i32, i32) {
    %c0_i32 = arith.constant 0 : i32
    %c0_i32_0 = arith.constant 0 : i32
    %c0_i32_1 = arith.constant 0 : i32
    return %c0_i32, %arg0, %c0_i32_0 : i32, i32, i32
  }
  func.func @transform_3(%arg0: i32) -> (i32, i32) {
    %c0_i32 = arith.constant 0 : i32
    %c0_i32_0 = arith.constant 0 : i32
    return %arg0, %c0_i32 : i32, i32
  }
  func.func @transform_4(%arg0: i32) -> (i32, i32) {
    %c0_i32 = arith.constant 0 : i32
    %c0_i32_0 = arith.constant 0 : i32
    return %arg0, %c0_i32 : i32, i32
  }
  func.func @transform_5(%arg0: i32) -> (i32, i32) {
    %c0_i32 = arith.constant 0 : i32
    %c0_i32_0 = arith.constant 0 : i32
    %c0_i32_1 = arith.constant 0 : i32
    return %c0_i32, %c0_i32_0 : i32, i32
  }
  func.func @transform_6(%arg0: i32) -> (i32, i32) {
    %c0_i32 = arith.constant 0 : i32
    %c0_i32_0 = arith.constant 0 : i32
    %c0_i32_1 = arith.constant 0 : i32
    return %c0_i32, %c0_i32_0 : i32, i32
  }
  func.func @transform_7(%arg0: i32) -> (i32, i32) {
    %c0_i32 = arith.constant 0 : i32
    %c0_i32_0 = arith.constant 0 : i32
    %c0_i32_1 = arith.constant 0 : i32
    return %c0_i32, %c0_i32_0 : i32, i32
  }
  func.func @transform_8(%arg0: i32) -> (i32, i32) {
    %c0_i32 = arith.constant 0 : i32
    %c0_i32_0 = arith.constant 0 : i32
    %c0_i32_1 = arith.constant 0 : i32
    return %c0_i32, %c0_i32_0 : i32, i32
  }
  func.func @transform_9(%arg0: i32) -> (i32, i32) {
    %c0_i32 = arith.constant 0 : i32
    %c0_i32_0 = arith.constant 0 : i32
    %c0_i32_1 = arith.constant 0 : i32
    return %c0_i32, %c0_i32_0 : i32, i32
  }
  func.func @transform_10(%arg0: i32) -> (i32, i32) {
    %c0_i32 = arith.constant 0 : i32
    %c0_i32_0 = arith.constant 0 : i32
    %c0_i32_1 = arith.constant 0 : i32
    return %c0_i32, %c0_i32_0 : i32, i32
  }
  func.func @transform_11(%arg0: i32) -> (i32, i32) {
    %c0_i32 = arith.constant 0 : i32
    %c0_i32_0 = arith.constant 0 : i32
    %c0_i32_1 = arith.constant 0 : i32
    return %c0_i32, %c0_i32_0 : i32, i32
  }
  func.func @transform_12(%arg0: i32) -> (i32, i32) {
    %c0_i32 = arith.constant 0 : i32
    %c0_i32_0 = arith.constant 0 : i32
    %c0_i32_1 = arith.constant 0 : i32
    return %c0_i32, %c0_i32_0 : i32, i32
  }
  func.func @transform_13(%arg0: i32) -> (i32, i32) {
    %c0_i32 = arith.constant 0 : i32
    %c0_i32_0 = arith.constant 0 : i32
    %c0_i32_1 = arith.constant 0 : i32
    return %c0_i32, %c0_i32_0 : i32, i32
  }
  func.func @transform_14(%arg0: i32) -> (i32, i32) {
    %c0_i32 = arith.constant 0 : i32
    %c0_i32_0 = arith.constant 0 : i32
    %c0_i32_1 = arith.constant 0 : i32
    return %c0_i32, %c0_i32_0 : i32, i32
  }
  func.func @transform_15(%arg0: i32) -> (i32, i32) {
    %c0_i32 = arith.constant 0 : i32
    %c0_i32_0 = arith.constant 0 : i32
    return %arg0, %c0_i32 : i32, i32
  }
}

</mosaic_0001>

<bundles_post_ra>
// kernel: tile.14
= control target key start
LH: loop header
LB: loop body
LE: loop exit
PB: predicated region body
PF: predicated region fallthrough
CT: control target
= control target key end

     0   :  { %vm92_vm0 = vcmask 1047556   ;;  %s459_s14 = smov 96   ;;  %s460_s26 = smov 64   ;;  %vm3_vm1 = vcmask 261120   ;;  %vm96_vm2 = vcmask 1048320   ;;  %vm183_vm3 = vcmask 785920   ;;  %s904_s0 = inlined_call_operand.vmem [shape: f32[32,8,32], index: 0, kind: input, shape index: {}]   ;;  %s905_s1 = inlined_call_operand.vmem [shape: f32[32,256], index: 1, kind: output, shape index: {}]  }
   0x1   :  { %v392_v0 = vld [vmem:[%s904_s0 + $0x7] ss:$8 sm:$0xf]   ;;  %v387_v3 = vld [vmem:[%s904_s0 + $0x3] ss:$8 sm:$0xf]  }
   0x2   :  { %v393_v1 = vld [vmem:[%s904_s0 + $0x7] ss:$8 sm:$0xf0]   ;;  %v388_v4 = vld [vmem:[%s904_s0 + $0x3] ss:$8 sm:$0xf0]  }
   0x3   :  { %v114_v2 = vsel %vm92_vm0, %v393_v1, %v392_v0  ;;  %v93_v5 = vsel %vm92_vm0, %v388_v4, %v387_v3  ;;  %v395_v6 = vld [vmem:[%s904_s0 + $0x87] ss:$8 sm:$0xf]   ;;  %v389_v9 = vld [vmem:[%s904_s0 + $0x83] ss:$8 sm:$0xf]  }
   0x4   :  { %115 = vrot.lane.b32.xlu1 %v114_v2, %s459_s14  ;;  %v396_v7 = vld [vmem:[%s904_s0 + $0x87] ss:$8 sm:$0xf0]   ;;  %94 = vrot.lane.b32.xlu0 %v93_v5, %s459_s14  ;;  %v390_v10 = vld [vmem:[%s904_s0 + $0x83] ss:$8 sm:$0xf0]  }
   0x5   :  { %v125_v8 = vsel %vm92_vm0, %v396_v7, %v395_v6  ;;  %v103_v11 = vsel %vm92_vm0, %v390_v10, %v389_v9  ;;  %v401_v12 = vld [vmem:[%s904_s0 + $0xc3] ss:$8 sm:$0xf]   ;;  %v407_v18 = vld [vmem:[%s904_s0 + $0xc7] ss:$8 sm:$0xf]  }
   0x6   :  { %v402_v13 = vld [vmem:[%s904_s0 + $0xc3] ss:$8 sm:$0xf0]   ;;  %v408_v19 = vld [vmem:[%s904_s0 + $0xc7] ss:$8 sm:$0xf0]  }
   0x7   :  { %v398_v14 = vld [vmem:[%s904_s0 + $0x43] ss:$8 sm:$0xf]   ;;  %v147_v16 = vsel %vm92_vm0, %v402_v13, %v401_v12  ;;  %v404_v20 = vld [vmem:[%s904_s0 + $0x47] ss:$8 sm:$0xf]   ;;  %v169_v22 = vsel %vm92_vm0, %v408_v19, %v407_v18 }
   0x8   :  { %v399_v15 = vld [vmem:[%s904_s0 + $0x43] ss:$8 sm:$0xf0]   ;;  %126 = vrot.lane.b32.xlu1 %v125_v8, %s459_s14  ;;  %104 = vrot.lane.b32.xlu0 %v103_v11, %s459_s14  ;;  %v405_v21 = vld [vmem:[%s904_s0 + $0x47] ss:$8 sm:$0xf0]  }
   0x9   :  { %v136_v17 = vsel %vm92_vm0, %v399_v15, %v398_v14  ;;  %v158_v23 = vsel %vm92_vm0, %v405_v21, %v404_v20  ;;  %v412_v24 = vld [vmem:[%s904_s0 + $0x82] ss:$8 sm:$0xf]   ;;  %v418_v30 = vld [vmem:[%s904_s0 + $0x86] ss:$8 sm:$0xf]  }
   0xa   :  { %v413_v25 = vld [vmem:[%s904_s0 + $0x82] ss:$8 sm:$0xf0]   ;;  %v419_v31 = vld [vmem:[%s904_s0 + $0x86] ss:$8 sm:$0xf0]  }
   0xb   :  { %v410_v26 = vld [vmem:[%s904_s0 + $0x2] ss:$8 sm:$0xf]   ;;  %v190_v28 = vsel %vm92_vm0, %v413_v25, %v412_v24  ;;  %v415_v32 = vld [vmem:[%s904_s0 + $0x6] ss:$8 sm:$0xf]   ;;  %v212_v34 = vsel %vm92_vm0, %v419_v31, %v418_v30 }
   0xc   :  { %148 = vrot.lane.b32.xlu1 %v147_v16, %s459_s14  ;;  %137 = vrot.lane.b32.xlu0 %v136_v17, %s459_s14  ;;  %v411_v27 = vld [vmem:[%s904_s0 + $0x2] ss:$8 sm:$0xf0]   ;;  %v416_v33 = vld [vmem:[%s904_s0 + $0x6] ss:$8 sm:$0xf0]  }
   0xd   :  { %v180_v29 = vsel %vm92_vm0, %v411_v27, %v410_v26  ;;  %v201_v35 = vsel %vm92_vm0, %v416_v33, %v415_v32  ;;  %v424_v36 = vld [vmem:[%s904_s0 + $0xc2] ss:$8 sm:$0xf]   ;;  %v430_v40 = vld [vmem:[%s904_s0 + $0xc6] ss:$8 sm:$0xf]  }
   0xe   :  { %v425_v37 = vld [vmem:[%s904_s0 + $0xc2] ss:$8 sm:$0xf0]   ;;  %v431_v42 = vld [vmem:[%s904_s0 + $0xc6] ss:$8 sm:$0xf0]  }
   0xf   :  { %v421_v38 = vld [vmem:[%s904_s0 + $0x42] ss:$8 sm:$0xf]   ;;  %v234_v41 = vsel %vm92_vm0, %v425_v37, %v424_v36  ;;  %v427_v43 = vld [vmem:[%s904_s0 + $0x46] ss:$8 sm:$0xf]   ;;  %v256_v53 = vsel %vm92_vm0, %v431_v42, %v430_v40 }
  0x10   :  { %170 = vrot.lane.b32.xlu1 %v169_v22, %s459_s14  ;;  %159 = vrot.lane.b32.xlu0 %v158_v23, %s459_s14  ;;  %v422_v39 = vld [vmem:[%s904_s0 + $0x42] ss:$8 sm:$0xf0]   ;;  %v428_v45 = vld [vmem:[%s904_s0 + $0x46] ss:$8 sm:$0xf0]  }
  0x11   :  { %v223_v44 = vsel %vm92_vm0, %v422_v39, %v421_v38  ;;  %v367_v46 = vld [vmem:[%s904_s0 + $0x80] ss:$4 sm:$0xff]   ;;  %v245_v55 = vsel %vm92_vm0, %v428_v45, %v427_v43  ;;  %v435_v56 = vld [vmem:[%s904_s0 + $0x81] ss:$8 sm:$0xf]   ;;  %s461_s25 = smov 32  }
  0x12   :  { %368 = vst.msk [vmem:[%s905_s1 + $0x20] ss:$8 sm:$0x3] %vm3_vm1, %v367_v46   ;;  %369 = vst.msk [vmem:[%s905_s1 + $0x11] ss:$8 sm:$0xc] %vm3_vm1, %v367_v46  }
  0x13   :  { %370 = vst.msk [vmem:[%s905_s1 + $0x2] ss:$8 sm:$0x30] %vm3_vm1, %v367_v46   ;;  %371 = vst.msk [vmem:[%s905_s1 - $0xd] ss:$8 sm:$0xc0] %vm3_vm1, %v367_v46  }
  0x14   :  { %191 = vrot.lane.b32.xlu1 %v190_v28, %s460_s26  ;;  %181 = vrot.lane.b32.xlu0 %v180_v29, %s460_s26  ;;  %v372_v47 = vld [vmem:[%s904_s0 + $0xa0] ss:$4 sm:$0xff]   ;;  %v436_v57 = vld [vmem:[%s904_s0 + $0x81] ss:$8 sm:$0xf0]   ;;  %vm270_vm4 = vcmask 523520  }
  0x15   :  { %v2_v48 = vld [vmem:[%s904_s0] ss:$4 sm:$0xff]   ;;  %373 = vst.msk [vmem:[%s905_s1 + $0x24] ss:$8 sm:$0x3] %vm3_vm1, %v372_v47   ;;  %v277_v60 = vsel %vm92_vm0, %v436_v57, %v435_v56 }
  0x16   :  { %v352_v49 = vld [vmem:[%s904_s0 + $0x20] ss:$4 sm:$0xff]   ;;  %374 = vst.msk [vmem:[%s905_s1 + $0x15] ss:$8 sm:$0xc] %vm3_vm1, %v372_v47  }
  0x17   :  { %375 = vst.msk [vmem:[%s905_s1 + $0x6] ss:$8 sm:$0x30] %vm3_vm1, %v372_v47   ;;  %376 = vst.msk [vmem:[%s905_s1 - $0x9] ss:$8 sm:$0xc0] %vm3_vm1, %v372_v47  }
  0x18   :  { %213 = vrot.lane.b32.xlu1 %v212_v34, %s460_s26  ;;  %202 = vrot.lane.b32.xlu0 %v201_v35, %s460_s26  ;;  %4 = vst.msk [vmem:[%s905_s1] ss:$8 sm:$0x3] %vm3_vm1, %v2_v48   ;;  %349 = vst.msk [vmem:[%s905_s1 - $0xf] ss:$8 sm:$0xc] %vm3_vm1, %v2_v48  }
  0x19   :  { %350 = vst.msk [vmem:[%s905_s1 - $0x1e] ss:$8 sm:$0x30] %vm3_vm1, %v2_v48   ;;  %351 = vst.msk [vmem:[%s905_s1 - $0x2d] ss:$8 sm:$0xc0] %vm3_vm1, %v2_v48  }
  0x1a   :  { %353 = vst.msk [vmem:[%s905_s1 + $0x4] ss:$8 sm:$0x3] %vm3_vm1, %v352_v49   ;;  %354 = vst.msk [vmem:[%s905_s1 - $0xb] ss:$8 sm:$0xc] %vm3_vm1, %v352_v49  }
  0x1b   :  { %355 = vst.msk [vmem:[%s905_s1 - $0x1a] ss:$8 sm:$0x30] %vm3_vm1, %v352_v49   ;;  %356 = vst.msk [vmem:[%s905_s1 - $0x29] ss:$8 sm:$0xc0] %vm3_vm1, %v352_v49  }
  0x1c   :  { %235 = vrot.lane.b32.xlu1 %v234_v41, %s460_s26  ;;  %v377_v50 = vld [vmem:[%s904_s0 + $0xc0] ss:$4 sm:$0xff]   ;;  %224 = vrot.lane.b32.xlu0 %v223_v44, %s460_s26  ;;  %v433_v58 = vld [vmem:[%s904_s0 + $0x1] ss:$8 sm:$0xf]  }
  0x1d   :  { %v382_v51 = vld [vmem:[%s904_s0 + $0xe0] ss:$4 sm:$0xff]   ;;  %378 = vst.msk [vmem:[%s905_s1 + $0x30] ss:$8 sm:$0x3] %vm3_vm1, %v377_v50  }
  0x1e   :  { %v357_v52 = vld [vmem:[%s904_s0 + $0x40] ss:$4 sm:$0xff]   ;;  %379 = vst.msk [vmem:[%s905_s1 + $0x21] ss:$8 sm:$0xc] %vm3_vm1, %v377_v50  }
  0x1f   :  { %380 = vst.msk [vmem:[%s905_s1 + $0x12] ss:$8 sm:$0x30] %vm3_vm1, %v377_v50   ;;  %381 = vst.msk [vmem:[%s905_s1 + $0x3] ss:$8 sm:$0xc0] %vm3_vm1, %v377_v50  }
  0x20   :  { %383 = vst.msk [vmem:[%s905_s1 + $0x34] ss:$8 sm:$0x3] %vm3_vm1, %v382_v51   ;;  %384 = vst.msk [vmem:[%s905_s1 + $0x25] ss:$8 sm:$0xc] %vm3_vm1, %v382_v51   ;;  %257 = vrot.lane.b32.xlu1 %v256_v53, %s460_s26  ;;  %246 = vrot.lane.b32.xlu0 %v245_v55, %s460_s26 }
  0x21   :  { %385 = vst.msk [vmem:[%s905_s1 + $0x16] ss:$8 sm:$0x30] %vm3_vm1, %v382_v51   ;;  %386 = vst.msk [vmem:[%s905_s1 + $0x7] ss:$8 sm:$0xc0] %vm3_vm1, %v382_v51  }
  0x22   :  { %358 = vst.msk [vmem:[%s905_s1 + $0x10] ss:$8 sm:$0x3] %vm3_vm1, %v357_v52   ;;  %359 = vst.msk [vmem:[%s905_s1 + $0x1] ss:$8 sm:$0xc] %vm3_vm1, %v357_v52  }
  0x23   :  { %360 = vst.msk [vmem:[%s905_s1 - $0xe] ss:$8 sm:$0x30] %vm3_vm1, %v357_v52   ;;  %361 = vst.msk [vmem:[%s905_s1 - $0x1d] ss:$8 sm:$0xc0] %vm3_vm1, %v357_v52  }
  0x24   :  { %v362_v54 = vld [vmem:[%s904_s0 + $0x60] ss:$4 sm:$0xff]   ;;  %v434_v59 = vld [vmem:[%s904_s0 + $0x1] ss:$8 sm:$0xf0]   ;;  %278 = vrot.lane.b32.xlu1 %v277_v60, %s461_s25 }
  0x25   :  { %363 = vst.msk [vmem:[%s905_s1 + $0x14] ss:$8 sm:$0x3] %vm3_vm1, %v362_v54   ;;  %364 = vst.msk [vmem:[%s905_s1 + $0x5] ss:$8 sm:$0xc] %vm3_vm1, %v362_v54   ;;  %v267_v61 = vsel %vm92_vm0, %v434_v59, %v433_v58 }
  0x26   :  { %365 = vst.msk [vmem:[%s905_s1 - $0xa] ss:$8 sm:$0x30] %vm3_vm1, %v362_v54   ;;  %366 = vst.msk [vmem:[%s905_s1 - $0x19] ss:$8 sm:$0xc0] %vm3_vm1, %v362_v54   ;;  %268 = vrot.lane.b32.xlu0 %v267_v61, %s461_s25 }
  0x27   :  { %v441_v62 = vld [vmem:[%s904_s0 + $0x85] ss:$8 sm:$0xf]   ;;  %v447_v4 = vld [vmem:[%s904_s0 + $0xc1] ss:$8 sm:$0xf]  }
  0x28   :  { %v442_v63 = vld [vmem:[%s904_s0 + $0x85] ss:$8 sm:$0xf0]   ;;  %v448_v5 = vld [vmem:[%s904_s0 + $0xc1] ss:$8 sm:$0xf0]  }
  0x29   :  { %v438_v0 = vld [vmem:[%s904_s0 + $0x5] ss:$8 sm:$0xf]   ;;  %v299_v2 = vsel %vm92_vm0, %v442_v63, %v441_v62  ;;  %v444_v6 = vld [vmem:[%s904_s0 + $0x41] ss:$8 sm:$0xf]   ;;  %v321_v8 = vsel %vm92_vm0, %v448_v5, %v447_v4 }
  0x2a   :  { %v439_v1 = vld [vmem:[%s904_s0 + $0x5] ss:$8 sm:$0xf0]   ;;  %v445_v7 = vld [vmem:[%s904_s0 + $0x41] ss:$8 sm:$0xf0]   ;;  %300 = vrot.lane.b32.xlu1 %v299_v2, %s461_s25 }
  0x2b   :  { %v288_v3 = vsel %vm92_vm0, %v439_v1, %v438_v0  ;;  %v310_v9 = vsel %vm92_vm0, %v445_v7, %v444_v6  ;;  %v453_v10 = vld [vmem:[%s904_s0 + $0xc5] ss:$8 sm:$0xf]  }
  0x2c   :  { %289 = vrot.lane.b32.xlu0 %v288_v3, %s461_s25  ;;  %v454_v11 = vld [vmem:[%s904_s0 + $0xc5] ss:$8 sm:$0xf0]  }
  0x2d   :  { %v450_v12 = vld [vmem:[%s904_s0 + $0x45] ss:$8 sm:$0xf]   ;;  %v343_v14 = vsel %vm92_vm0, %v454_v11, %v453_v10 }
  0x2e   :  { %v451_v13 = vld [vmem:[%s904_s0 + $0x45] ss:$8 sm:$0xf0]   ;;  %322 = vrot.lane.b32.xlu1 %v321_v8, %s461_s25 }
  0x2f   :  { %v332_v15 = vsel %vm92_vm0, %v451_v13, %v450_v12 }
  0x30   :  { %311 = vrot.lane.b32.xlu0 %v310_v9, %s461_s25 }
  0x32   :  { %344 = vrot.lane.b32.xlu1 %v343_v14, %s461_s25 }
  0x34   :  { %333 = vrot.lane.b32.xlu0 %v332_v15, %s461_s25 }
  0x76   :  { %v116_v16 = vpop.permute.xlu1 %115   ;;  %v95_v17 = vpop.permute.xlu0 %94  }
  0x77   :  { %394 = vst.msk [vmem:[%s905_s1 + $0x8] sm:$0xff] %vm96_vm2, %v116_v16   ;;  %97 = vst.msk [vmem:[%s905_s1] sm:$0xff] %vm96_vm2, %v95_v17  }
  0x7a   :  { %v127_v18 = vpop.permute.xlu1 %126   ;;  %v105_v19 = vpop.permute.xlu0 %104  }
  0x7b   :  { %397 = vst.msk [vmem:[%s905_s1 + $0x28] sm:$0xff] %vm96_vm2, %v127_v18   ;;  %391 = vst.msk [vmem:[%s905_s1 + $0x20] sm:$0xff] %vm96_vm2, %v105_v19  }
  0x7e   :  { %v149_v20 = vpop.permute.xlu1 %148   ;;  %v138_v21 = vpop.permute.xlu0 %137  }
  0x7f   :  { %403 = vst.msk [vmem:[%s905_s1 + $0x30] sm:$0xff] %vm96_vm2, %v149_v20   ;;  %400 = vst.msk [vmem:[%s905_s1 + $0x10] sm:$0xff] %vm96_vm2, %v138_v21  }
  0x82   :  { %v171_v22 = vpop.permute.xlu1 %170   ;;  %v160_v23 = vpop.permute.xlu0 %159  }
  0x83   :  { %409 = vst.msk [vmem:[%s905_s1 + $0x38] sm:$0xff] %vm96_vm2, %v171_v22   ;;  %406 = vst.msk [vmem:[%s905_s1 + $0x18] sm:$0xff] %vm96_vm2, %v160_v23  }
  0x86   :  { %v192_v24 = vpop.permute.xlu1 %191   ;;  %v182_v25 = vpop.permute.xlu0 %181  }
  0x87   :  { %414 = vst.msk [vmem:[%s905_s1 + $0x20] sm:$0xff] %vm183_vm3, %v192_v24   ;;  %184 = vst.msk [vmem:[%s905_s1] sm:$0xff] %vm183_vm3, %v182_v25  }
  0x8a   :  { %v214_v26 = vpop.permute.xlu1 %213   ;;  %v203_v27 = vpop.permute.xlu0 %202  }
  0x8b   :  { %420 = vst.msk [vmem:[%s905_s1 + $0x28] sm:$0xff] %vm183_vm3, %v214_v26   ;;  %417 = vst.msk [vmem:[%s905_s1 + $0x8] sm:$0xff] %vm183_vm3, %v203_v27  }
  0x8e   :  { %v236_v28 = vpop.permute.xlu1 %235   ;;  %v225_v29 = vpop.permute.xlu0 %224  }
  0x8f   :  { %426 = vst.msk [vmem:[%s905_s1 + $0x30] sm:$0xff] %vm183_vm3, %v236_v28   ;;  %423 = vst.msk [vmem:[%s905_s1 + $0x10] sm:$0xff] %vm183_vm3, %v225_v29  }
  0x92   :  { %v258_v30 = vpop.permute.xlu1 %257   ;;  %v247_v31 = vpop.permute.xlu0 %246  }
  0x93   :  { %432 = vst.msk [vmem:[%s905_s1 + $0x38] sm:$0xff] %vm183_vm3, %v258_v30   ;;  %429 = vst.msk [vmem:[%s905_s1 + $0x18] sm:$0xff] %vm183_vm3, %v247_v31  }
  0x96   :  { %v279_v32 = vpop.permute.xlu1 %278  }
  0x97   :  { %437 = vst.msk [vmem:[%s905_s1 + $0x20] sm:$0xff] %vm270_vm4, %v279_v32  }
  0x98   :  { %v269_v33 = vpop.permute.xlu0 %268  }
  0x99   :  { %271 = vst.msk [vmem:[%s905_s1] sm:$0xff] %vm270_vm4, %v269_v33  }
  0x9c   :  { %v301_v34 = vpop.permute.xlu1 %300  }
  0x9d   :  { %443 = vst.msk [vmem:[%s905_s1 + $0x28] sm:$0xff] %vm270_vm4, %v301_v34  }
  0x9e   :  { %v290_v35 = vpop.permute.xlu0 %289  }
  0x9f   :  { %440 = vst.msk [vmem:[%s905_s1 + $0x8] sm:$0xff] %vm270_vm4, %v290_v35  }
  0xa0   :  { %v323_v36 = vpop.permute.xlu1 %322  }
  0xa1   :  { %449 = vst.msk [vmem:[%s905_s1 + $0x30] sm:$0xff] %vm270_vm4, %v323_v36  }
  0xa2   :  { %v312_v37 = vpop.permute.xlu0 %311  }
  0xa3   :  { %446 = vst.msk [vmem:[%s905_s1 + $0x10] sm:$0xff] %vm270_vm4, %v312_v37  }
  0xa4   :  { %v345_v38 = vpop.permute.xlu1 %344  }
  0xa5   :  { %455 = vst.msk [vmem:[%s905_s1 + $0x38] sm:$0xff] %vm270_vm4, %v345_v38  }
  0xa6   :  { %v334_v39 = vpop.permute.xlu0 %333  }
  0xa7   :  { %452 = vst.msk [vmem:[%s905_s1 + $0x18] sm:$0xff] %vm270_vm4, %v334_v39  }

// kernel: attn_decoder.1
= control target key start
LH: loop header
LB: loop body
LE: loop exit
PB: predicated region body
PF: predicated region fallthrough
CT: control target
= control target key end

     0   :  { %v7844_v3 = vmov 0.0   ;;  %vm146_vm0 = vcmask 261120   ;;  %vm371_vm1 = vcmask 64512   ;;  %vm6604_vm2 = vmmov 0   ;;  %s6605_s23 = smov 32   ;;  %s6606_s24 = smov 64   ;;  %s7826_s5 = inlined_call_operand.vmem [shape: f32[32,256], index: 5, kind: input, shape index: {}]   ;;  %s7827_s6 = inlined_call_operand.vmem [shape: f32[32,256], index: 6, kind: input, shape index: {}]   ;;  %s7828_s3 = inlined_call_operand.vmem [shape: f32[8,32], index: 3, kind: input, shape index: {}]   ;;  %s7829_s7 = inlined_call_operand.vmem [shape: f32[256,8], index: 7, kind: input, shape index: {}]   ;;  %s7830_s4 = inlined_call_operand.vmem [shape: f32[8,32], index: 4, kind: input, shape index: {}]   ;;  %s7831_s1 = inlined_call_operand.vmem [shape: f32[8,256], index: 1, kind: input, shape index: {}]   ;;  %s7832_s8 = inlined_call_operand.vmem [shape: f32[8,256], index: 8, kind: input, shape index: {}]   ;;  %s7833_s9 = inlined_call_operand.vmem [shape: f32[256,32], index: 9, kind: input, shape index: {}]   ;;  %s7834_s11 = inlined_call_operand.vmem [shape: f32[32,128], index: 11, kind: input, shape index: {}]   ;;  %s7835_s0 = inlined_call_operand.vmem [shape: f32[8,256], index: 0, kind: input, shape index: {}]   ;;  %s7836_s10 = inlined_call_operand.vmem [shape: f32[32,128], index: 10, kind: input, shape index: {}]   ;;  %s7837_s2 = inlined_call_operand.vmem [shape: f32[8,8,128], index: 2, kind: input, shape index: {}]   ;;  %s7838_s13 = inlined_call_operand.vmem [shape: f32[32,32], index: 13, kind: input, shape index: {}]   ;;  %s7839_s12 = inlined_call_operand.vmem [shape: f32[32,32], index: 12, kind: input, shape index: {}]   ;;  %s7840_s14 = inlined_call_operand.vmem [shape: f32[1,32], index: 14, kind: input, shape index: {}]   ;;  %s7841_s15 = inlined_call_operand.vmem [shape: f32[8,32], index: 15, kind: output, shape index: {}]  }
   0x1   :  { %v55_v0 = vld [vmem:[%s7826_s5 + $0x8] sm:$0xff]  ;;  %v57_v1 = vld [vmem:[%s7826_s5 + $0x18] sm:$0xff]  ;;  %v54_v2 = vld [vmem:[%s7826_s5] sm:$0xff]  ;;  %214 = vmatprep.mubr.f32.mxu0 %v7844_v3 }
   0x2   :  { %v6698_v4 = vpack.c.bf16 %v57_v1, %v55_v0  ;;  %v56_v5 = vld [vmem:[%s7826_s5 + $0x10] sm:$0xff]  ;;  %v59_v6 = vld [vmem:[%s7826_s5 + $0x28] sm:$0xff]  ;;  %v61_v7 = vld [vmem:[%s7826_s5 + $0x38] sm:$0xff] }
   0x3   :  { %v6709_v8 = vpack.c.bf16 %v56_v5, %v54_v2  ;;  %v6711_v9 = vpack.c.bf16 %v61_v7, %v59_v6  ;;  %v58_v10 = vld [vmem:[%s7826_s5 + $0x20] sm:$0xff]  ;;  %v60_v11 = vld [vmem:[%s7826_s5 + $0x30] sm:$0xff]  ;;  %v63_v12 = vld [vmem:[%s7827_s6 + $0x8] sm:$0xff] }
   0x4   :  { %5683 = vmatprep.subr.bf16.mxu0 %v6698_v4  ;;  %v65_v13 = vld [vmem:[%s7827_s6 + $0x18] sm:$0xff]  ;;  %v6727_v14 = vpack.c.bf16 %v60_v11, %v58_v10  ;;  %v62_v15 = vld [vmem:[%s7827_s6] sm:$0xff]  ;;  %v64_v17 = vld [vmem:[%s7827_s6 + $0x10] sm:$0xff] }
   0x5   :  { %5685 = vmatpush1.bf16.msra.mxu0 %v6709_v8  ;;  %v6733_v16 = vpack.c.bf16 %v65_v13, %v63_v12  ;;  %v67_v18 = vld [vmem:[%s7827_s6 + $0x28] sm:$0xff]  ;;  %v69_v19 = vld [vmem:[%s7827_s6 + $0x38] sm:$0xff]  ;;  %v6747_v20 = vld [vmem:[%s7828_s3] sm:$0xff]  ;;  %v6770_v28 = vpack.c.bf16 %v64_v17, %v62_v15  ;;  %s6607_s3 = smov 96  }
   0x6   :  { %5687 = vmatprep.subr.bf16.mxu0 %v6711_v9  ;;  %v86_v21 = vld [vmem:[%s7829_s7 + $0x80] sm:$0xff]  ;;  %v87_v22 = vld [vmem:[%s7829_s7 + $0x88] sm:$0xff]  ;;  %v88_v26 = vld [vmem:[%s7829_s7 + $0x90] sm:$0xff]  ;;  %v6786_v34 = vpack.c.bf16 %v69_v19, %v67_v18 }
   0x7   :  { %7864 = vst [vmem:[#allocation2_spill] sm:$0xff] %v6733_v16  ;;  %v70_v23 = vld [vmem:[%s7829_s7] sm:$0xff]  ;;  %v6758_v24 = vpack.c.bf16 %v87_v22, %v86_v21  ;;  %v71_v25 = vld [vmem:[%s7829_s7 + $0x8] sm:$0xff]  ;;  %v89_v27 = vld [vmem:[%s7829_s7 + $0x98] sm:$0xff] }
   0x8   :  { %v6772_v29 = vpack.c.bf16 %v71_v25, %v70_v23  ;;  %v6774_v30 = vpack.c.bf16 %v89_v27, %v88_v26  ;;  %v72_v31 = vld [vmem:[%s7829_s7 + $0x10] sm:$0xff]  ;;  %v73_v32 = vld [vmem:[%s7829_s7 + $0x18] sm:$0xff]  ;;  %v90_v33 = vld [vmem:[%s7829_s7 + $0xa0] sm:$0xff] }
   0x9   :  { %5689 = vmatpush1.bf16.msra.mxu0 %v6727_v14  ;;  %v66_v35 = vld [vmem:[%s7827_s6 + $0x20] sm:$0xff]  ;;  %v68_v36 = vld [vmem:[%s7827_s6 + $0x30] sm:$0xff]  ;;  %5699 = vmatprep.subr.bf16.mxu1 %v6758_v24  ;;  %v91_v37 = vld [vmem:[%s7829_s7 + $0xa8] sm:$0xff]  ;;  %v6799_v38 = vpack.c.bf16 %v73_v32, %v72_v31 }
   0xa   :  { %5691 = vmatprep.subr.bf16.mxu0 %v6733_v16  ;;  %5701 = vmatpush3.bf16.msra.mxu1 %v6772_v29  ;;  %v6804_v39 = vpack.c.bf16 %v91_v37, %v90_v33  ;;  %v74_v40 = vld [vmem:[%s7829_s7 + $0x20] sm:$0xff]  ;;  %v75_v41 = vld [vmem:[%s7829_s7 + $0x28] sm:$0xff]  ;;  %v6813_v42 = vpack.c.bf16 %v68_v36, %v66_v35  ;;  %v92_v43 = vld [vmem:[%s7829_s7 + $0xb0] sm:$0xff] }
   0xb   :  { %5703 = vmatprep.subr.bf16.mxu1 %v6774_v30  ;;  %v93_v44 = vld [vmem:[%s7829_s7 + $0xb8] sm:$0xff]  ;;  %v6824_v45 = vpack.c.bf16 %v75_v41, %v74_v40  ;;  %v76_v47 = vld [vmem:[%s7829_s7 + $0x30] sm:$0xff]  ;;  %v6839_v49 = vld [vmem:[%s7830_s4] sm:$0xff] }
   0xc   :  { %4776 = vmatmul.mubr.msk.f32.vlgmr.msra.gmra.mrb[0].mxu0 %vm146_vm0, %v6747_v20  ;;  %v6827_v46 = vpack.c.bf16 %v93_v44, %v92_v43  ;;  %v77_v48 = vld [vmem:[%s7829_s7 + $0x38] sm:$0xff]  ;;  %v94_v51 = vld [vmem:[%s7829_s7 + $0xc0] sm:$0xff]  ;;  %v95_v52 = vld [vmem:[%s7829_s7 + $0xc8] sm:$0xff] }
   0xd   :  { %5693 = vmatpush1.bf16.msra.mxu0 %v6770_v28  ;;  %290 = vmatprep.mubr.f32.mxu0 %v7844_v3  ;;  %v6842_v50 = vpack.c.bf16 %v77_v48, %v76_v47  ;;  %v6855_v53 = vpack.c.bf16 %v95_v52, %v94_v51  ;;  %v78_v54 = vld [vmem:[%s7829_s7 + $0x40] sm:$0xff]  ;;  %v79_v55 = vld [vmem:[%s7829_s7 + $0x48] sm:$0xff]  ;;  %v96_v57 = vld [vmem:[%s7829_s7 + $0xd0] sm:$0xff] }
   0xe   :  { %5695 = vmatprep.subr.bf16.mxu0 %v6786_v34  ;;  %5705 = vmatpush3.bf16.msra.mxu1 %v6799_v38  ;;  %v6863_v56 = vpack.c.bf16 %v79_v55, %v78_v54  ;;  %v97_v58 = vld [vmem:[%s7829_s7 + $0xd8] sm:$0xff]  ;;  %v80_v60 = vld [vmem:[%s7829_s7 + $0x50] sm:$0xff]  ;;  %v98_v63 = vld [vmem:[%s7829_s7 + $0xe0] sm:$0xff] }
   0xf   :  { %5707 = vmatprep.subr.bf16.mxu1 %v6804_v39  ;;  %v6873_v59 = vpack.c.bf16 %v97_v58, %v96_v57  ;;  %v81_v61 = vld [vmem:[%s7829_s7 + $0x58] sm:$0xff]  ;;  %v99_v0 = vld [vmem:[%s7829_s7 + $0xe8] sm:$0xff]  ;;  %v82_v1 = vld [vmem:[%s7829_s7 + $0x60] sm:$0xff] }
  0x10   :  { %v6881_v62 = vpack.c.bf16 %v81_v61, %v80_v60  ;;  %v6894_v2 = vpack.c.bf16 %v99_v0, %v98_v63  ;;  %v83_v5 = vld [vmem:[%s7829_s7 + $0x68] sm:$0xff]  ;;  %v100_v6 = vld [vmem:[%s7829_s7 + $0xf0] sm:$0xff]  ;;  %v101_v7 = vld [vmem:[%s7829_s7 + $0xf8] sm:$0xff] }
  0x11   :  { %5697 = vmatpush1.bf16.msra.mxu0 %v6813_v42  ;;  %v6905_v10 = vpack.c.bf16 %v83_v5, %v82_v1  ;;  %v6907_v11 = vpack.c.bf16 %v101_v7, %v100_v6  ;;  %v84_v12 = vld [vmem:[%s7829_s7 + $0x70] sm:$0xff]  ;;  %v85_v13 = vld [vmem:[%s7829_s7 + $0x78] sm:$0xff]  ;;  %v6924_v17 = vld [vmem:[%s7831_s1] sm:$0xff] }
  0x12   :  { %5709 = vmatpush3.bf16.msra.mxu1 %v6824_v45  ;;  %v6917_v15 = vpack.c.bf16 %v85_v13, %v84_v12  ;;  %7865 = vst [vmem:[#allocation3_spill] sm:$0xff] %v6924_v17  ;;  %v6929_v18 = vld [vmem:[%s7831_s1 + $0x8] sm:$0xff]  ;;  %v6944_v44 = vld [vmem:[%s7832_s8] sm:$0xff]  ;;  %v122_v61 = vld [vmem:[%s7833_s9 + $0x90] sm:$0xff] }
  0x13   :  { %5711 = vmatprep.subr.bf16.mxu1 %v6827_v46  ;;  %7866 = vst [vmem:[#allocation4_spill] sm:$0xff] %v6929_v18  ;;  %v6938_v43 = vld [vmem:[%s7832_s8 + $0x8] sm:$0xff]  ;;  %v120_v47 = vld [vmem:[%s7833_s9 + $0x80] sm:$0xff]  ;;  %v123_v63 = vld [vmem:[%s7833_s9 + $0x98] sm:$0xff] }
  0x14   :  { %4777 = vmatmul.mubr.msk.f32.vlgmr.msra.gmra.mrb[0].mxu0 %vm146_vm0, %v6839_v49  ;;  %389 = vmatprep.subr.mxu0 %v6938_v43  ;;  %v121_v48 = vld [vmem:[%s7833_s9 + $0x88] sm:$0xff]  ;;  %v104_v58 = vld [vmem:[%s7833_s9] sm:$0xff]  ;;  %v6970_v6 = vpack.c.bf16 %v123_v63, %v122_v61  ;;  %v106_v7 = vld [vmem:[%s7833_s9 + $0x10] sm:$0xff] }
  0x15   :  { %453 = vmatprep.mubr.f32.mxu0 %v7844_v3  ;;  %390 = vmatpush1.msra.mxu0 %v6944_v44  ;;  %v6953_v51 = vpack.c.bf16 %v121_v48, %v120_v47  ;;  %v105_v60 = vld [vmem:[%s7833_s9 + $0x8] sm:$0xff]  ;;  %v107_v12 = vld [vmem:[%s7833_s9 + $0x18] sm:$0xff]  ;;  %v124_v13 = vld [vmem:[%s7833_s9 + $0xa0] sm:$0xff] }
  0x16   :  { %5713 = vmatpush3.bf16.msra.mxu1 %v6842_v50  ;;  %v6968_v1 = vpack.c.bf16 %v105_v60, %v104_v58  ;;  %v112_v47 = vld [vmem:[%s7833_s9 + $0x40] sm:$0xff]  ;;  %v113_v48 = vld [vmem:[%s7833_s9 + $0x48] sm:$0xff]  ;;  %v114_v58 = vld [vmem:[%s7833_s9 + $0x50] sm:$0xff] }
  0x17   :  { %5715 = vmatprep.subr.bf16.mxu1 %v6855_v53  ;;  %7867 = vst [vmem:[#allocation5_spill] sm:$0xff] %v6953_v51  ;;  %5731 = vmatprep.subr.bf16.mxu0 %v6953_v51  ;;  %v115_v60 = vld [vmem:[%s7833_s9 + $0x58] sm:$0xff]  ;;  %v132_v61 = vld [vmem:[%s7833_s9 + $0xe0] sm:$0xff]  ;;  %v133_v63 = vld [vmem:[%s7833_s9 + $0xe8] sm:$0xff] }
  0x1a   :  { %5717 = vmatpush3.bf16.msra.mxu1 %v6863_v56 }
  0x1b   :  { %5719 = vmatprep.subr.bf16.mxu1 %v6873_v59 }
  0x1e   :  { %5721 = vmatpush3.bf16.msra.mxu1 %v6881_v62 }
  0x1f   :  { %5723 = vmatprep.subr.bf16.mxu1 %v6894_v2 }
  0x22   :  { %5725 = vmatpush3.bf16.msra.mxu1 %v6905_v10 }
  0x23   :  { %5727 = vmatprep.subr.bf16.mxu1 %v6907_v11 }
  0x26   :  { %5729 = vmatpush3.bf16.msra.mxu1 %v6917_v15 }
  0xe7   :  { %v292_v19 = vpop.f32.mrb[0].mxu0 }
  0xe8   :  { %v6430_v21 = vadd.f32 %v292_v19, %v6924_v17  ;;  %v294_v22 = vpop.f32.mrb[1].mxu0  ;;  %v125_v19 = vld [vmem:[%s7833_s9 + $0xa8] sm:$0xff] }
  0xe9   :  { %v6431_v23 = vadd.f32 %v294_v22, %v6929_v18  ;;  %v6989_v22 = vpack.c.bf16 %v125_v19, %v124_v13  ;;  %v134_v19 = vld [vmem:[%s7833_s9 + $0xf0] sm:$0xff] }
  0xeb   :  { %6468 = vtanh.f32 %v6431_v23  ;;  %v108_v23 = vld [vmem:[%s7833_s9 + $0x20] sm:$0xff] }
  0xec   :  { %6470 = vtanh.f32 %v6430_v21  ;;  %v6986_v21 = vpack.c.bf16 %v107_v12, %v106_v7  ;;  %v116_v7 = vld [vmem:[%s7833_s9 + $0x60] sm:$0xff]  ;;  %v117_v12 = vld [vmem:[%s7833_s9 + $0x68] sm:$0xff] }
  0xed   :  { %v7070_v13 = vpack.c.bf16 %v117_v12, %v116_v7  ;;  %v143_v7 = vld [vmem:[%s7834_s11 + $0x18] sm:$0xff] }
  0xf5   :  { %v6469_v25 = vpop.eup %6468 }
  0xf6   :  { %v6471_v26 = vpop.eup %6470  ;;  %365 = vmatprep.mubr.f32.mxu1 %v6469_v25  ;;  %v109_v25 = vld [vmem:[%s7833_s9 + $0x28] sm:$0xff] }
  0xf7   :  { %366 = vmatmul.mubr.f32.vlgmr.msra.gmra.mrb[0].mxu1 %v6471_v26  ;;  %v126_v26 = vld [vmem:[%s7833_s9 + $0xb0] sm:$0xff] }
  0xf8   :  { %5492 = vmatprep.mubr.msk.f32.mxu1 %vm6604_vm2, %v7844_v3 }
 0x1ca   :  { %v4866_v27 = vpop.f32.mrb[0].mxu1 }
 0x1cb   :  { %v4867_v31 = vpop.f32.mrb[1].mxu1 }
 0x1cc   :  { %v4868_v32 = vadd.f32 %v4867_v31, %v4866_v27  ;;  %v127_v27 = vld [vmem:[%s7833_s9 + $0xb8] sm:$0xff]  ;;  %v7004_v31 = vpack.c.bf16 %v109_v25, %v108_v23 }
 0x1cd   :  { %v135_v23 = vld [vmem:[%s7833_s9 + $0xf8] sm:$0xff] }
 0x1ce   :  { %v372_v33 = vsel %vm371_vm1, %v4868_v32, -inf  ;;  %v7080_v25 = vpack.c.bf16 %v135_v23, %v134_v19  ;;  %v136_v19 = vld [vmem:[%s7836_s10] sm:$0xff]  ;;  %v137_v23 = vld [vmem:[%s7836_s10 + $0x8] sm:$0xff] }
 0x1cf   :  { %373 = vmax.xlane.f32.xlu0 %v372_v33  ;;  %v110_v33 = vld [vmem:[%s7833_s9 + $0x30] sm:$0xff] }
 0x25c   :  { %v374_v35 = vpop.xlane.xlu0 %373 }
 0x25d   :  { %v375_v36 = vsub.f32 %v4868_v32, %v374_v35  ;;  %v7007_v32 = vpack.c.bf16 %v127_v27, %v126_v26  ;;  %v111_v35 = vld [vmem:[%s7833_s9 + $0x38] sm:$0xff]  ;;  %v118_v26 = vld [vmem:[%s7833_s9 + $0x70] sm:$0xff] }
 0x25e   :  { %v119_v27 = vld [vmem:[%s7833_s9 + $0x78] sm:$0xff] }
 0x25f   :  { %v376_v37 = vmul.f32 1.442695, %v375_v36  ;;  %v128_v36 = vld [vmem:[%s7833_s9 + $0xc0] sm:$0xff] }
 0x261   :  { %6472 = vpow2.f32 %v376_v37  ;;  %v129_v37 = vld [vmem:[%s7833_s9 + $0xc8] sm:$0xff] }
 0x26b   :  { %v6473_v40 = vpop.eup %6472 }
 0x26c   :  { %v378_v41 = vsel %vm371_vm1, %v6473_v40, 0.0 }
 0x26d   :  { %379 = vadd.xlane.f32.xlu0 %v378_v41  ;;  %v7025_v41 = vpack.c.bf16 %v129_v37, %v128_v36  ;;  %v140_v36 = vld [vmem:[%s7834_s11] sm:$0xff]  ;;  %v141_v37 = vld [vmem:[%s7834_s11 + $0x8] sm:$0xff] }
 0x2fa   :  { %v380_v52 = vpop.xlane.xlu0 %379 }
 0x2fb   :  { %6474 = vrcp.f32 %v380_v52 }
 0x305   :  { %v6475_v54 = vpop.eup %6474 }
 0x306   :  { %v382_v55 = vmul.f32 %v6475_v54, %v380_v52  ;;  %v130_v52 = vld [vmem:[%s7833_s9 + $0xd0] sm:$0xff] }
 0x308   :  { %v383_v57 = vsub.f32 2.0, %v382_v55  ;;  %v7040_v55 = vpack.c.bf16 %v113_v48, %v112_v47  ;;  %v7100_v47 = vpack.c.bf16 %v141_v37, %v140_v36  ;;  %v7107_v48 = vld [vmem:[%s7835_s0 + $0x8] sm:$0xff]  ;;  %v7150_v36 = vpack.c.bf16 %v137_v23, %v136_v19  ;;  %v675_v19 = vld [vmem:[%s7837_s2] sm:$0xff] }
 0x30a   :  { %v384_v0 = vmul.f32 %v6475_v54, %v383_v57  ;;  %v131_v54 = vld [vmem:[%s7833_s9 + $0xd8] sm:$0xff]  ;;  %7868 = vst [vmem:[#allocation6_spill] sm:$0xff] %v7100_v47 }
 0x30b   :  { %v7043_v57 = vpack.c.bf16 %v131_v54, %v130_v52  ;;  %v7112_v52 = vld [vmem:[%s7835_s0] sm:$0xff] }
 0x30c   :  { %v385_v5 = vmul.f32 %v6473_v40, %v384_v0  ;;  %v7022_v40 = vpack.c.bf16 %v111_v35, %v110_v33  ;;  %v7058_v0 = vpack.c.bf16 %v115_v60, %v114_v58  ;;  %v7088_v33 = vpack.c.bf16 %v119_v27, %v118_v26 }
 0x30d   :  { %v7842_v35 = vmov 0.0|0.0  }
 0x30e   :  { %4778 = vmatmul.mubr.msk.f32.vlgmr.msra.gmra.mrb[2].mxu0 %vm371_vm1, %v385_v5  ;;  %v7061_v5 = vpack.c.bf16 %v133_v63, %v132_v61  ;;  %5762 = vmatprep.subr.bf16.mxu1 %v7842_v35  ;;  %v142_v63 = vld [vmem:[%s7834_s11 + $0x10] sm:$0xff] }
 0x30f   :  { %5733 = vmatpush3.bf16.msra.mxu0 %v6968_v1  ;;  %5764 = vmatpush3.bf16.msra.mxu1 %v7100_v47  ;;  %v7138_v12 = vpack.c.bf16 %v143_v7, %v142_v63 }
 0x310   :  { %5735 = vmatprep.subr.bf16.mxu0 %v6970_v6  ;;  %5765 = vmatprep.subr.bf16.mxu1 %v7842_v35 }
 0x311   :  { %7869 = vst [vmem:[#allocation7_spill] sm:$0xff] %v7138_v12 }
 0x313   :  { %5737 = vmatpush3.bf16.msra.mxu0 %v6986_v21  ;;  %5767 = vmatpush3.bf16.msra.mxu1 %v7138_v12 }
 0x314   :  { %5739 = vmatprep.subr.bf16.mxu0 %v6989_v22  ;;  %5768 = vmatprep.subr.bf16.mxu1 %v7842_v35 }
 0x317   :  { %5741 = vmatpush3.bf16.msra.mxu0 %v7004_v31 }
 0x318   :  { %5743 = vmatprep.subr.bf16.mxu0 %v7007_v32 }
 0x31b   :  { %5745 = vmatpush3.bf16.msra.mxu0 %v7022_v40 }
 0x31c   :  { %5747 = vmatprep.subr.bf16.mxu0 %v7025_v41 }
 0x31f   :  { %5749 = vmatpush3.bf16.msra.mxu0 %v7040_v55 }
 0x320   :  { %5751 = vmatprep.subr.bf16.mxu0 %v7043_v57 }
 0x323   :  { %5753 = vmatpush3.bf16.msra.mxu0 %v7058_v0 }
 0x324   :  { %5755 = vmatprep.subr.bf16.mxu0 %v7061_v5 }
 0x327   :  { %5757 = vmatpush3.bf16.msra.mxu0 %v7070_v13 }
 0x328   :  { %5759 = vmatprep.subr.bf16.mxu0 %v7080_v25 }
 0x32b   :  { %5761 = vmatpush3.bf16.msra.mxu0 %v7088_v33 }
 0x32c   :  { %5791 = vmatprep.subr.bf16.mxu0 %v6758_v24 }
 0x3e1   :  { %v455_v54 = vpop.f32.mrb[2].mxu0 }
 0x3e2   :  { %v457_v58 = vpop.f32.mrb[3].mxu0  ;;  %v460_v61 = vmul.f32 %v455_v54, %v7112_v52  ;;  %v138_v54 = vld [vmem:[%s7836_s10 + $0x10] sm:$0xff] }
 0x3e3   :  { %v461_v60 = vmul.f32 %v457_v58, %v7107_v48  ;;  %v139_v58 = vld [vmem:[%s7836_s10 + $0x18] sm:$0xff] }
 0x3e5   :  { %526 = vmatprep.mubr.f32.mxu0 %v461_v60  ;;  %v7160_v60 = vpack.c.bf16 %v139_v58, %v138_v54 }
 0x3e6   :  { %527 = vmatmul.mubr.f32.vlgmr.msra.gmra.mrb[4].mxu0 %v460_v61 }
 0x3e7   :  { %5793 = vmatpush3.bf16.msra.mxu0 %v6772_v29 }
 0x3e8   :  { %5795 = vmatprep.subr.bf16.mxu0 %v6774_v30 }
 0x3eb   :  { %5797 = vmatpush3.bf16.msra.mxu0 %v6799_v38 }
 0x3ec   :  { %5799 = vmatprep.subr.bf16.mxu0 %v6804_v39 }
 0x3ef   :  { %5801 = vmatpush3.bf16.msra.mxu0 %v6824_v45 }
 0x3f0   :  { %5803 = vmatprep.subr.bf16.mxu0 %v6827_v46 }
 0x3f3   :  { %5805 = vmatpush3.bf16.msra.mxu0 %v6842_v50 }
 0x3f4   :  { %5807 = vmatprep.subr.bf16.mxu0 %v6855_v53 }
 0x3f7   :  { %5809 = vmatpush3.bf16.msra.mxu0 %v6863_v56 }
 0x3f8   :  { %5811 = vmatprep.subr.bf16.mxu0 %v6873_v59 }
 0x3fb   :  { %5813 = vmatpush3.bf16.msra.mxu0 %v6881_v62 }
 0x3fc   :  { %5815 = vmatprep.subr.bf16.mxu0 %v6894_v2 }
 0x3ff   :  { %5817 = vmatpush3.bf16.msra.mxu0 %v6905_v10 }
 0x400   :  { %5819 = vmatprep.subr.bf16.mxu0 %v6907_v11 }
 0x403   :  { %5821 = vmatpush3.bf16.msra.mxu0 %v6917_v15 }
 0x404   :  { %5854 = vmatprep.subr.bf16.mxu0 %v7842_v35 }
 0x4b9   :  { %v4901_v26 = vpop.f32.mrb[4].mxu0 }
 0x4ba   :  { %v4902_v27 = vpop.f32.mrb[5].mxu0 }
 0x4bb   :  { %v4903_v37 = vadd.f32 %v4902_v27, %v4901_v26 }
 0x4bd   :  { %5493 = vmatmul.mubr.msk.f32.vlgmr.msra.gmra.mrb[2].mxu1 %vm146_vm0, %v4903_v37 }
 0x4be   :  { %5770 = vmatpush3.bf16.msra.mxu1 %v7150_v36  ;;  %5503 = vmatprep.mubr.msk.f32.mxu1 %vm6604_vm2, %v7844_v3 }
 0x4bf   :  { %5771 = vmatprep.subr.bf16.mxu1 %v7842_v35 }
 0x4c2   :  { %5773 = vmatpush3.bf16.msra.mxu1 %v7160_v60 }
 0x4c3   :  { %5775 = vmatprep.subr.bf16.mxu1 %v6698_v4 }
 0x4c5   :  { %5504 = vmatmul.mubr.msk.f32.vlgmr.msra.gmra.mrb[4].mxu1 %vm146_vm0, %v6747_v20 }
 0x4c6   :  { %5777 = vmatpush1.bf16.msra.mxu1 %v6709_v8  ;;  %773 = vmatprep.mubr.f32.mxu1 %v7844_v3 }
 0x4c7   :  { %5779 = vmatprep.subr.bf16.mxu1 %v6711_v9 }
 0x4ca   :  { %5781 = vmatpush1.bf16.msra.mxu1 %v6727_v14 }
 0x4cb   :  { %5783 = vmatprep.subr.bf16.mxu1 %v6733_v16 }
 0x590   :  { %v601_v61 = vpop.f32.mrb[2].mxu1 }
 0x591   :  { %v5494_v63 = vpop.f32.mrb[3].mxu1 }
 0x598   :  { %v671_v7 = vpop.f32.mrb[4].mxu1 }
 0x599   :  { %v672_v23 = vadd.f32 %v671_v7, %v601_v61  ;;  %v5505_v26 = vpop.f32.mrb[5].mxu1 }
 0x59b   :  { %v676_v20 = vadd.f32 %v675_v19, %v672_v23 }
 0x59d   :  { %6476 = vtanh.f32 %v676_v20  ;;  %v4781_v37 = vmul.f32 -1.442695, %v676_v20 }
 0x59f   :  { %6478 = vpow2.f32 %v4781_v37 }
 0x5a7   :  { %v6477_v27 = vpop.eup %6476 }
 0x5a8   :  { %689 = vrot.lane.b32.xlu1 %v6477_v27, %s6605_s23 }
 0x5a9   :  { %v6479_v54 = vpop.eup %6478 }
 0x5aa   :  { %v680_v58 = vadd.f32 1.0, %v6479_v54 }
 0x5ac   :  { %684 = vrot.lane.b32.xlu1 %v6839_v49, %s6605_s23  ;;  %6480 = vrcp.f32 %v680_v58 }
 0x5b6   :  { %v6481_v63 = vpop.eup %6480 }
 0x61a   :  { %v690_v35 = vpop.permute.xlu1 %689 }
 0x61b   :  { %v692_v3 = vmul.f32 %v6481_v63, %v690_v35  ;;  %v7870_v35 = vmov 0.0  }
 0x61d   :  { %694 = vrot.lane.b32.xlu0 %v692_v3, %s6605_s23 }
 0x61e   :  { %v685_v61 = vpop.permute.xlu1 %684 }
 0x61f   :  { %v687_v7 = vmul.f32 %v6481_v63, %v685_v61 }
 0x68f   :  { %v695_v19 = vpop.permute.xlu0 %694 }
 0x690   :  { %v7181_v23 = vadd.f32 %v695_v19, %v687_v7  ;;  %v7871_v19 = vmov 0.0|0.0  }
 0x692   :  { %6482 = vtanh.f32 %v7181_v23 }
 0x69c   :  { %v6483_v26 = vpop.eup %6482 }
 0x69d   :  { %700 = vrot.lane.b32.xlu1 %v6483_v26, %s6605_s23 }
 0x70f   :  { %v701_v49 = vpop.permute.xlu1 %700 }
 0x710   :  { %v703_v20 = vmul.f32 %v6481_v63, %v701_v49 }
 0x712   :  { %705 = vrot.lane.b32.xlu1 %v703_v20, %s6606_s24 }
 0x716   :  { %783 = vrot.lane.b32.xlu1 %v7181_v23, %s6607_s3 }
 0x784   :  { %v7188_v3 = vpop.permute.xlu1 %705 }
 0x785   :  { %4782 = vmatmul.mubr.msk.f32.vlgmr.msra.gmra.mrb[6].mxu1 %vm146_vm0, %v7188_v3 }
 0x786   :  { %5785 = vmatpush1.bf16.msra.mxu1 %v6770_v28  ;;  %851 = vmatprep.mubr.f32.mxu1 %v7870_v35 }
 0x787   :  { %5787 = vmatprep.subr.bf16.mxu1 %v6786_v34 }
 0x788   :  { %v784_v27 = vpop.permute.xlu1 %783 }
 0x78a   :  { %5789 = vmatpush1.bf16.msra.mxu1 %v6813_v42 }
 0x78b   :  { %949 = vmatprep.subr.mxu1 %v6938_v43 }
 0x78d   :  { %4783 = vmatmul.mubr.msk.f32.vlgmr.msra.gmra.mrb[6].mxu1 %vm146_vm0, %v784_v27 }
 0x78e   :  { %950 = vmatpush1.msra.mxu1 %v6944_v44  ;;  %1013 = vmatprep.mubr.f32.mxu1 %v7870_v35 }
 0x78f   :  { %5823 = vmatprep.subr.bf16.mxu1 %v6953_v51 }
 0x860   :  { %v853_v37 = vpop.f32.mrb[6].mxu1 }
 0x861   :  { %v6432_v54 = vadd.f32 %v853_v37, %v6924_v17  ;;  %v855_v58 = vpop.f32.mrb[7].mxu1 }
 0x862   :  { %v6433_v63 = vadd.f32 %v855_v58, %v6929_v18 }
 0x864   :  { %6484 = vtanh.f32 %v6433_v63 }
 0x865   :  { %6486 = vtanh.f32 %v6432_v54 }
 0x86e   :  { %v6485_v61 = vpop.eup %6484 }
 0x86f   :  { %v6487_v7 = vpop.eup %6486  ;;  %926 = vmatprep.mubr.f32.mxu0 %v6485_v61 }
 0x870   :  { %927 = vmatmul.mubr.f32.vlgmr.msra.gmra.mrb[6].mxu0 %v6487_v7 }
 0x871   :  { %5856 = vmatpush3.bf16.msra.mxu0 %v7100_v47  ;;  %5514 = vmatprep.mubr.msk.f32.mxu0 %vm6604_vm2, %v7870_v35 }
 0x872   :  { %5857 = vmatprep.subr.bf16.mxu0 %v7871_v19 }
 0x875   :  { %5859 = vmatpush3.bf16.msra.mxu0 %v7138_v12 }
 0x876   :  { %5860 = vmatprep.subr.bf16.mxu0 %v7871_v19 }
 0x943   :  { %v4946_v26 = vpop.f32.mrb[6].mxu0 }
 0x944   :  { %v4947_v49 = vpop.f32.mrb[7].mxu0 }
 0x945   :  { %v4948_v20 = vadd.f32 %v4947_v49, %v4946_v26 }
 0x947   :  { %v932_v27 = vsel %vm371_vm1, %v4948_v20, -inf }
 0x948   :  { %933 = vmax.xlane.f32.xlu1 %v932_v27 }
 0x9d5   :  { %v934_v37 = vpop.xlane.xlu1 %933 }
 0x9d6   :  { %v935_v54 = vsub.f32 %v4948_v20, %v934_v37 }
 0x9d8   :  { %v936_v58 = vmul.f32 1.442695, %v935_v54  ;;  %v4787_v54 = vld [vmem:[%s7837_s2 + $0x8] sm:$0xff] }
 0x9da   :  { %6488 = vpow2.f32 %v936_v58 }
 0x9e4   :  { %v6489_v63 = vpop.eup %6488 }
 0x9e5   :  { %v938_v61 = vsel %vm371_vm1, %v6489_v63, 0.0 }
 0x9e6   :  { %939 = vadd.xlane.f32.xlu0 %v938_v61 }
 0xa73   :  { %v940_v7 = vpop.xlane.xlu0 %939 }
 0xa74   :  { %6490 = vrcp.f32 %v940_v7 }
 0xa7e   :  { %v6491_v47 = vpop.eup %6490 }
 0xa7f   :  { %v942_v12 = vmul.f32 %v6491_v47, %v940_v7 }
 0xa81   :  { %v943_v18 = vsub.f32 2.0, %v942_v12 }
 0xa83   :  { %v944_v17 = vmul.f32 %v6491_v47, %v943_v18 }
 0xa85   :  { %v945_v51 = vmul.f32 %v6489_v63, %v944_v17 }
 0xa87   :  { %4784 = vmatmul.mubr.msk.f32.vlgmr.msra.gmra.mrb[8].mxu1 %vm371_vm1, %v945_v51 }
 0xa88   :  { %5825 = vmatpush3.bf16.msra.mxu1 %v6968_v1 }
 0xa89   :  { %5827 = vmatprep.subr.bf16.mxu1 %v6970_v6 }
 0xa8c   :  { %5829 = vmatpush3.bf16.msra.mxu1 %v6986_v21 }
 0xa8d   :  { %5831 = vmatprep.subr.bf16.mxu1 %v6989_v22 }
 0xa90   :  { %5833 = vmatpush3.bf16.msra.mxu1 %v7004_v31 }
 0xa91   :  { %5835 = vmatprep.subr.bf16.mxu1 %v7007_v32 }
 0xa94   :  { %5837 = vmatpush3.bf16.msra.mxu1 %v7022_v40 }
 0xa95   :  { %5839 = vmatprep.subr.bf16.mxu1 %v7025_v41 }
 0xa98   :  { %5841 = vmatpush3.bf16.msra.mxu1 %v7040_v55 }
 0xa99   :  { %5843 = vmatprep.subr.bf16.mxu1 %v7043_v57 }
 0xa9c   :  { %5845 = vmatpush3.bf16.msra.mxu1 %v7058_v0 }
 0xa9d   :  { %5847 = vmatprep.subr.bf16.mxu1 %v7061_v5 }
 0xaa0   :  { %5849 = vmatpush3.bf16.msra.mxu1 %v7070_v13 }
 0xaa1   :  { %5851 = vmatprep.subr.bf16.mxu1 %v7080_v25 }
 0xaa4   :  { %5853 = vmatpush3.bf16.msra.mxu1 %v7088_v33 }
 0xaa5   :  { %5883 = vmatprep.subr.bf16.mxu1 %v6758_v24 }
 0xb5a   :  { %v1015_v17 = vpop.f32.mrb[8].mxu1 }
 0xb5b   :  { %v1017_v18 = vpop.f32.mrb[9].mxu1  ;;  %v1020_v47 = vmul.f32 %v1015_v17, %v7112_v52 }
 0xb5c   :  { %v1021_v51 = vmul.f32 %v1017_v18, %v7107_v48 }
 0xb5e   :  { %1086 = vmatprep.mubr.f32.mxu1 %v1021_v51 }
 0xb5f   :  { %1087 = vmatmul.mubr.f32.vlgmr.msra.gmra.mrb[10].mxu1 %v1020_v47 }
 0xb60   :  { %5885 = vmatpush3.bf16.msra.mxu1 %v6772_v29 }
 0xb61   :  { %5887 = vmatprep.subr.bf16.mxu1 %v6774_v30 }
 0xb64   :  { %5889 = vmatpush3.bf16.msra.mxu1 %v6799_v38 }
 0xb65   :  { %5891 = vmatprep.subr.bf16.mxu1 %v6804_v39 }
 0xb68   :  { %5893 = vmatpush3.bf16.msra.mxu1 %v6824_v45 }
 0xb69   :  { %5895 = vmatprep.subr.bf16.mxu1 %v6827_v46 }
 0xb6c   :  { %5897 = vmatpush3.bf16.msra.mxu1 %v6842_v50 }
 0xb6d   :  { %5899 = vmatprep.subr.bf16.mxu1 %v6855_v53 }
 0xb70   :  { %5901 = vmatpush3.bf16.msra.mxu1 %v6863_v56 }
 0xb71   :  { %5903 = vmatprep.subr.bf16.mxu1 %v6873_v59 }
 0xb74   :  { %5905 = vmatpush3.bf16.msra.mxu1 %v6881_v62 }
 0xb75   :  { %5907 = vmatprep.subr.bf16.mxu1 %v6894_v2 }
 0xb78   :  { %5909 = vmatpush3.bf16.msra.mxu1 %v6905_v10 }
 0xb79   :  { %5911 = vmatprep.subr.bf16.mxu1 %v6907_v11 }
 0xb7c   :  { %5913 = vmatpush3.bf16.msra.mxu1 %v6917_v15 }
 0xb7d   :  { %5946 = vmatprep.subr.bf16.mxu1 %v7871_v19 }
 0xc32   :  { %v4981_v12 = vpop.f32.mrb[10].mxu1 }
 0xc33   :  { %v4982_v26 = vpop.f32.mrb[11].mxu1 }
 0xc34   :  { %v4983_v49 = vadd.f32 %v4982_v26, %v4981_v12 }
 0xc36   :  { %5515 = vmatmul.mubr.msk.f32.vlgmr.msra.gmra.mrb[8].mxu0 %vm146_vm0, %v4983_v49 }
 0xc37   :  { %5862 = vmatpush3.bf16.msra.mxu0 %v7150_v36  ;;  %5525 = vmatprep.mubr.msk.f32.mxu0 %vm6604_vm2, %v7870_v35 }
 0xc38   :  { %5863 = vmatprep.subr.bf16.mxu0 %v7871_v19 }
 0xc3b   :  { %5865 = vmatpush3.bf16.msra.mxu0 %v7160_v60 }
 0xc3c   :  { %5867 = vmatprep.subr.bf16.mxu0 %v6698_v4 }
 0xc3e   :  { %5526 = vmatmul.mubr.msk.f32.vlgmr.msra.gmra.mrb[10].mxu0 %vm146_vm0, %v7188_v3 }
 0xc3f   :  { %5869 = vmatpush1.bf16.msra.mxu0 %v6709_v8  ;;  %1331 = vmatprep.mubr.f32.mxu0 %v7870_v35 }
 0xc40   :  { %5871 = vmatprep.subr.bf16.mxu0 %v6711_v9 }
 0xc43   :  { %5873 = vmatpush1.bf16.msra.mxu0 %v6727_v14 }
 0xc44   :  { %5875 = vmatprep.subr.bf16.mxu0 %v6733_v16 }
 0xd09   :  { %v1161_v20 = vpop.f32.mrb[8].mxu0 }
 0xd0a   :  { %v5516_v27 = vpop.f32.mrb[9].mxu0 }
 0xd11   :  { %v1231_v37 = vpop.f32.mrb[10].mxu0 }
 0xd12   :  { %v1232_v58 = vadd.f32 %v1231_v37, %v1161_v20  ;;  %v5527_v63 = vpop.f32.mrb[11].mxu0 }
 0xd13   :  { %v7872_v63 = vld [vmem:[#allocation5_spill] sm:$0xff] }
 0xd14   :  { %v1237_v3 = vadd.f32 %v4787_v54, %v1232_v58 }
 0xd16   :  { %6492 = vtanh.f32 %v1237_v3  ;;  %v4788_v7 = vmul.f32 -1.442695, %v1237_v3 }
 0xd18   :  { %6494 = vpow2.f32 %v4788_v7 }
 0xd20   :  { %v6493_v61 = vpop.eup %6492 }
 0xd21   :  { %1247 = vrot.lane.b32.xlu1 %v6493_v61, %s6605_s23  ;;  %v7873_v61 = vld [vmem:[#allocation3_spill] sm:$0xff] }
 0xd22   :  { %v6495_v17 = vpop.eup %6494 }
 0xd23   :  { %v1241_v18 = vadd.f32 1.0, %v6495_v17 }
 0xd25   :  { %6496 = vrcp.f32 %v1241_v18  ;;  %v7874_v18 = vld [vmem:[#allocation4_spill] sm:$0xff] }
 0xd2f   :  { %v6497_v51 = vpop.eup %6496 }
 0xd30   :  { %v1245_v26 = vmul.f32 %v6497_v51, %v7181_v23 }
 0xd93   :  { %v1248_v47 = vpop.permute.xlu1 %1247 }
 0xd94   :  { %v1250_v12 = vmul.f32 %v6497_v51, %v1248_v47 }
 0xd96   :  { %1252 = vrot.lane.b32.xlu0 %v1250_v12, %s6605_s23 }
 0xe08   :  { %v1253_v49 = vpop.permute.xlu0 %1252 }
 0xe09   :  { %v7266_v20 = vadd.f32 %v1253_v49, %v1245_v26  ;;  %v7875_v26 = vld [vmem:[#allocation6_spill] sm:$0xff]  ;;  %v7876_v49 = vld [vmem:[#allocation7_spill] sm:$0xff] }
 0xe0b   :  { %6498 = vtanh.f32 %v7266_v20 }
 0xe15   :  { %v6499_v27 = vpop.eup %6498 }
 0xe16   :  { %1258 = vrot.lane.b32.xlu1 %v6499_v27, %s6605_s23 }
 0xe88   :  { %v1259_v37 = vpop.permute.xlu1 %1258 }
 0xe89   :  { %v1261_v54 = vmul.f32 %v6497_v51, %v1259_v37 }
 0xe8b   :  { %1263 = vrot.lane.b32.xlu1 %v1261_v54, %s6606_s24 }
 0xe8f   :  { %1341 = vrot.lane.b32.xlu1 %v7266_v20, %s6607_s3 }
 0xefd   :  { %v7273_v58 = vpop.permute.xlu1 %1263 }
 0xefe   :  { %4789 = vmatmul.mubr.msk.f32.vlgmr.msra.gmra.mrb[12].mxu0 %vm146_vm0, %v7273_v58 }
 0xeff   :  { %5877 = vmatpush1.bf16.msra.mxu0 %v6770_v28  ;;  %1409 = vmatprep.mubr.f32.mxu0 %v7870_v35 }
 0xf00   :  { %5879 = vmatprep.subr.bf16.mxu0 %v6786_v34 }
 0xf01   :  { %v1342_v23 = vpop.permute.xlu1 %1341 }
 0xf03   :  { %5881 = vmatpush1.bf16.msra.mxu0 %v6813_v42 }
 0xf04   :  { %1507 = vmatprep.subr.mxu0 %v6938_v43 }
 0xf06   :  { %4790 = vmatmul.mubr.msk.f32.vlgmr.msra.gmra.mrb[12].mxu0 %vm146_vm0, %v1342_v23 }
 0xf07   :  { %1508 = vmatpush1.msra.mxu0 %v6944_v44  ;;  %1571 = vmatprep.mubr.f32.mxu0 %v7870_v35 }
 0xf08   :  { %5915 = vmatprep.subr.bf16.mxu0 %v7872_v63 }
 0xfd9   :  { %v1411_v3 = vpop.f32.mrb[12].mxu0 }
 0xfda   :  { %v6434_v7 = vadd.f32 %v1411_v3, %v7873_v61  ;;  %v1413_v17 = vpop.f32.mrb[13].mxu0 }
 0xfdb   :  { %v6435_v51 = vadd.f32 %v1413_v17, %v7874_v18 }
 0xfdd   :  { %6500 = vtanh.f32 %v6435_v51 }
 0xfde   :  { %6502 = vtanh.f32 %v6434_v7 }
 0xfe7   :  { %v6501_v47 = vpop.eup %6500 }
 0xfe8   :  { %v6503_v12 = vpop.eup %6502  ;;  %1484 = vmatprep.mubr.f32.mxu1 %v6501_v47 }
 0xfe9   :  { %1485 = vmatmul.mubr.f32.vlgmr.msra.gmra.mrb[12].mxu1 %v6503_v12 }
 0xfea   :  { %5948 = vmatpush3.bf16.msra.mxu1 %v7875_v26  ;;  %5536 = vmatprep.mubr.msk.f32.mxu1 %vm6604_vm2, %v7870_v35 }
 0xfeb   :  { %5949 = vmatprep.subr.bf16.mxu1 %v7871_v19 }
 0xfee   :  { %5951 = vmatpush3.bf16.msra.mxu1 %v7876_v49 }
 0xfef   :  { %5952 = vmatprep.subr.bf16.mxu1 %v7871_v19 }
0x10bc   :  { %v5026_v27 = vpop.f32.mrb[12].mxu1 }
0x10bd   :  { %v5027_v37 = vpop.f32.mrb[13].mxu1 }
0x10be   :  { %v5028_v54 = vadd.f32 %v5027_v37, %v5026_v27 }
0x10c0   :  { %v1490_v23 = vsel %vm371_vm1, %v5028_v54, -inf }
0x10c1   :  { %1491 = vmax.xlane.f32.xlu0 %v1490_v23 }
0x114e   :  { %v1492_v3 = vpop.xlane.xlu0 %1491 }
0x114f   :  { %v1493_v7 = vsub.f32 %v5028_v54, %v1492_v3 }
0x1151   :  { %v1494_v17 = vmul.f32 1.442695, %v1493_v7  ;;  %v4794_v7 = vld [vmem:[%s7837_s2 + $0x10] sm:$0xff] }
0x1153   :  { %6504 = vpow2.f32 %v1494_v17 }
0x115d   :  { %v6505_v51 = vpop.eup %6504 }
0x115e   :  { %v1496_v47 = vsel %vm371_vm1, %v6505_v51, 0.0 }
0x115f   :  { %1497 = vadd.xlane.f32.xlu1 %v1496_v47 }
0x11ec   :  { %v1498_v12 = vpop.xlane.xlu1 %1497 }
0x11ed   :  { %6506 = vrcp.f32 %v1498_v12 }
0x11f7   :  { %v6507_v26 = vpop.eup %6506 }
0x11f8   :  { %v1500_v49 = vmul.f32 %v6507_v26, %v1498_v12 }
0x11fa   :  { %v1501_v18 = vsub.f32 2.0, %v1500_v49 }
0x11fc   :  { %v1502_v61 = vmul.f32 %v6507_v26, %v1501_v18 }
0x11fe   :  { %v1503_v63 = vmul.f32 %v6505_v51, %v1502_v61 }
0x1200   :  { %4791 = vmatmul.mubr.msk.f32.vlgmr.msra.gmra.mrb[14].mxu0 %vm371_vm1, %v1503_v63 }
0x1201   :  { %5917 = vmatpush3.bf16.msra.mxu0 %v6968_v1 }
0x1202   :  { %5919 = vmatprep.subr.bf16.mxu0 %v6970_v6 }
0x1205   :  { %5921 = vmatpush3.bf16.msra.mxu0 %v6986_v21 }
0x1206   :  { %5923 = vmatprep.subr.bf16.mxu0 %v6989_v22 }
0x1209   :  { %5925 = vmatpush3.bf16.msra.mxu0 %v7004_v31 }
0x120a   :  { %5927 = vmatprep.subr.bf16.mxu0 %v7007_v32 }
0x120d   :  { %5929 = vmatpush3.bf16.msra.mxu0 %v7022_v40 }
0x120e   :  { %5931 = vmatprep.subr.bf16.mxu0 %v7025_v41 }
0x1211   :  { %5933 = vmatpush3.bf16.msra.mxu0 %v7040_v55 }
0x1212   :  { %5935 = vmatprep.subr.bf16.mxu0 %v7043_v57 }
0x1215   :  { %5937 = vmatpush3.bf16.msra.mxu0 %v7058_v0 }
0x1216   :  { %5939 = vmatprep.subr.bf16.mxu0 %v7061_v5 }
0x1219   :  { %5941 = vmatpush3.bf16.msra.mxu0 %v7070_v13 }
0x121a   :  { %5943 = vmatprep.subr.bf16.mxu0 %v7080_v25 }
0x121d   :  { %5945 = vmatpush3.bf16.msra.mxu0 %v7088_v33 }
0x121e   :  { %5975 = vmatprep.subr.bf16.mxu0 %v6758_v24 }
0x12d3   :  { %v1573_v63 = vpop.f32.mrb[14].mxu0 }
0x12d4   :  { %v1575_v61 = vpop.f32.mrb[15].mxu0  ;;  %v1578_v26 = vmul.f32 %v1573_v63, %v7112_v52 }
0x12d5   :  { %v1579_v18 = vmul.f32 %v1575_v61, %v7107_v48 }
0x12d7   :  { %1644 = vmatprep.mubr.f32.mxu0 %v1579_v18 }
0x12d8   :  { %1645 = vmatmul.mubr.f32.vlgmr.msra.gmra.mrb[16].mxu0 %v1578_v26 }
0x12d9   :  { %5977 = vmatpush3.bf16.msra.mxu0 %v6772_v29 }
0x12da   :  { %5979 = vmatprep.subr.bf16.mxu0 %v6774_v30 }
0x12dd   :  { %5981 = vmatpush3.bf16.msra.mxu0 %v6799_v38 }
0x12de   :  { %5983 = vmatprep.subr.bf16.mxu0 %v6804_v39 }
0x12e1   :  { %5985 = vmatpush3.bf16.msra.mxu0 %v6824_v45 }
0x12e2   :  { %5987 = vmatprep.subr.bf16.mxu0 %v6827_v46 }
0x12e5   :  { %5989 = vmatpush3.bf16.msra.mxu0 %v6842_v50 }
0x12e6   :  { %5991 = vmatprep.subr.bf16.mxu0 %v6855_v53 }
0x12e9   :  { %5993 = vmatpush3.bf16.msra.mxu0 %v6863_v56 }
0x12ea   :  { %5995 = vmatprep.subr.bf16.mxu0 %v6873_v59 }
0x12ed   :  { %5997 = vmatpush3.bf16.msra.mxu0 %v6881_v62 }
0x12ee   :  { %5999 = vmatprep.subr.bf16.mxu0 %v6894_v2 }
0x12f1   :  { %6001 = vmatpush3.bf16.msra.mxu0 %v6905_v10 }
0x12f2   :  { %6003 = vmatprep.subr.bf16.mxu0 %v6907_v11 }
0x12f5   :  { %6005 = vmatpush3.bf16.msra.mxu0 %v6917_v15 }
0x12f6   :  { %6038 = vmatprep.subr.bf16.mxu0 %v7871_v19 }
0x13ab   :  { %v5061_v49 = vpop.f32.mrb[16].mxu0 }
0x13ac   :  { %v5062_v27 = vpop.f32.mrb[17].mxu0 }
0x13ad   :  { %v5063_v37 = vadd.f32 %v5062_v27, %v5061_v49 }
0x13af   :  { %5537 = vmatmul.mubr.msk.f32.vlgmr.msra.gmra.mrb[14].mxu1 %vm146_vm0, %v5063_v37 }
0x13b0   :  { %5954 = vmatpush3.bf16.msra.mxu1 %v7150_v36  ;;  %5547 = vmatprep.mubr.msk.f32.mxu1 %vm6604_vm2, %v7870_v35 }
0x13b1   :  { %5955 = vmatprep.subr.bf16.mxu1 %v7871_v19 }
0x13b4   :  { %5957 = vmatpush3.bf16.msra.mxu1 %v7160_v60 }
0x13b5   :  { %5959 = vmatprep.subr.bf16.mxu1 %v6698_v4 }
0x13b7   :  { %5548 = vmatmul.mubr.msk.f32.vlgmr.msra.gmra.mrb[16].mxu1 %vm146_vm0, %v7273_v58 }
0x13b8   :  { %5961 = vmatpush1.bf16.msra.mxu1 %v6709_v8  ;;  %1889 = vmatprep.mubr.f32.mxu1 %v7870_v35 }
0x13b9   :  { %5963 = vmatprep.subr.bf16.mxu1 %v6711_v9 }
0x13bc   :  { %5965 = vmatpush1.bf16.msra.mxu1 %v6727_v14 }
0x13bd   :  { %5967 = vmatprep.subr.bf16.mxu1 %v6733_v16 }
0x1482   :  { %v1719_v54 = vpop.f32.mrb[14].mxu1 }
0x1483   :  { %v5538_v23 = vpop.f32.mrb[15].mxu1 }
0x148a   :  { %v1789_v3 = vpop.f32.mrb[16].mxu1 }
0x148b   :  { %v1790_v17 = vadd.f32 %v1789_v3, %v1719_v54  ;;  %v5549_v51 = vpop.f32.mrb[17].mxu1 }
0x148c   :  { %v7877_v51 = vld [vmem:[#allocation5_spill] sm:$0xff] }
0x148d   :  { %v1795_v58 = vadd.f32 %v4794_v7, %v1790_v17 }
0x148f   :  { %6508 = vtanh.f32 %v1795_v58  ;;  %v4795_v12 = vmul.f32 -1.442695, %v1795_v58 }
0x1491   :  { %6510 = vpow2.f32 %v4795_v12 }
0x1499   :  { %v6509_v47 = vpop.eup %6508 }
0x149a   :  { %1805 = vrot.lane.b32.xlu0 %v6509_v47, %s6605_s23  ;;  %v7878_v47 = vld [vmem:[#allocation3_spill] sm:$0xff] }
0x149b   :  { %v6511_v63 = vpop.eup %6510 }
0x149c   :  { %v1799_v61 = vadd.f32 1.0, %v6511_v63 }
0x149e   :  { %6512 = vrcp.f32 %v1799_v61  ;;  %v7879_v61 = vld [vmem:[#allocation4_spill] sm:$0xff] }
0x14a8   :  { %v6513_v18 = vpop.eup %6512 }
0x14a9   :  { %v1803_v27 = vmul.f32 %v6513_v18, %v7266_v20 }
0x150c   :  { %v1806_v26 = vpop.permute.xlu0 %1805 }
0x150d   :  { %v1808_v49 = vmul.f32 %v6513_v18, %v1806_v26 }
0x150f   :  { %1810 = vrot.lane.b32.xlu1 %v1808_v49, %s6605_s23 }
0x1581   :  { %v1811_v37 = vpop.permute.xlu1 %1810 }
0x1582   :  { %v7351_v54 = vadd.f32 %v1811_v37, %v1803_v27 }
0x1584   :  { %6514 = vtanh.f32 %v7351_v54 }
0x158e   :  { %v6515_v23 = vpop.eup %6514 }
0x158f   :  { %1816 = vrot.lane.b32.xlu0 %v6515_v23, %s6605_s23 }
0x1593   :  { %1899 = vrot.lane.b32.xlu0 %v7351_v54, %s6607_s3 }
0x1601   :  { %v1817_v3 = vpop.permute.xlu0 %1816 }
0x1602   :  { %v1819_v7 = vmul.f32 %v6513_v18, %v1817_v3 }
0x1604   :  { %1821 = vrot.lane.b32.xlu1 %v1819_v7, %s6606_s24 }
0x1605   :  { %v1900_v20 = vpop.permute.xlu0 %1899 }
0x1676   :  { %v7358_v17 = vpop.permute.xlu1 %1821 }
0x1677   :  { %4796 = vmatmul.mubr.msk.f32.vlgmr.msra.gmra.mrb[18].mxu1 %vm146_vm0, %v7358_v17 }
0x1678   :  { %5969 = vmatpush1.bf16.msra.mxu1 %v6770_v28  ;;  %1967 = vmatprep.mubr.f32.mxu1 %v7870_v35 }
0x1679   :  { %5971 = vmatprep.subr.bf16.mxu1 %v6786_v34 }
0x167c   :  { %5973 = vmatpush1.bf16.msra.mxu1 %v6813_v42 }
0x167d   :  { %2065 = vmatprep.subr.mxu1 %v6938_v43  ;;  %v7880_v43 = vld [vmem:[#allocation6_spill] sm:$0xff] }
0x167f   :  { %4797 = vmatmul.mubr.msk.f32.vlgmr.msra.gmra.mrb[18].mxu1 %vm146_vm0, %v1900_v20 }
0x1680   :  { %2066 = vmatpush1.msra.mxu1 %v6944_v44  ;;  %2129 = vmatprep.mubr.f32.mxu1 %v7870_v35  ;;  %v7881_v44 = vld [vmem:[#allocation7_spill] sm:$0xff] }
0x1681   :  { %6007 = vmatprep.subr.bf16.mxu1 %v7877_v51 }
0x1752   :  { %v1969_v58 = vpop.f32.mrb[18].mxu1 }
0x1753   :  { %v6436_v12 = vadd.f32 %v1969_v58, %v7878_v47  ;;  %v1971_v63 = vpop.f32.mrb[19].mxu1 }
0x1754   :  { %v6437_v18 = vadd.f32 %v1971_v63, %v7879_v61 }
0x1756   :  { %6516 = vtanh.f32 %v6437_v18 }
0x1757   :  { %6518 = vtanh.f32 %v6436_v12 }
0x1760   :  { %v6517_v26 = vpop.eup %6516 }
0x1761   :  { %v6519_v49 = vpop.eup %6518  ;;  %2042 = vmatprep.mubr.f32.mxu0 %v6517_v26 }
0x1762   :  { %2043 = vmatmul.mubr.f32.vlgmr.msra.gmra.mrb[18].mxu0 %v6519_v49 }
0x1763   :  { %6040 = vmatpush3.bf16.msra.mxu0 %v7880_v43  ;;  %5558 = vmatprep.mubr.msk.f32.mxu0 %vm6604_vm2, %v7870_v35 }
0x1764   :  { %6041 = vmatprep.subr.bf16.mxu0 %v7871_v19 }
0x1767   :  { %6043 = vmatpush3.bf16.msra.mxu0 %v7881_v44 }
0x1768   :  { %6044 = vmatprep.subr.bf16.mxu0 %v7871_v19 }
0x1835   :  { %v5106_v27 = vpop.f32.mrb[18].mxu0 }
0x1836   :  { %v5107_v37 = vpop.f32.mrb[19].mxu0 }
0x1837   :  { %v5108_v23 = vadd.f32 %v5107_v37, %v5106_v27 }
0x1839   :  { %v2048_v3 = vsel %vm371_vm1, %v5108_v23, -inf }
0x183a   :  { %2049 = vmax.xlane.f32.xlu1 %v2048_v3 }
0x18c7   :  { %v2050_v7 = vpop.xlane.xlu1 %2049 }
0x18c8   :  { %v2051_v20 = vsub.f32 %v5108_v23, %v2050_v7 }
0x18ca   :  { %v2052_v58 = vmul.f32 1.442695, %v2051_v20 }
0x18cc   :  { %6520 = vpow2.f32 %v2052_v58 }
0x18d6   :  { %v6521_v47 = vpop.eup %6520 }
0x18d7   :  { %v2054_v12 = vsel %vm371_vm1, %v6521_v47, 0.0 }
0x18d8   :  { %2055 = vadd.xlane.f32.xlu0 %v2054_v12 }
0x1965   :  { %v2056_v63 = vpop.xlane.xlu0 %2055 }
0x1966   :  { %6522 = vrcp.f32 %v2056_v63 }
0x1970   :  { %v6523_v61 = vpop.eup %6522 }
0x1971   :  { %v2058_v18 = vmul.f32 %v6523_v61, %v2056_v63 }
0x1973   :  { %v2059_v26 = vsub.f32 2.0, %v2058_v18 }
0x1975   :  { %v2060_v49 = vmul.f32 %v6523_v61, %v2059_v26 }
0x1977   :  { %v2061_v44 = vmul.f32 %v6521_v47, %v2060_v49  ;;  %v4801_v47 = vld [vmem:[%s7837_s2 + $0x18] sm:$0xff] }
0x1979   :  { %4798 = vmatmul.mubr.msk.f32.vlgmr.msra.gmra.mrb[20].mxu1 %vm371_vm1, %v2061_v44 }
0x197a   :  { %6009 = vmatpush3.bf16.msra.mxu1 %v6968_v1 }
0x197b   :  { %6011 = vmatprep.subr.bf16.mxu1 %v6970_v6 }
0x197e   :  { %6013 = vmatpush3.bf16.msra.mxu1 %v6986_v21 }
0x197f   :  { %6015 = vmatprep.subr.bf16.mxu1 %v6989_v22 }
0x1982   :  { %6017 = vmatpush3.bf16.msra.mxu1 %v7004_v31 }
0x1983   :  { %6019 = vmatprep.subr.bf16.mxu1 %v7007_v32 }
0x1986   :  { %6021 = vmatpush3.bf16.msra.mxu1 %v7022_v40 }
0x1987   :  { %6023 = vmatprep.subr.bf16.mxu1 %v7025_v41 }
0x198a   :  { %6025 = vmatpush3.bf16.msra.mxu1 %v7040_v55 }
0x198b   :  { %6027 = vmatprep.subr.bf16.mxu1 %v7043_v57 }
0x198e   :  { %6029 = vmatpush3.bf16.msra.mxu1 %v7058_v0 }
0x198f   :  { %6031 = vmatprep.subr.bf16.mxu1 %v7061_v5 }
0x1992   :  { %6033 = vmatpush3.bf16.msra.mxu1 %v7070_v13 }
0x1993   :  { %6035 = vmatprep.subr.bf16.mxu1 %v7080_v25 }
0x1996   :  { %6037 = vmatpush3.bf16.msra.mxu1 %v7088_v33 }
0x1997   :  { %6067 = vmatprep.subr.bf16.mxu1 %v6758_v24 }
0x1a4c   :  { %v2131_v44 = vpop.f32.mrb[20].mxu1 }
0x1a4d   :  { %v2133_v27 = vpop.f32.mrb[21].mxu1  ;;  %v2136_v23 = vmul.f32 %v2131_v44, %v7112_v52 }
0x1a4e   :  { %v2137_v37 = vmul.f32 %v2133_v27, %v7107_v48 }
0x1a50   :  { %2202 = vmatprep.mubr.f32.mxu1 %v2137_v37 }
0x1a51   :  { %2203 = vmatmul.mubr.f32.vlgmr.msra.gmra.mrb[22].mxu1 %v2136_v23 }
0x1a52   :  { %6069 = vmatpush3.bf16.msra.mxu1 %v6772_v29 }
0x1a53   :  { %6071 = vmatprep.subr.bf16.mxu1 %v6774_v30 }
0x1a56   :  { %6073 = vmatpush3.bf16.msra.mxu1 %v6799_v38 }
0x1a57   :  { %6075 = vmatprep.subr.bf16.mxu1 %v6804_v39 }
0x1a5a   :  { %6077 = vmatpush3.bf16.msra.mxu1 %v6824_v45 }
0x1a5b   :  { %6079 = vmatprep.subr.bf16.mxu1 %v6827_v46 }
0x1a5e   :  { %6081 = vmatpush3.bf16.msra.mxu1 %v6842_v50 }
0x1a5f   :  { %6083 = vmatprep.subr.bf16.mxu1 %v6855_v53 }
0x1a62   :  { %6085 = vmatpush3.bf16.msra.mxu1 %v6863_v56 }
0x1a63   :  { %6087 = vmatprep.subr.bf16.mxu1 %v6873_v59 }
0x1a66   :  { %6089 = vmatpush3.bf16.msra.mxu1 %v6881_v62 }
0x1a67   :  { %6091 = vmatprep.subr.bf16.mxu1 %v6894_v2 }
0x1a6a   :  { %6093 = vmatpush3.bf16.msra.mxu1 %v6905_v10 }
0x1a6b   :  { %6095 = vmatprep.subr.bf16.mxu1 %v6907_v11 }
0x1a6e   :  { %6097 = vmatpush3.bf16.msra.mxu1 %v6917_v15 }
0x1a6f   :  { %6130 = vmatprep.subr.bf16.mxu1 %v7871_v19 }
0x1b24   :  { %v5141_v48 = vpop.f32.mrb[22].mxu1 }
0x1b25   :  { %v5142_v52 = vpop.f32.mrb[23].mxu1 }
0x1b26   :  { %v5143_v3 = vadd.f32 %v5142_v52, %v5141_v48 }
0x1b28   :  { %5559 = vmatmul.mubr.msk.f32.vlgmr.msra.gmra.mrb[20].mxu0 %vm146_vm0, %v5143_v3 }
0x1b29   :  { %6046 = vmatpush3.bf16.msra.mxu0 %v7150_v36  ;;  %5569 = vmatprep.mubr.msk.f32.mxu0 %vm6604_vm2, %v7870_v35 }
0x1b2a   :  { %6047 = vmatprep.subr.bf16.mxu0 %v7871_v19 }
0x1b2d   :  { %6049 = vmatpush3.bf16.msra.mxu0 %v7160_v60 }
0x1b2e   :  { %6051 = vmatprep.subr.bf16.mxu0 %v6698_v4 }
0x1b30   :  { %5570 = vmatmul.mubr.msk.f32.vlgmr.msra.gmra.mrb[22].mxu0 %vm146_vm0, %v7358_v17 }
0x1b31   :  { %6053 = vmatpush1.bf16.msra.mxu0 %v6709_v8  ;;  %2447 = vmatprep.mubr.f32.mxu0 %v7870_v35 }
0x1b32   :  { %6055 = vmatprep.subr.bf16.mxu0 %v6711_v9 }
0x1b35   :  { %6057 = vmatpush1.bf16.msra.mxu0 %v6727_v14 }
0x1b36   :  { %6059 = vmatprep.subr.bf16.mxu0 %v6733_v16 }
0x1bfb   :  { %v2277_v7 = vpop.f32.mrb[20].mxu0 }
0x1bfc   :  { %v5560_v20 = vpop.f32.mrb[21].mxu0 }
0x1c03   :  { %v2347_v58 = vpop.f32.mrb[22].mxu0 }
0x1c04   :  { %v2348_v12 = vadd.f32 %v2347_v58, %v2277_v7  ;;  %v5571_v63 = vpop.f32.mrb[23].mxu0 }
0x1c06   :  { %v2353_v17 = vadd.f32 %v4801_v47, %v2348_v12  ;;  %v7461_v12 = vld [vmem:[%s7832_s8] sm:$0xff] }
0x1c08   :  { %6524 = vtanh.f32 %v2353_v17  ;;  %v4802_v18 = vmul.f32 -1.442695, %v2353_v17  ;;  %v7469_v17 = vld [vmem:[%s7831_s1] sm:$0xff] }
0x1c09   :  { %7882 = vst [vmem:[#allocation3_spill] sm:$0xff] %v7469_v17 }
0x1c0a   :  { %6526 = vpow2.f32 %v4802_v18 }
0x1c12   :  { %v6525_v61 = vpop.eup %6524 }
0x1c13   :  { %2363 = vrot.lane.b32.xlu0 %v6525_v61, %s6605_s23 }
0x1c14   :  { %v6527_v26 = vpop.eup %6526 }
0x1c15   :  { %v2357_v49 = vadd.f32 1.0, %v6527_v26  ;;  %v7475_v26 = vld [vmem:[%s7831_s1 + $0x8] sm:$0xff] }
0x1c16   :  { %7883 = vst [vmem:[#allocation4_spill] sm:$0xff] %v7475_v26 }
0x1c17   :  { %6528 = vrcp.f32 %v2357_v49 }
0x1c21   :  { %v6529_v44 = vpop.eup %6528 }
0x1c22   :  { %v2361_v23 = vmul.f32 %v6529_v44, %v7351_v54  ;;  %v7454_v54 = vld [vmem:[%s7832_s8 + $0x8] sm:$0xff] }
0x1c85   :  { %v2364_v27 = vpop.permute.xlu0 %2363 }
0x1c86   :  { %v2366_v37 = vmul.f32 %v6529_v44, %v2364_v27 }
0x1c88   :  { %2368 = vrot.lane.b32.xlu1 %v2366_v37, %s6605_s23  ;;  %v7884_v37 = vld [vmem:[#allocation7_spill] sm:$0xff] }
0x1cfa   :  { %v2369_v48 = vpop.permute.xlu1 %2368 }
0x1cfb   :  { %v7436_v52 = vadd.f32 %v2369_v48, %v2361_v23 }
0x1cfd   :  { %6530 = vtanh.f32 %v7436_v52 }
0x1d07   :  { %v6531_v3 = vpop.eup %6530 }
0x1d08   :  { %2374 = vrot.lane.b32.xlu1 %v6531_v3, %s6605_s23 }
0x1d0c   :  { %2457 = vrot.lane.b32.xlu1 %v7436_v52, %s6607_s3 }
0x1d7a   :  { %v2375_v7 = vpop.permute.xlu1 %2374 }
0x1d7b   :  { %v2377_v20 = vmul.f32 %v6529_v44, %v2375_v7 }
0x1d7d   :  { %2379 = vrot.lane.b32.xlu0 %v2377_v20, %s6606_s24 }
0x1d7e   :  { %v2458_v47 = vpop.permute.xlu1 %2457 }
0x1def   :  { %v7443_v58 = vpop.permute.xlu0 %2379 }
0x1df0   :  { %4803 = vmatmul.mubr.msk.f32.vlgmr.msra.gmra.mrb[24].mxu0 %vm146_vm0, %v7443_v58 }
0x1df1   :  { %6061 = vmatpush1.bf16.msra.mxu0 %v6770_v28  ;;  %2525 = vmatprep.mubr.f32.mxu0 %v7870_v35 }
0x1df2   :  { %6063 = vmatprep.subr.bf16.mxu0 %v6786_v34 }
0x1df5   :  { %6065 = vmatpush1.bf16.msra.mxu0 %v6813_v42 }
0x1df6   :  { %2623 = vmatprep.subr.mxu0 %v7454_v54 }
0x1df8   :  { %4804 = vmatmul.mubr.msk.f32.vlgmr.msra.gmra.mrb[24].mxu0 %vm146_vm0, %v2458_v47 }
0x1df9   :  { %2624 = vmatpush1.msra.mxu0 %v7461_v12  ;;  %2687 = vmatprep.mubr.f32.mxu0 %v7870_v35 }
0x1dfa   :  { %6099 = vmatprep.subr.bf16.mxu0 %v7877_v51 }
0x1ecb   :  { %v2527_v63 = vpop.f32.mrb[24].mxu0 }
0x1ecc   :  { %v6438_v61 = vadd.f32 %v7469_v17, %v2527_v63  ;;  %v2529_v18 = vpop.f32.mrb[25].mxu0 }
0x1ecd   :  { %v6439_v49 = vadd.f32 %v7475_v26, %v2529_v18 }
0x1ecf   :  { %6532 = vtanh.f32 %v6439_v49 }
0x1ed0   :  { %6534 = vtanh.f32 %v6438_v61 }
0x1ed9   :  { %v6533_v44 = vpop.eup %6532 }
0x1eda   :  { %v6535_v27 = vpop.eup %6534  ;;  %2600 = vmatprep.mubr.f32.mxu1 %v6533_v44 }
0x1edb   :  { %2601 = vmatmul.mubr.f32.vlgmr.msra.gmra.mrb[24].mxu1 %v6535_v27 }
0x1edc   :  { %6132 = vmatpush3.bf16.msra.mxu1 %v7880_v43  ;;  %5580 = vmatprep.mubr.msk.f32.mxu1 %vm6604_vm2, %v7870_v35 }
0x1edd   :  { %6133 = vmatprep.subr.bf16.mxu1 %v7871_v19 }
0x1ee0   :  { %6135 = vmatpush3.bf16.msra.mxu1 %v7884_v37 }
0x1ee1   :  { %6136 = vmatprep.subr.bf16.mxu1 %v7871_v19 }
0x1fae   :  { %v5186_v23 = vpop.f32.mrb[24].mxu1 }
0x1faf   :  { %v5187_v48 = vpop.f32.mrb[25].mxu1 }
0x1fb0   :  { %v5188_v3 = vadd.f32 %v5187_v48, %v5186_v23  ;;  %v7512_v48 = vld [vmem:[%s7835_s0] sm:$0xff] }
0x1fb2   :  { %v2606_v7 = vsel %vm371_vm1, %v5188_v3, -inf }
0x1fb3   :  { %2607 = vmax.xlane.f32.xlu0 %v2606_v7 }
0x2040   :  { %v2608_v20 = vpop.xlane.xlu0 %2607 }
0x2041   :  { %v2609_v47 = vsub.f32 %v5188_v3, %v2608_v20 }
0x2043   :  { %v2610_v63 = vmul.f32 1.442695, %v2609_v47 }
0x2045   :  { %6536 = vpow2.f32 %v2610_v63 }
0x204f   :  { %v6537_v61 = vpop.eup %6536 }
0x2050   :  { %v2612_v18 = vsel %vm371_vm1, %v6537_v61, 0.0 }
0x2051   :  { %2613 = vadd.xlane.f32.xlu1 %v2612_v18 }
0x20de   :  { %v2614_v49 = vpop.xlane.xlu1 %2613 }
0x20df   :  { %6538 = vrcp.f32 %v2614_v49 }
0x20e9   :  { %v6539_v44 = vpop.eup %6538 }
0x20ea   :  { %v2616_v27 = vmul.f32 %v6539_v44, %v2614_v49  ;;  %v4808_v49 = vld [vmem:[%s7837_s2 + $0x20] sm:$0xff] }
0x20ec   :  { %v2617_v37 = vsub.f32 2.0, %v2616_v27 }
0x20ee   :  { %v2618_v43 = vmul.f32 %v6539_v44, %v2617_v37  ;;  %v7506_v37 = vld [vmem:[%s7835_s0 + $0x8] sm:$0xff] }
0x20f0   :  { %v2619_v26 = vmul.f32 %v6537_v61, %v2618_v43 }
0x20f2   :  { %4805 = vmatmul.mubr.msk.f32.vlgmr.msra.gmra.mrb[26].mxu0 %vm371_vm1, %v2619_v26 }
0x20f3   :  { %6101 = vmatpush3.bf16.msra.mxu0 %v6968_v1 }
0x20f4   :  { %6103 = vmatprep.subr.bf16.mxu0 %v6970_v6 }
0x20f7   :  { %6105 = vmatpush3.bf16.msra.mxu0 %v6986_v21 }
0x20f8   :  { %6107 = vmatprep.subr.bf16.mxu0 %v6989_v22 }
0x20fb   :  { %6109 = vmatpush3.bf16.msra.mxu0 %v7004_v31 }
0x20fc   :  { %6111 = vmatprep.subr.bf16.mxu0 %v7007_v32 }
0x20ff   :  { %6113 = vmatpush3.bf16.msra.mxu0 %v7022_v40 }
0x2100   :  { %6115 = vmatprep.subr.bf16.mxu0 %v7025_v41 }
0x2103   :  { %6117 = vmatpush3.bf16.msra.mxu0 %v7040_v55 }
0x2104   :  { %6119 = vmatprep.subr.bf16.mxu0 %v7043_v57 }
0x2107   :  { %6121 = vmatpush3.bf16.msra.mxu0 %v7058_v0 }
0x2108   :  { %6123 = vmatprep.subr.bf16.mxu0 %v7061_v5 }
0x210b   :  { %6125 = vmatpush3.bf16.msra.mxu0 %v7070_v13 }
0x210c   :  { %6127 = vmatprep.subr.bf16.mxu0 %v7080_v25 }
0x210f   :  { %6129 = vmatpush3.bf16.msra.mxu0 %v7088_v33 }
0x2110   :  { %6159 = vmatprep.subr.bf16.mxu0 %v6758_v24 }
0x21c5   :  { %v2689_v43 = vpop.f32.mrb[26].mxu0 }
0x21c6   :  { %v2691_v26 = vpop.f32.mrb[27].mxu0  ;;  %v2694_v3 = vmul.f32 %v7512_v48, %v2689_v43 }
0x21c7   :  { %v2695_v23 = vmul.f32 %v7506_v37, %v2691_v26 }
0x21c9   :  { %2760 = vmatprep.mubr.f32.mxu0 %v2695_v23 }
0x21ca   :  { %2761 = vmatmul.mubr.f32.vlgmr.msra.gmra.mrb[28].mxu0 %v2694_v3 }
0x21cb   :  { %6161 = vmatpush3.bf16.msra.mxu0 %v6772_v29 }
0x21cc   :  { %6163 = vmatprep.subr.bf16.mxu0 %v6774_v30 }
0x21cf   :  { %6165 = vmatpush3.bf16.msra.mxu0 %v6799_v38 }
0x21d0   :  { %6167 = vmatprep.subr.bf16.mxu0 %v6804_v39 }
0x21d3   :  { %6169 = vmatpush3.bf16.msra.mxu0 %v6824_v45 }
0x21d4   :  { %6171 = vmatprep.subr.bf16.mxu0 %v6827_v46 }
0x21d7   :  { %6173 = vmatpush3.bf16.msra.mxu0 %v6842_v50 }
0x21d8   :  { %6175 = vmatprep.subr.bf16.mxu0 %v6855_v53 }
0x21db   :  { %6177 = vmatpush3.bf16.msra.mxu0 %v6863_v56 }
0x21dc   :  { %6179 = vmatprep.subr.bf16.mxu0 %v6873_v59 }
0x21df   :  { %6181 = vmatpush3.bf16.msra.mxu0 %v6881_v62 }
0x21e0   :  { %6183 = vmatprep.subr.bf16.mxu0 %v6894_v2 }
0x21e3   :  { %6185 = vmatpush3.bf16.msra.mxu0 %v6905_v10 }
0x21e4   :  { %6187 = vmatprep.subr.bf16.mxu0 %v6907_v11 }
0x21e7   :  { %6189 = vmatpush3.bf16.msra.mxu0 %v6917_v15 }
0x21e8   :  { %6222 = vmatprep.subr.bf16.mxu0 %v7871_v19 }
0x229d   :  { %v5221_v7 = vpop.f32.mrb[28].mxu0 }
0x229e   :  { %v5222_v20 = vpop.f32.mrb[29].mxu0 }
0x229f   :  { %v5223_v47 = vadd.f32 %v5222_v20, %v5221_v7 }
0x22a1   :  { %5581 = vmatmul.mubr.msk.f32.vlgmr.msra.gmra.mrb[26].mxu1 %vm146_vm0, %v5223_v47 }
0x22a2   :  { %6138 = vmatpush3.bf16.msra.mxu1 %v7150_v36  ;;  %5591 = vmatprep.mubr.msk.f32.mxu1 %vm6604_vm2, %v7870_v35 }
0x22a3   :  { %6139 = vmatprep.subr.bf16.mxu1 %v7871_v19 }
0x22a6   :  { %6141 = vmatpush3.bf16.msra.mxu1 %v7160_v60 }
0x22a7   :  { %6143 = vmatprep.subr.bf16.mxu1 %v6698_v4 }
0x22a9   :  { %5592 = vmatmul.mubr.msk.f32.vlgmr.msra.gmra.mrb[28].mxu1 %vm146_vm0, %v7443_v58 }
0x22aa   :  { %6145 = vmatpush1.bf16.msra.mxu1 %v6709_v8  ;;  %3005 = vmatprep.mubr.f32.mxu1 %v7870_v35 }
0x22ab   :  { %6147 = vmatprep.subr.bf16.mxu1 %v6711_v9 }
0x22ae   :  { %6149 = vmatpush1.bf16.msra.mxu1 %v6727_v14 }
0x22af   :  { %6151 = vmatprep.subr.bf16.mxu1 %v6733_v16 }
0x2374   :  { %v2835_v63 = vpop.f32.mrb[26].mxu1 }
0x2375   :  { %v5582_v61 = vpop.f32.mrb[27].mxu1 }
0x237c   :  { %v2905_v18 = vpop.f32.mrb[28].mxu1 }
0x237d   :  { %v2906_v44 = vadd.f32 %v2905_v18, %v2835_v63  ;;  %v5593_v27 = vpop.f32.mrb[29].mxu1 }
0x237f   :  { %v2911_v58 = vadd.f32 %v4808_v49, %v2906_v44 }
0x2381   :  { %6540 = vtanh.f32 %v2911_v58  ;;  %v4809_v26 = vmul.f32 -1.442695, %v2911_v58 }
0x2383   :  { %6542 = vpow2.f32 %v4809_v26  ;;  %v7885_v26 = vld [vmem:[#allocation4_spill] sm:$0xff] }
0x238b   :  { %v6541_v43 = vpop.eup %6540 }
0x238c   :  { %2921 = vrot.lane.b32.xlu0 %v6541_v43, %s6605_s23 }
0x238d   :  { %v6543_v23 = vpop.eup %6542 }
0x238e   :  { %v2915_v3 = vadd.f32 1.0, %v6543_v23 }
0x2390   :  { %6544 = vrcp.f32 %v2915_v3 }
0x239a   :  { %v6545_v7 = vpop.eup %6544 }
0x239b   :  { %v2919_v61 = vmul.f32 %v6545_v7, %v7436_v52 }
0x23fe   :  { %v2922_v20 = vpop.permute.xlu0 %2921 }
0x23ff   :  { %v2924_v47 = vmul.f32 %v6545_v7, %v2922_v20  ;;  %v7886_v20 = vld [vmem:[#allocation6_spill] sm:$0xff] }
0x2401   :  { %2926 = vrot.lane.b32.xlu1 %v2924_v47, %s6605_s23  ;;  %v7887_v47 = vld [vmem:[#allocation7_spill] sm:$0xff] }
0x2473   :  { %v2927_v16 = vpop.permute.xlu1 %2926 }
0x2474   :  { %v7551_v63 = vadd.f32 %v2927_v16, %v2919_v61 }
0x2476   :  { %6546 = vtanh.f32 %v7551_v63 }
0x2480   :  { %v6547_v18 = vpop.eup %6546 }
0x2481   :  { %2932 = vrot.lane.b32.xlu0 %v6547_v18, %s6605_s23 }
0x2485   :  { %3015 = vrot.lane.b32.xlu0 %v7551_v63, %s6607_s3 }
0x24f3   :  { %v2933_v49 = vpop.permute.xlu0 %2932 }
0x24f4   :  { %v2935_v44 = vmul.f32 %v6545_v7, %v2933_v49 }
0x24f6   :  { %2937 = vrot.lane.b32.xlu1 %v2935_v44, %s6606_s24 }
0x24f7   :  { %v3016_v16 = vpop.permute.xlu0 %3015 }
0x2568   :  { %v7558_v27 = vpop.permute.xlu1 %2937 }
0x2569   :  { %4810 = vmatmul.mubr.msk.f32.vlgmr.msra.gmra.mrb[30].mxu1 %vm146_vm0, %v7558_v27 }
0x256a   :  { %6153 = vmatpush1.bf16.msra.mxu1 %v6770_v28  ;;  %3083 = vmatprep.mubr.f32.mxu1 %v7870_v35 }
0x256b   :  { %6155 = vmatprep.subr.bf16.mxu1 %v6786_v34 }
0x256e   :  { %6157 = vmatpush1.bf16.msra.mxu1 %v6813_v42 }
0x256f   :  { %3181 = vmatprep.subr.mxu1 %v7454_v54 }
0x2571   :  { %4811 = vmatmul.mubr.msk.f32.vlgmr.msra.gmra.mrb[30].mxu1 %vm146_vm0, %v3016_v16 }
0x2572   :  { %3182 = vmatpush1.msra.mxu1 %v7461_v12  ;;  %3245 = vmatprep.mubr.f32.mxu1 %v7870_v35 }
0x2573   :  { %6191 = vmatprep.subr.bf16.mxu1 %v7877_v51 }
0x2644   :  { %v3085_v52 = vpop.f32.mrb[30].mxu1 }
0x2645   :  { %v6440_v58 = vadd.f32 %v7469_v17, %v3085_v52  ;;  %v3087_v43 = vpop.f32.mrb[31].mxu1 }
0x2646   :  { %v6441_v23 = vadd.f32 %v7885_v26, %v3087_v43 }
0x2648   :  { %6548 = vtanh.f32 %v6441_v23 }
0x2649   :  { %6550 = vtanh.f32 %v6440_v58 }
0x2652   :  { %v6549_v3 = vpop.eup %6548 }
0x2653   :  { %v6551_v7 = vpop.eup %6550  ;;  %3158 = vmatprep.mubr.f32.mxu0 %v6549_v3 }
0x2654   :  { %3159 = vmatmul.mubr.f32.vlgmr.msra.gmra.mrb[30].mxu0 %v6551_v7 }
0x2655   :  { %6224 = vmatpush3.bf16.msra.mxu0 %v7886_v20  ;;  %5602 = vmatprep.mubr.msk.f32.mxu0 %vm6604_vm2, %v7870_v35 }
0x2656   :  { %6225 = vmatprep.subr.bf16.mxu0 %v7871_v19 }
0x2659   :  { %6227 = vmatpush3.bf16.msra.mxu0 %v7887_v47 }
0x265a   :  { %6228 = vmatprep.subr.bf16.mxu0 %v7871_v19 }
0x2727   :  { %v5266_v61 = vpop.f32.mrb[30].mxu0 }
0x2728   :  { %v5267_v18 = vpop.f32.mrb[31].mxu0 }
0x2729   :  { %v5268_v49 = vadd.f32 %v5267_v18, %v5266_v61 }
0x272b   :  { %v3164_v44 = vsel %vm371_vm1, %v5268_v49, -inf }
0x272c   :  { %3165 = vmax.xlane.f32.xlu1 %v3164_v44  ;;  %v7888_v44 = vld [vmem:[#allocation2_spill] sm:$0xff] }
0x27b9   :  { %v3166_v16 = vpop.xlane.xlu1 %3165 }
0x27ba   :  { %v3167_v52 = vsub.f32 %v5268_v49, %v3166_v16 }
0x27bc   :  { %v3168_v58 = vmul.f32 1.442695, %v3167_v52 }
0x27be   :  { %6552 = vpow2.f32 %v3168_v58 }
0x27c8   :  { %v6553_v43 = vpop.eup %6552 }
0x27c9   :  { %v3170_v23 = vsel %vm371_vm1, %v6553_v43, 0.0 }
0x27ca   :  { %3171 = vadd.xlane.f32.xlu0 %v3170_v23 }
0x2857   :  { %v3172_v3 = vpop.xlane.xlu0 %3171 }
0x2858   :  { %6554 = vrcp.f32 %v3172_v3 }
0x2862   :  { %v6555_v7 = vpop.eup %6554 }
0x2863   :  { %v3174_v47 = vmul.f32 %v6555_v7, %v3172_v3 }
0x2865   :  { %v3175_v20 = vsub.f32 2.0, %v3174_v47 }
0x2867   :  { %v3176_v26 = vmul.f32 %v6555_v7, %v3175_v20 }
0x2869   :  { %v3177_v17 = vmul.f32 %v6553_v43, %v3176_v26  ;;  %v4815_v43 = vld [vmem:[%s7837_s2 + $0x28] sm:$0xff] }
0x286b   :  { %4812 = vmatmul.mubr.msk.f32.vlgmr.msra.gmra.mrb[32].mxu1 %vm371_vm1, %v3177_v17 }
0x286c   :  { %6193 = vmatpush3.bf16.msra.mxu1 %v6968_v1 }
0x286d   :  { %6195 = vmatprep.subr.bf16.mxu1 %v6970_v6 }
0x2870   :  { %6197 = vmatpush3.bf16.msra.mxu1 %v6986_v21 }
0x2871   :  { %6199 = vmatprep.subr.bf16.mxu1 %v6989_v22 }
0x2874   :  { %6201 = vmatpush3.bf16.msra.mxu1 %v7004_v31 }
0x2875   :  { %6203 = vmatprep.subr.bf16.mxu1 %v7007_v32 }
0x2878   :  { %6205 = vmatpush3.bf16.msra.mxu1 %v7022_v40 }
0x2879   :  { %6207 = vmatprep.subr.bf16.mxu1 %v7025_v41 }
0x287c   :  { %6209 = vmatpush3.bf16.msra.mxu1 %v7040_v55 }
0x287d   :  { %6211 = vmatprep.subr.bf16.mxu1 %v7043_v57 }
0x2880   :  { %6213 = vmatpush3.bf16.msra.mxu1 %v7058_v0 }
0x2881   :  { %6215 = vmatprep.subr.bf16.mxu1 %v7061_v5 }
0x2884   :  { %6217 = vmatpush3.bf16.msra.mxu1 %v7070_v13 }
0x2885   :  { %6219 = vmatprep.subr.bf16.mxu1 %v7080_v25 }
0x2888   :  { %6221 = vmatpush3.bf16.msra.mxu1 %v7088_v33 }
0x2889   :  { %6251 = vmatprep.subr.bf16.mxu1 %v6758_v24 }
0x293e   :  { %v3247_v17 = vpop.f32.mrb[32].mxu1 }
0x293f   :  { %v3249_v26 = vpop.f32.mrb[33].mxu1  ;;  %v3252_v47 = vmul.f32 %v7512_v48, %v3247_v17 }
0x2940   :  { %v3253_v20 = vmul.f32 %v7506_v37, %v3249_v26 }
0x2942   :  { %3318 = vmatprep.mubr.f32.mxu1 %v3253_v20 }
0x2943   :  { %3319 = vmatmul.mubr.f32.vlgmr.msra.gmra.mrb[34].mxu1 %v3252_v47 }
0x2944   :  { %6253 = vmatpush3.bf16.msra.mxu1 %v6772_v29 }
0x2945   :  { %6255 = vmatprep.subr.bf16.mxu1 %v6774_v30 }
0x2948   :  { %6257 = vmatpush3.bf16.msra.mxu1 %v6799_v38 }
0x2949   :  { %6259 = vmatprep.subr.bf16.mxu1 %v6804_v39 }
0x294c   :  { %6261 = vmatpush3.bf16.msra.mxu1 %v6824_v45 }
0x294d   :  { %6263 = vmatprep.subr.bf16.mxu1 %v6827_v46 }
0x2950   :  { %6265 = vmatpush3.bf16.msra.mxu1 %v6842_v50 }
0x2951   :  { %6267 = vmatprep.subr.bf16.mxu1 %v6855_v53 }
0x2954   :  { %6269 = vmatpush3.bf16.msra.mxu1 %v6863_v56 }
0x2955   :  { %6271 = vmatprep.subr.bf16.mxu1 %v6873_v59 }
0x2958   :  { %6273 = vmatpush3.bf16.msra.mxu1 %v6881_v62 }
0x2959   :  { %6275 = vmatprep.subr.bf16.mxu1 %v6894_v2 }
0x295c   :  { %6277 = vmatpush3.bf16.msra.mxu1 %v6905_v10 }
0x295d   :  { %6279 = vmatprep.subr.bf16.mxu1 %v6907_v11 }
0x2960   :  { %6281 = vmatpush3.bf16.msra.mxu1 %v6917_v15 }
0x2961   :  { %6314 = vmatprep.subr.bf16.mxu1 %v7871_v19 }
0x2a16   :  { %v5301_v61 = vpop.f32.mrb[34].mxu1 }
0x2a17   :  { %v5302_v18 = vpop.f32.mrb[35].mxu1 }
0x2a18   :  { %v5303_v49 = vadd.f32 %v5302_v18, %v5301_v61 }
0x2a1a   :  { %5603 = vmatmul.mubr.msk.f32.vlgmr.msra.gmra.mrb[32].mxu0 %vm146_vm0, %v5303_v49 }
0x2a1b   :  { %6230 = vmatpush3.bf16.msra.mxu0 %v7150_v36  ;;  %5613 = vmatprep.mubr.msk.f32.mxu0 %vm6604_vm2, %v7870_v35 }
0x2a1c   :  { %6231 = vmatprep.subr.bf16.mxu0 %v7871_v19 }
0x2a1f   :  { %6233 = vmatpush3.bf16.msra.mxu0 %v7160_v60 }
0x2a20   :  { %6235 = vmatprep.subr.bf16.mxu0 %v6698_v4 }
0x2a22   :  { %5614 = vmatmul.mubr.msk.f32.vlgmr.msra.gmra.mrb[34].mxu0 %vm146_vm0, %v7558_v27 }
0x2a23   :  { %6237 = vmatpush1.bf16.msra.mxu0 %v6709_v8  ;;  %3563 = vmatprep.mubr.f32.mxu0 %v7870_v35 }
0x2a24   :  { %6239 = vmatprep.subr.bf16.mxu0 %v6711_v9 }
0x2a27   :  { %6241 = vmatpush1.bf16.msra.mxu0 %v6727_v14 }
0x2a28   :  { %6243 = vmatprep.subr.bf16.mxu0 %v7888_v44 }
0x2aed   :  { %v3393_v16 = vpop.f32.mrb[32].mxu0 }
0x2aee   :  { %v5604_v52 = vpop.f32.mrb[33].mxu0 }
0x2af5   :  { %v3463_v58 = vpop.f32.mrb[34].mxu0 }
0x2af6   :  { %v3464_v23 = vadd.f32 %v3463_v58, %v3393_v16  ;;  %v5615_v3 = vpop.f32.mrb[35].mxu0 }
0x2af8   :  { %v3469_v27 = vadd.f32 %v4815_v43, %v3464_v23 }
0x2afa   :  { %6556 = vtanh.f32 %v3469_v27  ;;  %v4816_v17 = vmul.f32 -1.442695, %v3469_v27 }
0x2afc   :  { %6558 = vpow2.f32 %v4816_v17 }
0x2b04   :  { %v6557_v7 = vpop.eup %6556 }
0x2b05   :  { %3479 = vrot.lane.b32.xlu0 %v6557_v7, %s6605_s23  ;;  %v7889_v7 = vld [vmem:[#allocation3_spill] sm:$0xff] }
0x2b06   :  { %v6559_v26 = vpop.eup %6558 }
0x2b07   :  { %v3473_v20 = vadd.f32 1.0, %v6559_v26 }
0x2b09   :  { %6560 = vrcp.f32 %v3473_v20  ;;  %v7890_v20 = vld [vmem:[#allocation4_spill] sm:$0xff] }
0x2b13   :  { %v6561_v47 = vpop.eup %6560 }
0x2b14   :  { %v3477_v49 = vmul.f32 %v6561_v47, %v7551_v63 }
0x2b77   :  { %v3480_v61 = vpop.permute.xlu0 %3479 }
0x2b78   :  { %v3482_v18 = vmul.f32 %v6561_v47, %v3480_v61 }
0x2b7a   :  { %3484 = vrot.lane.b32.xlu1 %v3482_v18, %s6605_s23 }
0x2bec   :  { %v3485_v52 = vpop.permute.xlu1 %3484 }
0x2bed   :  { %v7636_v16 = vadd.f32 %v3485_v52, %v3477_v49  ;;  %v7891_v49 = vld [vmem:[#allocation6_spill] sm:$0xff]  ;;  %v7892_v52 = vld [vmem:[#allocation7_spill] sm:$0xff] }
0x2bef   :  { %6562 = vtanh.f32 %v7636_v16 }
0x2bf9   :  { %v6563_v58 = vpop.eup %6562 }
0x2bfa   :  { %3490 = vrot.lane.b32.xlu1 %v6563_v58, %s6605_s23 }
0x2bfe   :  { %3573 = vrot.lane.b32.xlu1 %v7636_v16, %s6607_s3 }
0x2c6c   :  { %v3491_v43 = vpop.permute.xlu1 %3490 }
0x2c6d   :  { %v3493_v23 = vmul.f32 %v6561_v47, %v3491_v43 }
0x2c6f   :  { %3495 = vrot.lane.b32.xlu0 %v3493_v23, %s6606_s24 }
0x2c70   :  { %v3574_v63 = vpop.permute.xlu1 %3573 }
0x2ce1   :  { %v7643_v3 = vpop.permute.xlu0 %3495 }
0x2ce2   :  { %4817 = vmatmul.mubr.msk.f32.vlgmr.msra.gmra.mrb[36].mxu0 %vm146_vm0, %v7643_v3 }
0x2ce3   :  { %6245 = vmatpush1.bf16.msra.mxu0 %v6770_v28  ;;  %3641 = vmatprep.mubr.f32.mxu0 %v7870_v35 }
0x2ce4   :  { %6247 = vmatprep.subr.bf16.mxu0 %v6786_v34 }
0x2ce7   :  { %6249 = vmatpush1.bf16.msra.mxu0 %v6813_v42 }
0x2ce8   :  { %3739 = vmatprep.subr.mxu0 %v7454_v54 }
0x2cea   :  { %4818 = vmatmul.mubr.msk.f32.vlgmr.msra.gmra.mrb[36].mxu0 %vm146_vm0, %v3574_v63 }
0x2ceb   :  { %3740 = vmatpush1.msra.mxu0 %v7461_v12  ;;  %3803 = vmatprep.mubr.f32.mxu0 %v7870_v35 }
0x2cec   :  { %6283 = vmatprep.subr.bf16.mxu0 %v7877_v51 }
0x2dbd   :  { %v3643_v27 = vpop.f32.mrb[36].mxu0 }
0x2dbe   :  { %v6442_v17 = vadd.f32 %v7889_v7, %v3643_v27  ;;  %v3645_v26 = vpop.f32.mrb[37].mxu0 }
0x2dbf   :  { %v6443_v47 = vadd.f32 %v7890_v20, %v3645_v26 }
0x2dc1   :  { %6564 = vtanh.f32 %v6443_v47 }
0x2dc2   :  { %6566 = vtanh.f32 %v6442_v17 }
0x2dcb   :  { %v6565_v61 = vpop.eup %6564 }
0x2dcc   :  { %v6567_v18 = vpop.eup %6566  ;;  %3716 = vmatprep.mubr.f32.mxu1 %v6565_v61 }
0x2dcd   :  { %3717 = vmatmul.mubr.f32.vlgmr.msra.gmra.mrb[36].mxu1 %v6567_v18 }
0x2dce   :  { %6316 = vmatpush3.bf16.msra.mxu1 %v7891_v49  ;;  %5624 = vmatprep.mubr.msk.f32.mxu1 %vm6604_vm2, %v7870_v35 }
0x2dcf   :  { %6317 = vmatprep.subr.bf16.mxu1 %v7871_v19 }
0x2dd2   :  { %6319 = vmatpush3.bf16.msra.mxu1 %v7892_v52 }
0x2dd3   :  { %6320 = vmatprep.subr.bf16.mxu1 %v7871_v19 }
0x2ea0   :  { %v5346_v58 = vpop.f32.mrb[36].mxu1 }
0x2ea1   :  { %v5347_v43 = vpop.f32.mrb[37].mxu1 }
0x2ea2   :  { %v5348_v23 = vadd.f32 %v5347_v43, %v5346_v58  ;;  %v7893_v43 = vld [vmem:[#allocation5_spill] sm:$0xff] }
0x2ea4   :  { %v3722_v63 = vsel %vm371_vm1, %v5348_v23, -inf }
0x2ea5   :  { %3723 = vmax.xlane.f32.xlu0 %v3722_v63  ;;  %v7894_v63 = vld [vmem:[#allocation3_spill] sm:$0xff] }
0x2f32   :  { %v3724_v27 = vpop.xlane.xlu0 %3723 }
0x2f33   :  { %v3725_v17 = vsub.f32 %v5348_v23, %v3724_v27 }
0x2f35   :  { %v3726_v26 = vmul.f32 1.442695, %v3725_v17  ;;  %v7895_v17 = vld [vmem:[#allocation4_spill] sm:$0xff] }
0x2f37   :  { %6568 = vpow2.f32 %v3726_v26 }
0x2f41   :  { %v6569_v47 = vpop.eup %6568 }
0x2f42   :  { %v3728_v61 = vsel %vm371_vm1, %v6569_v47, 0.0 }
0x2f43   :  { %3729 = vadd.xlane.f32.xlu1 %v3728_v61 }
0x2fd0   :  { %v3730_v18 = vpop.xlane.xlu1 %3729 }
0x2fd1   :  { %6570 = vrcp.f32 %v3730_v18 }
0x2fdb   :  { %v6571_v49 = vpop.eup %6570 }
0x2fdc   :  { %v3732_v52 = vmul.f32 %v6571_v49, %v3730_v18 }
0x2fde   :  { %v3733_v20 = vsub.f32 2.0, %v3732_v52 }
0x2fe0   :  { %v3734_v7 = vmul.f32 %v6571_v49, %v3733_v20 }
0x2fe2   :  { %v3735_v51 = vmul.f32 %v6569_v47, %v3734_v7 }
0x2fe4   :  { %4819 = vmatmul.mubr.msk.f32.vlgmr.msra.gmra.mrb[38].mxu0 %vm371_vm1, %v3735_v51 }
0x2fe5   :  { %6285 = vmatpush3.bf16.msra.mxu0 %v6968_v1 }
0x2fe6   :  { %6287 = vmatprep.subr.bf16.mxu0 %v6970_v6 }
0x2fe9   :  { %6289 = vmatpush3.bf16.msra.mxu0 %v6986_v21 }
0x2fea   :  { %6291 = vmatprep.subr.bf16.mxu0 %v6989_v22 }
0x2fed   :  { %6293 = vmatpush3.bf16.msra.mxu0 %v7004_v31 }
0x2fee   :  { %6295 = vmatprep.subr.bf16.mxu0 %v7007_v32 }
0x2ff1   :  { %6297 = vmatpush3.bf16.msra.mxu0 %v7022_v40 }
0x2ff2   :  { %6299 = vmatprep.subr.bf16.mxu0 %v7025_v41 }
0x2ff5   :  { %6301 = vmatpush3.bf16.msra.mxu0 %v7040_v55 }
0x2ff6   :  { %6303 = vmatprep.subr.bf16.mxu0 %v7043_v57 }
0x2ff9   :  { %6305 = vmatpush3.bf16.msra.mxu0 %v7058_v0 }
0x2ffa   :  { %6307 = vmatprep.subr.bf16.mxu0 %v7061_v5 }
0x2ffd   :  { %6309 = vmatpush3.bf16.msra.mxu0 %v7070_v13 }
0x2ffe   :  { %6311 = vmatprep.subr.bf16.mxu0 %v7080_v25 }
0x3001   :  { %6313 = vmatpush3.bf16.msra.mxu0 %v7088_v33 }
0x3002   :  { %6343 = vmatprep.subr.bf16.mxu0 %v6758_v24 }
0x30b7   :  { %v3805_v51 = vpop.f32.mrb[38].mxu0 }
0x30b8   :  { %v3807_v7 = vpop.f32.mrb[39].mxu0  ;;  %v3810_v49 = vmul.f32 %v7512_v48, %v3805_v51 }
0x30b9   :  { %v3811_v20 = vmul.f32 %v7506_v37, %v3807_v7 }
0x30bb   :  { %3876 = vmatprep.mubr.f32.mxu0 %v3811_v20 }
0x30bc   :  { %3877 = vmatmul.mubr.f32.vlgmr.msra.gmra.mrb[40].mxu0 %v3810_v49 }
0x30bd   :  { %6345 = vmatpush3.bf16.msra.mxu0 %v6772_v29 }
0x30be   :  { %6347 = vmatprep.subr.bf16.mxu0 %v6774_v30 }
0x30c1   :  { %6349 = vmatpush3.bf16.msra.mxu0 %v6799_v38 }
0x30c2   :  { %6351 = vmatprep.subr.bf16.mxu0 %v6804_v39 }
0x30c5   :  { %6353 = vmatpush3.bf16.msra.mxu0 %v6824_v45 }
0x30c6   :  { %6355 = vmatprep.subr.bf16.mxu0 %v6827_v46 }
0x30c9   :  { %6357 = vmatpush3.bf16.msra.mxu0 %v6842_v50 }
0x30ca   :  { %6359 = vmatprep.subr.bf16.mxu0 %v6855_v53 }
0x30cd   :  { %6361 = vmatpush3.bf16.msra.mxu0 %v6863_v56 }
0x30ce   :  { %6363 = vmatprep.subr.bf16.mxu0 %v6873_v59 }
0x30d1   :  { %6365 = vmatpush3.bf16.msra.mxu0 %v6881_v62 }
0x30d2   :  { %6367 = vmatprep.subr.bf16.mxu0 %v6894_v2 }
0x30d5   :  { %6369 = vmatpush3.bf16.msra.mxu0 %v6905_v10 }
0x30d6   :  { %6371 = vmatprep.subr.bf16.mxu0 %v6907_v11 }
0x30d9   :  { %6373 = vmatpush3.bf16.msra.mxu0 %v6917_v15 }
0x30da   :  { %6406 = vmatprep.subr.bf16.mxu0 %v7871_v19 }
0x318f   :  { %v5381_v24 = vpop.f32.mrb[40].mxu0 }
0x3190   :  { %v5382_v29 = vpop.f32.mrb[41].mxu0 }
0x3191   :  { %v5383_v30 = vadd.f32 %v5382_v29, %v5381_v24 }
0x3193   :  { %5625 = vmatmul.mubr.msk.f32.vlgmr.msra.gmra.mrb[38].mxu1 %vm146_vm0, %v5383_v30 }
0x3194   :  { %6322 = vmatpush3.bf16.msra.mxu1 %v7150_v36  ;;  %5635 = vmatprep.mubr.msk.f32.mxu1 %vm6604_vm2, %v7870_v35 }
0x3195   :  { %6323 = vmatprep.subr.bf16.mxu1 %v7871_v19 }
0x3198   :  { %6325 = vmatpush3.bf16.msra.mxu1 %v7160_v60 }
0x3199   :  { %6327 = vmatprep.subr.bf16.mxu1 %v6698_v4  ;;  %v4822_v4 = vld [vmem:[%s7837_s2 + $0x30] sm:$0xff] }
0x319b   :  { %5636 = vmatmul.mubr.msk.f32.vlgmr.msra.gmra.mrb[40].mxu1 %vm146_vm0, %v7643_v3 }
0x319c   :  { %6329 = vmatpush1.bf16.msra.mxu1 %v6709_v8  ;;  %4121 = vmatprep.mubr.f32.mxu1 %v7870_v35 }
0x319d   :  { %6331 = vmatprep.subr.bf16.mxu1 %v6711_v9 }
0x31a0   :  { %6333 = vmatpush1.bf16.msra.mxu1 %v6727_v14 }
0x31a1   :  { %6335 = vmatprep.subr.bf16.mxu1 %v7888_v44 }
0x3266   :  { %v3951_v38 = vpop.f32.mrb[38].mxu1 }
0x3267   :  { %v5626_v39 = vpop.f32.mrb[39].mxu1 }
0x326e   :  { %v4021_v45 = vpop.f32.mrb[40].mxu1 }
0x326f   :  { %v4022_v46 = vadd.f32 %v4021_v45, %v3951_v38  ;;  %v5637_v50 = vpop.f32.mrb[41].mxu1 }
0x3271   :  { %v4027_v53 = vadd.f32 %v4822_v4, %v4022_v46 }
0x3273   :  { %6572 = vtanh.f32 %v4027_v53  ;;  %v4823_v56 = vmul.f32 -1.442695, %v4027_v53 }
0x3275   :  { %6574 = vpow2.f32 %v4823_v56 }
0x327d   :  { %v6573_v8 = vpop.eup %6572 }
0x327e   :  { %4037 = vrot.lane.b32.xlu0 %v6573_v8, %s6605_s23 }
0x327f   :  { %v6575_v9 = vpop.eup %6574 }
0x3280   :  { %v4031_v14 = vadd.f32 1.0, %v6575_v9 }
0x3282   :  { %6576 = vrcp.f32 %v4031_v14 }
0x328c   :  { %v6577_v59 = vpop.eup %6576 }
0x328d   :  { %v4035_v10 = vmul.f32 %v6577_v59, %v7636_v16 }
0x32f0   :  { %v4038_v62 = vpop.permute.xlu0 %4037 }
0x32f1   :  { %v4040_v2 = vmul.f32 %v6577_v59, %v4038_v62 }
0x32f3   :  { %4042 = vrot.lane.b32.xlu1 %v4040_v2, %s6605_s23 }
0x3365   :  { %v4043_v11 = vpop.permute.xlu1 %4042 }
0x3366   :  { %v7721_v15 = vadd.f32 %v4043_v11, %v4035_v10 }
0x3368   :  { %6578 = vtanh.f32 %v7721_v15 }
0x3372   :  { %v6579_v44 = vpop.eup %6578 }
0x3373   :  { %4048 = vrot.lane.b32.xlu0 %v6579_v44, %s6605_s23 }
0x3377   :  { %4131 = vrot.lane.b32.xlu0 %v7721_v15, %s6607_s3 }
0x33e5   :  { %v4049_v3 = vpop.permute.xlu0 %4048 }
0x33e6   :  { %v4051_v52 = vmul.f32 %v6577_v59, %v4049_v3  ;;  %v4610_v3 = vld [vmem:[%s7839_s12] sm:$0xff] }
0x33e8   :  { %4053 = vrot.lane.b32.xlu1 %v4051_v52, %s6606_s24  ;;  %v4611_v52 = vld [vmem:[%s7839_s12 + $0x8] sm:$0xff] }
0x33e9   :  { %v4132_v16 = vpop.permute.xlu0 %4131 }
0x345a   :  { %v7728_v58 = vpop.permute.xlu1 %4053 }
0x345b   :  { %4824 = vmatmul.mubr.msk.f32.vlgmr.msra.gmra.mrb[42].mxu1 %vm146_vm0, %v7728_v58 }
0x345c   :  { %6337 = vmatpush1.bf16.msra.mxu1 %v6770_v28  ;;  %4199 = vmatprep.mubr.f32.mxu1 %v7870_v35 }
0x345d   :  { %6339 = vmatprep.subr.bf16.mxu1 %v6786_v34 }
0x3460   :  { %6341 = vmatpush1.bf16.msra.mxu1 %v6813_v42 }
0x3461   :  { %4297 = vmatprep.subr.mxu1 %v7454_v54  ;;  %v7896_v54 = vld [vmem:[#allocation6_spill] sm:$0xff] }
0x3463   :  { %4825 = vmatmul.mubr.msk.f32.vlgmr.msra.gmra.mrb[42].mxu1 %vm146_vm0, %v4132_v16  ;;  %v6425_v16 = vpack.c.bf16 %v4611_v52, %v4610_v3 }
0x3464   :  { %4298 = vmatpush1.msra.mxu1 %v7461_v12  ;;  %4361 = vmatprep.mubr.f32.mxu1 %v7870_v35  ;;  %v7897_v12 = vld [vmem:[#allocation7_spill] sm:$0xff] }
0x3465   :  { %6375 = vmatprep.subr.bf16.mxu1 %v7893_v43 }
0x3536   :  { %v4201_v23 = vpop.f32.mrb[42].mxu1 }
0x3537   :  { %v6444_v28 = vadd.f32 %v7894_v63, %v4201_v23  ;;  %v4203_v27 = vpop.f32.mrb[43].mxu1 }
0x3538   :  { %v6445_v26 = vadd.f32 %v7895_v17, %v4203_v27 }
0x353a   :  { %6580 = vtanh.f32 %v6445_v26  ;;  %v4833_v26 = vld [vmem:[%s7840_s14] ss:$0 sm:$0xff] }
0x353b   :  { %6582 = vtanh.f32 %v6444_v28 }
0x3544   :  { %v6581_v34 = vpop.eup %6580 }
0x3545   :  { %v6583_v42 = vpop.eup %6582  ;;  %4274 = vmatprep.mubr.f32.mxu0 %v6581_v34 }
0x3546   :  { %4275 = vmatmul.mubr.f32.vlgmr.msra.gmra.mrb[42].mxu0 %v6583_v42 }
0x3547   :  { %6408 = vmatpush3.bf16.msra.mxu0 %v7896_v54  ;;  %5646 = vmatprep.mubr.msk.f32.mxu0 %vm6604_vm2, %v7870_v35 }
0x3548   :  { %6409 = vmatprep.subr.bf16.mxu0 %v7871_v19 }
0x354b   :  { %6411 = vmatpush3.bf16.msra.mxu0 %v7897_v12 }
0x354c   :  { %6412 = vmatprep.subr.bf16.mxu0 %v7871_v19 }
0x3619   :  { %v5426_v47 = vpop.f32.mrb[42].mxu0 }
0x361a   :  { %v5427_v61 = vpop.f32.mrb[43].mxu0 }
0x361b   :  { %v5428_v18 = vadd.f32 %v5427_v61, %v5426_v47 }
0x361d   :  { %v4280_v51 = vsel %vm371_vm1, %v5428_v18, -inf }
0x361e   :  { %4281 = vmax.xlane.f32.xlu1 %v4280_v51 }
0x36ab   :  { %v4282_v7 = vpop.xlane.xlu1 %4281 }
0x36ac   :  { %v4283_v20 = vsub.f32 %v5428_v18, %v4282_v7 }
0x36ae   :  { %v4284_v49 = vmul.f32 1.442695, %v4283_v20 }
0x36b0   :  { %6584 = vpow2.f32 %v4284_v49 }
0x36ba   :  { %v6585_v24 = vpop.eup %6584 }
0x36bb   :  { %v4286_v29 = vsel %vm371_vm1, %v6585_v24, 0.0 }
0x36bc   :  { %4287 = vadd.xlane.f32.xlu0 %v4286_v29 }
0x3749   :  { %v4288_v30 = vpop.xlane.xlu0 %4287 }
0x374a   :  { %6586 = vrcp.f32 %v4288_v30 }
0x3754   :  { %v6587_v38 = vpop.eup %6586 }
0x3755   :  { %v4290_v39 = vmul.f32 %v6587_v38, %v4288_v30 }
0x3757   :  { %v4291_v45 = vsub.f32 2.0, %v4290_v39 }
0x3759   :  { %v4292_v4 = vmul.f32 %v6587_v38, %v4291_v45 }
0x375b   :  { %v4293_v46 = vmul.f32 %v6585_v24, %v4292_v4 }
0x375d   :  { %4826 = vmatmul.mubr.msk.f32.vlgmr.msra.gmra.mrb[44].mxu1 %vm371_vm1, %v4293_v46 }
0x375e   :  { %6377 = vmatpush3.bf16.msra.mxu1 %v6968_v1 }
0x375f   :  { %6379 = vmatprep.subr.bf16.mxu1 %v6970_v6 }
0x3762   :  { %6381 = vmatpush3.bf16.msra.mxu1 %v6986_v21 }
0x3763   :  { %6383 = vmatprep.subr.bf16.mxu1 %v6989_v22 }
0x3766   :  { %6385 = vmatpush3.bf16.msra.mxu1 %v7004_v31 }
0x3767   :  { %6387 = vmatprep.subr.bf16.mxu1 %v7007_v32 }
0x376a   :  { %6389 = vmatpush3.bf16.msra.mxu1 %v7022_v40 }
0x376b   :  { %6391 = vmatprep.subr.bf16.mxu1 %v7025_v41  ;;  %v4614_v41 = vld [vmem:[%s7838_s13] sm:$0xff] }
0x376e   :  { %6393 = vmatpush3.bf16.msra.mxu1 %v7040_v55  ;;  %v4615_v55 = vld [vmem:[%s7838_s13 + $0x8] sm:$0xff] }
0x376f   :  { %6395 = vmatprep.subr.bf16.mxu1 %v7043_v57  ;;  %v6419_v57 = vpack.c.bf16 %v4615_v55, %v4614_v41 }
0x3772   :  { %6397 = vmatpush3.bf16.msra.mxu1 %v7058_v0  ;;  %v4616_v0 = vld [vmem:[%s7838_s13 + $0x10] sm:$0xff] }
0x3773   :  { %6399 = vmatprep.subr.bf16.mxu1 %v7061_v5  ;;  %v4617_v5 = vld [vmem:[%s7838_s13 + $0x18] sm:$0xff] }
0x3776   :  { %6401 = vmatpush3.bf16.msra.mxu1 %v7070_v13  ;;  %v6422_v13 = vpack.c.bf16 %v4617_v5, %v4616_v0 }
0x3777   :  { %6403 = vmatprep.subr.bf16.mxu1 %v7080_v25 }
0x377a   :  { %6405 = vmatpush3.bf16.msra.mxu1 %v7088_v33 }
0x377b   :  { %6424 = vmatprep.subr.bf16.mxu1 %v7871_v19 }
0x3830   :  { %v4363_v1 = vpop.f32.mrb[44].mxu1 }
0x3831   :  { %v4365_v6 = vpop.f32.mrb[45].mxu1  ;;  %v4368_v22 = vmul.f32 %v7512_v48, %v4363_v1 }
0x3832   :  { %v4369_v21 = vmul.f32 %v7506_v37, %v4365_v6 }
0x3834   :  { %4434 = vmatprep.mubr.f32.mxu1 %v4369_v21 }
0x3835   :  { %4435 = vmatmul.mubr.f32.vlgmr.msra.gmra.mrb[46].mxu1 %v4368_v22 }
0x3836   :  { %5679 = vmatprep.mubr.msk.f32.mxu1 %vm6604_vm2, %v7870_v35  ;;  %6426 = vmatpush3.bf16.msra.mxu1 %v6425_v16 }
0x3837   :  { %6427 = vmatprep.subr.bf16.mxu1 %v7871_v19 }
0x3908   :  { %v5461_v31 = vpop.f32.mrb[46].mxu1 }
0x3909   :  { %v5462_v32 = vpop.f32.mrb[47].mxu1 }
0x390a   :  { %v5463_v40 = vadd.f32 %v5462_v32, %v5461_v31 }
0x390c   :  { %5647 = vmatmul.mubr.msk.f32.vlgmr.msra.gmra.mrb[44].mxu0 %vm146_vm0, %v5463_v40 }
0x390d   :  { %6414 = vmatpush3.bf16.msra.mxu0 %v7150_v36  ;;  %5657 = vmatprep.mubr.msk.f32.mxu0 %vm6604_vm2, %v7870_v35 }
0x390e   :  { %6415 = vmatprep.subr.bf16.mxu0 %v7871_v19 }
0x3911   :  { %6417 = vmatpush3.bf16.msra.mxu0 %v7160_v60  ;;  %v4829_v60 = vld [vmem:[%s7837_s2 + $0x38] sm:$0xff] }
0x3912   :  { %6418 = vmatprep.subr.bf16.mxu0 %v7871_v19 }
0x3914   :  { %5658 = vmatmul.mubr.msk.f32.vlgmr.msra.gmra.mrb[46].mxu0 %vm146_vm0, %v7728_v58  ;;  %v4612_v58 = vld [vmem:[%s7839_s12 + $0x10] sm:$0xff] }
0x3915   :  { %6420 = vmatpush3.bf16.msra.mxu0 %v6419_v57  ;;  %5668 = vmatprep.mubr.msk.f32.mxu0 %vm6604_vm2, %v7870_v35 }
0x3916   :  { %6421 = vmatprep.subr.bf16.mxu0 %v7871_v19 }
0x3919   :  { %6423 = vmatpush3.bf16.msra.mxu0 %v6422_v13 }
0x391c   :  { %5669 = vmatmul.mubr.msk.f32.vlgmr.msra.gmra.mrb[48].mxu0 %vm146_vm0, %v5463_v40 }
0x39df   :  { %v4509_v25 = vpop.f32.mrb[44].mxu0 }
0x39e0   :  { %v5648_v33 = vpop.f32.mrb[45].mxu0 }
0x39e7   :  { %v4579_v36 = vpop.f32.mrb[46].mxu0 }
0x39e8   :  { %v4580_v37 = vadd.f32 %v4579_v36, %v4509_v25  ;;  %v5659_v48 = vpop.f32.mrb[47].mxu0 }
0x39ea   :  { %v4585_v50 = vadd.f32 %v4829_v60, %v4580_v37 }
0x39ec   :  { %6588 = vtanh.f32 %v4585_v50  ;;  %v4830_v35 = vmul.f32 -1.442695, %v4585_v50 }
0x39ee   :  { %6590 = vpow2.f32 %v4830_v35 }
0x39ef   :  { %v4684_v53 = vpop.f32.mrb[48].mxu0 }
0x39f0   :  { %v5670_v8 = vpop.f32.mrb[49].mxu0 }
0x39f6   :  { %v6589_v56 = vpop.eup %6588 }
0x39f7   :  { %4595 = vrot.lane.b32.xlu0 %v6589_v56, %s6605_s23 }
0x39f8   :  { %v6591_v9 = vpop.eup %6590 }
0x39f9   :  { %v4589_v14 = vadd.f32 1.0, %v6591_v9 }
0x39fb   :  { %6592 = vrcp.f32 %v4589_v14 }
0x3a05   :  { %v6593_v59 = vpop.eup %6592 }
0x3a06   :  { %v4593_v10 = vmul.f32 %v6593_v59, %v7721_v15  ;;  %v4613_v15 = vld [vmem:[%s7839_s12 + $0x18] sm:$0xff] }
0x3a07   :  { %v6428_v43 = vpack.c.bf16 %v4613_v15, %v4612_v58 }
0x3a09   :  { %6429 = vmatpush3.bf16.msra.mxu1 %v6428_v43 }
0x3a69   :  { %v4596_v62 = vpop.permute.xlu0 %4595 }
0x3a6a   :  { %v4598_v2 = vmul.f32 %v6593_v59, %v4596_v62 }
0x3a6c   :  { %4600 = vrot.lane.b32.xlu1 %v4598_v2, %s6605_s23 }
0x3ade   :  { %v4601_v11 = vpop.permute.xlu1 %4600 }
0x3adf   :  { %v4603_v44 = vadd.f32 %v4601_v11, %v4593_v10 }
0x3ae1   :  { %6594 = vtanh.f32 %v4603_v44 }
0x3aeb   :  { %v6595_v23 = vpop.eup %6594 }
0x3aec   :  { %4606 = vrot.lane.b32.xlu1 %v6595_v23, %s6605_s23 }
0x3b5e   :  { %v4607_v63 = vpop.permute.xlu1 %4606 }
0x3b5f   :  { %v4609_v28 = vmul.f32 %v6593_v59, %v4607_v63 }
0x3b61   :  { %4689 = vrot.lane.b32.xlu0 %v4609_v28, %s6606_s24 }
0x3bd3   :  { %v4690_v27 = vpop.permute.xlu0 %4689 }
0x3bd4   :  { %5680 = vmatmul.mubr.msk.f32.vlgmr.msra.gmra.mrb[48].mxu1 %vm146_vm0, %v4690_v27 }
0x3ca7   :  { %v4759_v17 = vpop.f32.mrb[48].mxu1 }
0x3ca8   :  { %v4760_v34 = vadd.f32 %v4759_v17, %v4684_v53  ;;  %v5681_v42 = vpop.f32.mrb[49].mxu1 }
0x3caa   :  { %v4770_v54 = vadd.f32 %v4833_v26, %v4760_v34 }
0x3cac   :  { %4771 = vst.msk [vmem:[%s7841_s15] sm:$0xff] %vm146_vm0, %v4770_v54 }

</bundles_post_ra>
